<compile_context>
chip_gen: v6e
topology: v6e:2x2x1
jax: 0.10.0
libtpu: 0.0.40
codegen_flags: <defaults>
</compile_context>

<pallas_src>
import jax
import jax.numpy as jnp
from jax.experimental import pallas as pl
from jax.experimental.pallas import tpu as pltpu

EPS = 1e-5
MXU_DTYPE = jnp.bfloat16   # MXU operand dtype (accumulation is always f32)
KH = KW = 5


# ----------------------------- packed-slab layouts -----------------------------

def _mat_entries(N):
    # name, rows, cols of every matrix living in the bf16 matrix slab.
    return [
        ("w1", KH * 32 * 1, 28 * 6),    # c1 block-Toeplitz: (5*W_in*IC, OW*OC)
        ("w2", KH * 14 * 6, 10 * 16),   # c3
        ("w3", KH * 5 * 16, 1 * 120),   # c5
        ("w6", 120, 84),                # f6
        ("w7", 84, 10),                 # f7
        ("shb1", N * 14, N * 27),       # pool1 batched even-row select (block-diag)
        ("sw1", 27 * 6, 14 * 6),        # pool1 even-column-block select
        ("shb2", N * 5, N * 9),         # pool2 even-row select
        ("sw2", 9 * 16, 5 * 16),        # pool2 even-column-block select
    ]


def _mat_layout(N):
    layout, off = {}, 0
    for name, r, c in _mat_entries(N):
        layout[name] = (off, r, c)
        off += -(-r // 8) * 8            # pad each sub-matrix to a sublane multiple
    lanes = max(c for _, _, c in _mat_entries(N))
    return layout, off, lanes


# f32 vector slab: one row per bias / gamma / beta vector (tiled over ow host-side).
_VEC_ROWS = {
    "b1": (0, 168), "g1": (1, 168), "be1": (2, 168),
    "b2": (3, 160), "g2": (4, 160), "be2": (5, 160),
    "b3": (6, 120), "g3": (7, 120), "be3": (8, 120),
    "b6": (9, 84), "b7": (10, 10),
}
_VEC_SHAPE = (11, 168)


# ----------------------------- in-kernel building blocks -----------------------------

def _fold_ow(v, OW, OC):
    """(1, OW*OC) -> (1, OC): per-channel sum over the ow lane groups (VPU adds)."""
    if OW == 1:
        return v
    acc = v[:, 0:OC]
    for ow in range(1, OW):
        acc = acc + v[:, ow * OC:(ow + 1) * OC]
    return acc


def _bcast_ow(v, OW):
    """(1, OC) -> (1, OW*OC): broadcast per-channel values back to the ow-major lanes."""
    if OW == 1:
        return v
    return jnp.concatenate([v] * OW, axis=-1)


def _conv_bn_relu(a, w, b, g, be, OH, OW, OC):
    """5x5 valid conv (stride 1) + train-mode BatchNorm2d + ReLU, batch folded into M.

    a  : (N, H, W*IC) activation, lane index = w*IC + ic
    w  : (5*W*IC, OW*OC) bf16 banded block-Toeplitz weight (5 kernel rows folded into K)
    b/g/be : (1, OW*OC) f32 conv-bias / bn-gamma / bn-beta (tiled over ow)
    returns (N, OH, OW*OC) f32, lane index = ow*OC + oc
    """
    N, _, WIC = a.shape
    a_bf = a.astype(MXU_DTYPE)                                       # one cast per layer
    a_cat = jnp.concatenate([a_bf[:, i:i + OH, :] for i in range(KH)], axis=-1)
    y = jnp.dot(a_cat.reshape(N * OH, KH * WIC), w,
                preferred_element_type=jnp.float32)                  # one MXU dot / layer
    y = y.reshape(N, OH, OW * OC) + b

    # BatchNorm2d (train mode): biased variance over the N*OH*OW samples of each channel.
    inv_cnt = 1.0 / float(N * OH * OW)
    ssum = jnp.sum(jnp.sum(y, axis=0), axis=0, keepdims=True)        # (1, OW*OC)
    mu = _bcast_ow(_fold_ow(ssum, OW, OC) * inv_cnt, OW)
    d = y - mu
    ssq = jnp.sum(jnp.sum(d * d, axis=0), axis=0, keepdims=True)
    inv = _bcast_ow(jax.lax.rsqrt(_fold_ow(ssq, OW, OC) * inv_cnt + EPS), OW)
    return jnp.maximum(d * (inv * g) + be, 0.0)                      # ReLU


def _maxpool2x2(y, shb, sw, C):
    """MaxPool2d(2, 2): shifted-slice maxes + two batched bf16 0/1 selection matmuls.

    y   : (N, OH, OW*C) f32
    shb : (N*OH/2, N*(OH-1)) bf16 block-diagonal even-row selector (all samples at once)
    sw  : ((OW-1)*C, (OW/2)*C) bf16 even-column-block selector
    """
    N, OH, L = y.shape
    OW = L // C
    t = jnp.maximum(y[:, :OH - 1, :], y[:, 1:, :])                   # row pairs
    t = jnp.maximum(t[:, :, :L - C], t[:, :, C:])                    # column-block pairs
    t = t.reshape(N * (OH - 1), L - C).astype(MXU_DTYPE)
    rows = jnp.dot(shb, t, preferred_element_type=jnp.float32)       # pick even rows
    out = jnp.dot(rows.astype(MXU_DTYPE), sw,
                  preferred_element_type=jnp.float32)                # pick even blocks
    return out.reshape(N, OH // 2, (OW // 2) * C)


def _make_kernel(N, layout):
    def mat(ref, name):
        off, r, c = layout[name]
        return ref[off:off + r, 0:c]

    def vec(ref, name):
        row, w = _VEC_ROWS[name]
        return ref[row:row + 1, 0:w]

    def kernel(x_ref, mat_ref, vec_ref, o_ref):
        x = x_ref[...]                                               # (N, 32, 32) f32, IC=1

        # c1 -> bn1 -> relu1 -> s2
        y = _conv_bn_relu(x, mat(mat_ref, "w1"), vec(vec_ref, "b1"),
                          vec(vec_ref, "g1"), vec(vec_ref, "be1"),
                          OH=28, OW=28, OC=6)                        # (N, 28, 168)
        y = _maxpool2x2(y, mat(mat_ref, "shb1"), mat(mat_ref, "sw1"), C=6)   # (N, 14, 84)
        # c3 -> bn2 -> relu3 -> s4
        y = _conv_bn_relu(y, mat(mat_ref, "w2"), vec(vec_ref, "b2"),
                          vec(vec_ref, "g2"), vec(vec_ref, "be2"),
                          OH=10, OW=10, OC=16)                       # (N, 10, 160)
        y = _maxpool2x2(y, mat(mat_ref, "shb2"), mat(mat_ref, "sw2"), C=16)  # (N, 5, 80)
        # c5 -> bn3 -> relu5 (spatial collapses to 1x1)
        y = _conv_bn_relu(y, mat(mat_ref, "w3"), vec(vec_ref, "b3"),
                          vec(vec_ref, "g3"), vec(vec_ref, "be3"),
                          OH=1, OW=1, OC=120)                        # (N, 1, 120)

        # f6 -> relu6 -> f7 -> log_softmax, batched over rows
        h = y.reshape(N, 120).astype(MXU_DTYPE)
        h = jnp.maximum(jnp.dot(h, mat(mat_ref, "w6"),
                                preferred_element_type=jnp.float32)
                        + vec(vec_ref, "b6"), 0.0)                   # (N, 84)
        logits = jnp.dot(h.astype(MXU_DTYPE), mat(mat_ref, "w7"),
                         preferred_element_type=jnp.float32) + vec(vec_ref, "b7")  # (N, 10)
        z = logits - jnp.max(logits, axis=-1, keepdims=True)
        o_ref[...] = z - jnp.log(jnp.sum(jnp.exp(z), axis=-1, keepdims=True))

    return kernel


# ----------------------------- pallas_call wrapper -----------------------------

def _spec(shape):
    nd = len(shape)
    return pl.BlockSpec(tuple(shape), lambda i, nd=nd: (0,) * nd)


def improved_lenet5_forward(img_nchw, mat_slab, vec_slab):
    x = img_nchw[:, 0, :, :].astype(jnp.float32)                     # NCHW (IC=1) -> (N, 32, 32)
    N = x.shape[0]
    layout, rows, lanes = _mat_layout(N)
    assert mat_slab.shape == (rows, lanes) and vec_slab.shape == _VEC_SHAPE
    kernel = _make_kernel(N, layout)
    args = (x, mat_slab, vec_slab)
    return pl.pallas_call(
        kernel,
        out_shape=jax.ShapeDtypeStruct((N, 10), jnp.float32),
        grid=(1,),
        in_specs=[_spec(a.shape) for a in args],
        out_specs=_spec((N, 10)),
        compiler_params=pltpu.CompilerParams(dimension_semantics=("arbitrary",)),
    )(*args)


# ----------------------------- host-side parameter packing -----------------------------

def _conv_toeplitz(w_ochw, OW):
    """PyTorch conv weight (OC, IC, 5, 5) -> (5*W_in*IC, OW*OC) banded block-Toeplitz."""
    OC, IC, kh, kw = w_ochw.shape
    W_in = OW + kw - 1
    wt = jnp.transpose(w_ochw, (2, 3, 1, 0))                         # (KH, KW, IC, OC)
    mats = []
    for i in range(kh):
        m = jnp.zeros((W_in * IC, OW * OC), jnp.float32)
        for j in range(kw):
            shift = jnp.eye(W_in, OW, k=-j, dtype=jnp.float32)       # 1 at [ow+j, ow]
            m = m + jnp.kron(shift, wt[i, j])
        mats.append(m)
    return jnp.concatenate(mats, axis=0)


def _pool_row_select(OH, N):
    """Block-diagonal (N*OH/2, N*(OH-1)) 0/1 matrix selecting even rows of every sample."""
    OH2 = OH // 2
    s = jnp.zeros((N * OH2, N * (OH - 1)), jnp.float32)
    for n in range(N):
        s = s.at[n * OH2 + jnp.arange(OH2), n * (OH - 1) + 2 * jnp.arange(OH2)].set(1.0)
    return s


def _pool_col_select(OW, C):
    """((OW-1)*C, (OW/2)*C) 0/1 matrix selecting even column blocks."""
    OW2 = OW // 2
    sel = jnp.zeros((OW - 1, OW2), jnp.float32)
    sel = sel.at[2 * jnp.arange(OW2), jnp.arange(OW2)].set(1.0)
    return jnp.kron(sel, jnp.eye(C, dtype=jnp.float32))


def pack_params(p, N):
    mats = {
        "w1": _conv_toeplitz(p["c1_w"], OW=28),
        "w2": _conv_toeplitz(p["c3_w"], OW=10),
        "w3": _conv_toeplitz(p["c5_w"], OW=1),
        "w6": p["f6_w"],
        "w7": p["f7_w"],
        "shb1": _pool_row_select(28, N),
        "sw1": _pool_col_select(28, 6),
        "shb2": _pool_row_select(10, N),
        "sw2": _pool_col_select(10, 16),
    }
    layout, rows, lanes = _mat_layout(N)
    mat_slab = jnp.zeros((rows, lanes), jnp.float32)
    for name, (off, r, c) in layout.items():
        m = mats[name]
        assert m.shape == (r, c), (name, m.shape, (r, c))
        mat_slab = mat_slab.at[off:off + r, 0:c].set(m)
    mat_slab = mat_slab.astype(MXU_DTYPE)

    vecs = {
        "b1": jnp.tile(p["c1_b"], 28), "g1": jnp.tile(p["bn1_g"], 28), "be1": jnp.tile(p["bn1_b"], 28),
        "b2": jnp.tile(p["c3_b"], 10), "g2": jnp.tile(p["bn2_g"], 10), "be2": jnp.tile(p["bn2_b"], 10),
        "b3": p["c5_b"], "g3": p["bn3_g"], "be3": p["bn3_b"],
        "b6": p["f6_b"], "b7": p["f7_b"],
    }
    vec_slab = jnp.zeros(_VEC_SHAPE, jnp.float32)
    for name, (row, w) in _VEC_ROWS.items():
        v = vecs[name]
        assert v.shape == (w,), (name, v.shape, w)
        vec_slab = vec_slab.at[row, 0:w].set(v)
    return mat_slab, vec_slab


def init_params(key):
    ks = jax.random.split(key, 10)

    def uinit(k, shape, fan_in):
        bound = 1.0 / (float(fan_in) ** 0.5)
        return jax.random.uniform(k, shape, jnp.float32, -bound, bound)

    p = {}
    p["c1_w"] = uinit(ks[0], (6, 1, 5, 5), 25);     p["c1_b"] = uinit(ks[1], (6,), 25)
    p["bn1_g"] = jnp.ones((6,), jnp.float32);       p["bn1_b"] = jnp.zeros((6,), jnp.float32)
    p["c3_w"] = uinit(ks[2], (16, 6, 5, 5), 150);   p["c3_b"] = uinit(ks[3], (16,), 150)
    p["bn2_g"] = jnp.ones((16,), jnp.float32);      p["bn2_b"] = jnp.zeros((16,), jnp.float32)
    p["c5_w"] = uinit(ks[4], (120, 16, 5, 5), 400); p["c5_b"] = uinit(ks[5], (120,), 400)
    p["bn3_g"] = jnp.ones((120,), jnp.float32);     p["bn3_b"] = jnp.zeros((120,), jnp.float32)
    p["f6_w"] = uinit(ks[6], (120, 84), 120);       p["f6_b"] = uinit(ks[7], (84,), 120)
    p["f7_w"] = uinit(ks[8], (84, 10), 84);         p["f7_b"] = uinit(ks[9], (10,), 84)
    return p


if __name__ == "__main__":
    key = jax.random.PRNGKey(0)
    k_img, k_par = jax.random.split(key)
    # LeNet-5 expects 1x32x32 inputs (so c5 collapses to 1x1); batch = 2.
    img = jax.random.normal(k_img, (2, 1, 32, 32), dtype=jnp.float32)
    params = init_params(k_par)
    mat_slab, vec_slab = pack_params(params, N=img.shape[0])

    out = improved_lenet5_forward(img, mat_slab, vec_slab)
    out = jax.block_until_ready(out)
    assert out.shape == (2, 10)
    # log-softmax rows should exp-sum to ~1
    assert jnp.allclose(jnp.sum(jnp.exp(out), axis=-1), 1.0, atol=1e-4)
    print("KERNEL_OK")
</pallas_src>

<mosaic_0001>
module attributes {stable_mosaic.version = 11 : i64} {
  func.func @kernel(%arg0: i32, %arg1: memref<2x32x32xf32, #tpu.memory_space<vmem>>, %arg2: memref<1552x168xbf16, #tpu.memory_space<vmem>>, %arg3: memref<11x168xf32, #tpu.memory_space<vmem>>, %arg4: memref<2x10xf32, #tpu.memory_space<vmem>>) attributes {dimension_semantics = [#tpu.dimension_semantics<arbitrary>], iteration_bounds = array<i64: 1>, scalar_prefetch = 0 : i64, scratch_operands = 0 : i64, tpu.core_type = #tpu.core_type<tc>, window_params = [{pipeline_mode = #tpu.pipeline_mode<synchronous>, transform_indices = @transform_0, window_bounds = array<i64: 2, 32, 32>}, {pipeline_mode = #tpu.pipeline_mode<synchronous>, transform_indices = @transform_1, window_bounds = array<i64: 1552, 168>}, {pipeline_mode = #tpu.pipeline_mode<synchronous>, transform_indices = @transform_2, window_bounds = array<i64: 11, 168>}, {pipeline_mode = #tpu.pipeline_mode<synchronous>, transform_indices = @transform_3, window_bounds = array<i64: 2, 10>}]} {
    %c0 = arith.constant 0 : index
    %c0_0 = arith.constant 0 : index
    %c0_1 = arith.constant 0 : index
    %0 = vector.load %arg1[%c0, %c0_0, %c0_1] : memref<2x32x32xf32, #tpu.memory_space<vmem>>, vector<2x32x32xf32>
    %c0_2 = arith.constant 0 : index
    %c0_3 = arith.constant 0 : index
    %1 = vector.load %arg2[%c0_2, %c0_3] : memref<1552x168xbf16, #tpu.memory_space<vmem>>, vector<160x168xbf16>
    %c0_4 = arith.constant 0 : index
    %c0_5 = arith.constant 0 : index
    %2 = vector.load %arg3[%c0_4, %c0_5] : memref<11x168xf32, #tpu.memory_space<vmem>>, vector<1x168xf32>
    %c1 = arith.constant 1 : index
    %c0_6 = arith.constant 0 : index
    %3 = vector.load %arg3[%c1, %c0_6] : memref<11x168xf32, #tpu.memory_space<vmem>>, vector<1x168xf32>
    %c2 = arith.constant 2 : index
    %c0_7 = arith.constant 0 : index
    %4 = vector.load %arg3[%c2, %c0_7] : memref<11x168xf32, #tpu.memory_space<vmem>>, vector<1x168xf32>
    %5 = arith.truncf %0 : vector<2x32x32xf32> to vector<2x32x32xbf16>
    %6 = vector.extract_strided_slice %5 {offsets = [0, 0, 0], sizes = [2, 28, 32], strides = [1, 1, 1]} : vector<2x32x32xbf16> to vector<2x28x32xbf16>
    %7 = vector.extract_strided_slice %5 {offsets = [0, 1, 0], sizes = [2, 28, 32], strides = [1, 1, 1]} : vector<2x32x32xbf16> to vector<2x28x32xbf16>
    %8 = vector.extract_strided_slice %5 {offsets = [0, 2, 0], sizes = [2, 28, 32], strides = [1, 1, 1]} : vector<2x32x32xbf16> to vector<2x28x32xbf16>
    %9 = vector.extract_strided_slice %5 {offsets = [0, 3, 0], sizes = [2, 28, 32], strides = [1, 1, 1]} : vector<2x32x32xbf16> to vector<2x28x32xbf16>
    %10 = vector.extract_strided_slice %5 {offsets = [0, 4, 0], sizes = [2, 28, 32], strides = [1, 1, 1]} : vector<2x32x32xbf16> to vector<2x28x32xbf16>
    %11 = tpu.concatenate %6, %7, %8, %9, %10 in 2 : vector<2x28x32xbf16>, vector<2x28x32xbf16>, vector<2x28x32xbf16>, vector<2x28x32xbf16>, vector<2x28x32xbf16> -> vector<2x28x160xbf16>
    %12 = vector.shape_cast %11 : vector<2x28x160xbf16> to vector<56x160xbf16>
    %cst = arith.constant dense<0.000000e+00> : vector<56x168xf32>
    %13 = tpu.matmul %12, %1, %cst {dimension_numbers = #tpu.dot_dimension_numbers<[1], [0], [0], [1], [0, 0, 1, 1], [], []>} : vector<56x160xbf16>, vector<160x168xbf16>, vector<56x168xf32> -> vector<56x168xf32>
    %14 = vector.shape_cast %13 : vector<56x168xf32> to vector<2x28x168xf32>
    %15 = vector.shape_cast %2 : vector<1x168xf32> to vector<1x1x168xf32>
    %16 = vector.broadcast %15 : vector<1x1x168xf32> to vector<2x28x168xf32>
    %17 = arith.addf %14, %16 : vector<2x28x168xf32>
    %cst_8 = arith.constant dense<0.000000e+00> : vector<28x168xf32>
    %18 = vector.multi_reduction <add>, %17, %cst_8 [0] : vector<2x28x168xf32> to vector<28x168xf32>
    %cst_9 = arith.constant dense<0.000000e+00> : vector<168xf32>
    %19 = vector.multi_reduction <add>, %18, %cst_9 [0] : vector<28x168xf32> to vector<168xf32>
    %20 = vector.shape_cast %19 : vector<168xf32> to vector<1x168xf32>
    %21 = vector.extract_strided_slice %20 {offsets = [0, 0], sizes = [1, 6], strides = [1, 1]} : vector<1x168xf32> to vector<1x6xf32>
    %22 = vector.extract_strided_slice %20 {offsets = [0, 6], sizes = [1, 6], strides = [1, 1]} : vector<1x168xf32> to vector<1x6xf32>
    %23 = arith.addf %21, %22 : vector<1x6xf32>
    %24 = vector.extract_strided_slice %20 {offsets = [0, 12], sizes = [1, 6], strides = [1, 1]} : vector<1x168xf32> to vector<1x6xf32>
    %25 = arith.addf %23, %24 : vector<1x6xf32>
    %26 = vector.extract_strided_slice %20 {offsets = [0, 18], sizes = [1, 6], strides = [1, 1]} : vector<1x168xf32> to vector<1x6xf32>
    %27 = arith.addf %25, %26 : vector<1x6xf32>
    %28 = vector.extract_strided_slice %20 {offsets = [0, 24], sizes = [1, 6], strides = [1, 1]} : vector<1x168xf32> to vector<1x6xf32>
    %29 = arith.addf %27, %28 : vector<1x6xf32>
    %30 = vector.extract_strided_slice %20 {offsets = [0, 30], sizes = [1, 6], strides = [1, 1]} : vector<1x168xf32> to vector<1x6xf32>
    %31 = arith.addf %29, %30 : vector<1x6xf32>
    %32 = vector.extract_strided_slice %20 {offsets = [0, 36], sizes = [1, 6], strides = [1, 1]} : vector<1x168xf32> to vector<1x6xf32>
    %33 = arith.addf %31, %32 : vector<1x6xf32>
    %34 = vector.extract_strided_slice %20 {offsets = [0, 42], sizes = [1, 6], strides = [1, 1]} : vector<1x168xf32> to vector<1x6xf32>
    %35 = arith.addf %33, %34 : vector<1x6xf32>
    %36 = vector.extract_strided_slice %20 {offsets = [0, 48], sizes = [1, 6], strides = [1, 1]} : vector<1x168xf32> to vector<1x6xf32>
    %37 = arith.addf %35, %36 : vector<1x6xf32>
    %38 = vector.extract_strided_slice %20 {offsets = [0, 54], sizes = [1, 6], strides = [1, 1]} : vector<1x168xf32> to vector<1x6xf32>
    %39 = arith.addf %37, %38 : vector<1x6xf32>
    %40 = vector.extract_strided_slice %20 {offsets = [0, 60], sizes = [1, 6], strides = [1, 1]} : vector<1x168xf32> to vector<1x6xf32>
    %41 = arith.addf %39, %40 : vector<1x6xf32>
    %42 = vector.extract_strided_slice %20 {offsets = [0, 66], sizes = [1, 6], strides = [1, 1]} : vector<1x168xf32> to vector<1x6xf32>
    %43 = arith.addf %41, %42 : vector<1x6xf32>
    %44 = vector.extract_strided_slice %20 {offsets = [0, 72], sizes = [1, 6], strides = [1, 1]} : vector<1x168xf32> to vector<1x6xf32>
    %45 = arith.addf %43, %44 : vector<1x6xf32>
    %46 = vector.extract_strided_slice %20 {offsets = [0, 78], sizes = [1, 6], strides = [1, 1]} : vector<1x168xf32> to vector<1x6xf32>
    %47 = arith.addf %45, %46 : vector<1x6xf32>
    %48 = vector.extract_strided_slice %20 {offsets = [0, 84], sizes = [1, 6], strides = [1, 1]} : vector<1x168xf32> to vector<1x6xf32>
    %49 = arith.addf %47, %48 : vector<1x6xf32>
    %50 = vector.extract_strided_slice %20 {offsets = [0, 90], sizes = [1, 6], strides = [1, 1]} : vector<1x168xf32> to vector<1x6xf32>
    %51 = arith.addf %49, %50 : vector<1x6xf32>
    %52 = vector.extract_strided_slice %20 {offsets = [0, 96], sizes = [1, 6], strides = [1, 1]} : vector<1x168xf32> to vector<1x6xf32>
    %53 = arith.addf %51, %52 : vector<1x6xf32>
    %54 = vector.extract_strided_slice %20 {offsets = [0, 102], sizes = [1, 6], strides = [1, 1]} : vector<1x168xf32> to vector<1x6xf32>
    %55 = arith.addf %53, %54 : vector<1x6xf32>
    %56 = vector.extract_strided_slice %20 {offsets = [0, 108], sizes = [1, 6], strides = [1, 1]} : vector<1x168xf32> to vector<1x6xf32>
    %57 = arith.addf %55, %56 : vector<1x6xf32>
    %58 = vector.extract_strided_slice %20 {offsets = [0, 114], sizes = [1, 6], strides = [1, 1]} : vector<1x168xf32> to vector<1x6xf32>
    %59 = arith.addf %57, %58 : vector<1x6xf32>
    %60 = vector.extract_strided_slice %20 {offsets = [0, 120], sizes = [1, 6], strides = [1, 1]} : vector<1x168xf32> to vector<1x6xf32>
    %61 = arith.addf %59, %60 : vector<1x6xf32>
    %62 = vector.extract_strided_slice %20 {offsets = [0, 126], sizes = [1, 6], strides = [1, 1]} : vector<1x168xf32> to vector<1x6xf32>
    %63 = arith.addf %61, %62 : vector<1x6xf32>
    %64 = vector.extract_strided_slice %20 {offsets = [0, 132], sizes = [1, 6], strides = [1, 1]} : vector<1x168xf32> to vector<1x6xf32>
    %65 = arith.addf %63, %64 : vector<1x6xf32>
    %66 = vector.extract_strided_slice %20 {offsets = [0, 138], sizes = [1, 6], strides = [1, 1]} : vector<1x168xf32> to vector<1x6xf32>
    %67 = arith.addf %65, %66 : vector<1x6xf32>
    %68 = vector.extract_strided_slice %20 {offsets = [0, 144], sizes = [1, 6], strides = [1, 1]} : vector<1x168xf32> to vector<1x6xf32>
    %69 = arith.addf %67, %68 : vector<1x6xf32>
    %70 = vector.extract_strided_slice %20 {offsets = [0, 150], sizes = [1, 6], strides = [1, 1]} : vector<1x168xf32> to vector<1x6xf32>
    %71 = arith.addf %69, %70 : vector<1x6xf32>
    %72 = vector.extract_strided_slice %20 {offsets = [0, 156], sizes = [1, 6], strides = [1, 1]} : vector<1x168xf32> to vector<1x6xf32>
    %73 = arith.addf %71, %72 : vector<1x6xf32>
    %74 = vector.extract_strided_slice %20 {offsets = [0, 162], sizes = [1, 6], strides = [1, 1]} : vector<1x168xf32> to vector<1x6xf32>
    %75 = arith.addf %73, %74 : vector<1x6xf32>
    %cst_10 = arith.constant 6.37755089E-4 : f32
    %76 = vector.broadcast %cst_10 : f32 to vector<1x6xf32>
    %77 = arith.mulf %75, %76 : vector<1x6xf32>
    %78 = tpu.concatenate %77, %77, %77, %77, %77, %77, %77, %77, %77, %77, %77, %77, %77, %77, %77, %77 in 1 : vector<1x6xf32>, vector<1x6xf32>, vector<1x6xf32>, vector<1x6xf32>, vector<1x6xf32>, vector<1x6xf32>, vector<1x6xf32>, vector<1x6xf32>, vector<1x6xf32>, vector<1x6xf32>, vector<1x6xf32>, vector<1x6xf32>, vector<1x6xf32>, vector<1x6xf32>, vector<1x6xf32>, vector<1x6xf32> -> vector<1x96xf32>
    %79 = tpu.concatenate %77, %77, %77, %77, %77, %77, %77, %77, %77, %77, %77, %77 in 1 : vector<1x6xf32>, vector<1x6xf32>, vector<1x6xf32>, vector<1x6xf32>, vector<1x6xf32>, vector<1x6xf32>, vector<1x6xf32>, vector<1x6xf32>, vector<1x6xf32>, vector<1x6xf32>, vector<1x6xf32>, vector<1x6xf32> -> vector<1x72xf32>
    %80 = tpu.concatenate %78, %79 in 1 : vector<1x96xf32>, vector<1x72xf32> -> vector<1x168xf32>
    %81 = vector.shape_cast %80 : vector<1x168xf32> to vector<1x1x168xf32>
    %82 = vector.broadcast %81 : vector<1x1x168xf32> to vector<2x28x168xf32>
    %83 = arith.subf %17, %82 : vector<2x28x168xf32>
    %84 = arith.mulf %83, %83 : vector<2x28x168xf32>
    %cst_11 = arith.constant dense<0.000000e+00> : vector<28x168xf32>
    %85 = vector.multi_reduction <add>, %84, %cst_11 [0] : vector<2x28x168xf32> to vector<28x168xf32>
    %cst_12 = arith.constant dense<0.000000e+00> : vector<168xf32>
    %86 = vector.multi_reduction <add>, %85, %cst_12 [0] : vector<28x168xf32> to vector<168xf32>
    %87 = vector.shape_cast %86 : vector<168xf32> to vector<1x168xf32>
    %88 = vector.extract_strided_slice %87 {offsets = [0, 0], sizes = [1, 6], strides = [1, 1]} : vector<1x168xf32> to vector<1x6xf32>
    %89 = vector.extract_strided_slice %87 {offsets = [0, 6], sizes = [1, 6], strides = [1, 1]} : vector<1x168xf32> to vector<1x6xf32>
    %90 = arith.addf %88, %89 : vector<1x6xf32>
    %91 = vector.extract_strided_slice %87 {offsets = [0, 12], sizes = [1, 6], strides = [1, 1]} : vector<1x168xf32> to vector<1x6xf32>
    %92 = arith.addf %90, %91 : vector<1x6xf32>
    %93 = vector.extract_strided_slice %87 {offsets = [0, 18], sizes = [1, 6], strides = [1, 1]} : vector<1x168xf32> to vector<1x6xf32>
    %94 = arith.addf %92, %93 : vector<1x6xf32>
    %95 = vector.extract_strided_slice %87 {offsets = [0, 24], sizes = [1, 6], strides = [1, 1]} : vector<1x168xf32> to vector<1x6xf32>
    %96 = arith.addf %94, %95 : vector<1x6xf32>
    %97 = vector.extract_strided_slice %87 {offsets = [0, 30], sizes = [1, 6], strides = [1, 1]} : vector<1x168xf32> to vector<1x6xf32>
    %98 = arith.addf %96, %97 : vector<1x6xf32>
    %99 = vector.extract_strided_slice %87 {offsets = [0, 36], sizes = [1, 6], strides = [1, 1]} : vector<1x168xf32> to vector<1x6xf32>
    %100 = arith.addf %98, %99 : vector<1x6xf32>
    %101 = vector.extract_strided_slice %87 {offsets = [0, 42], sizes = [1, 6], strides = [1, 1]} : vector<1x168xf32> to vector<1x6xf32>
    %102 = arith.addf %100, %101 : vector<1x6xf32>
    %103 = vector.extract_strided_slice %87 {offsets = [0, 48], sizes = [1, 6], strides = [1, 1]} : vector<1x168xf32> to vector<1x6xf32>
    %104 = arith.addf %102, %103 : vector<1x6xf32>
    %105 = vector.extract_strided_slice %87 {offsets = [0, 54], sizes = [1, 6], strides = [1, 1]} : vector<1x168xf32> to vector<1x6xf32>
    %106 = arith.addf %104, %105 : vector<1x6xf32>
    %107 = vector.extract_strided_slice %87 {offsets = [0, 60], sizes = [1, 6], strides = [1, 1]} : vector<1x168xf32> to vector<1x6xf32>
    %108 = arith.addf %106, %107 : vector<1x6xf32>
    %109 = vector.extract_strided_slice %87 {offsets = [0, 66], sizes = [1, 6], strides = [1, 1]} : vector<1x168xf32> to vector<1x6xf32>
    %110 = arith.addf %108, %109 : vector<1x6xf32>
    %111 = vector.extract_strided_slice %87 {offsets = [0, 72], sizes = [1, 6], strides = [1, 1]} : vector<1x168xf32> to vector<1x6xf32>
    %112 = arith.addf %110, %111 : vector<1x6xf32>
    %113 = vector.extract_strided_slice %87 {offsets = [0, 78], sizes = [1, 6], strides = [1, 1]} : vector<1x168xf32> to vector<1x6xf32>
    %114 = arith.addf %112, %113 : vector<1x6xf32>
    %115 = vector.extract_strided_slice %87 {offsets = [0, 84], sizes = [1, 6], strides = [1, 1]} : vector<1x168xf32> to vector<1x6xf32>
    %116 = arith.addf %114, %115 : vector<1x6xf32>
    %117 = vector.extract_strided_slice %87 {offsets = [0, 90], sizes = [1, 6], strides = [1, 1]} : vector<1x168xf32> to vector<1x6xf32>
    %118 = arith.addf %116, %117 : vector<1x6xf32>
    %119 = vector.extract_strided_slice %87 {offsets = [0, 96], sizes = [1, 6], strides = [1, 1]} : vector<1x168xf32> to vector<1x6xf32>
    %120 = arith.addf %118, %119 : vector<1x6xf32>
    %121 = vector.extract_strided_slice %87 {offsets = [0, 102], sizes = [1, 6], strides = [1, 1]} : vector<1x168xf32> to vector<1x6xf32>
    %122 = arith.addf %120, %121 : vector<1x6xf32>
    %123 = vector.extract_strided_slice %87 {offsets = [0, 108], sizes = [1, 6], strides = [1, 1]} : vector<1x168xf32> to vector<1x6xf32>
    %124 = arith.addf %122, %123 : vector<1x6xf32>
    %125 = vector.extract_strided_slice %87 {offsets = [0, 114], sizes = [1, 6], strides = [1, 1]} : vector<1x168xf32> to vector<1x6xf32>
    %126 = arith.addf %124, %125 : vector<1x6xf32>
    %127 = vector.extract_strided_slice %87 {offsets = [0, 120], sizes = [1, 6], strides = [1, 1]} : vector<1x168xf32> to vector<1x6xf32>
    %128 = arith.addf %126, %127 : vector<1x6xf32>
    %129 = vector.extract_strided_slice %87 {offsets = [0, 126], sizes = [1, 6], strides = [1, 1]} : vector<1x168xf32> to vector<1x6xf32>
    %130 = arith.addf %128, %129 : vector<1x6xf32>
    %131 = vector.extract_strided_slice %87 {offsets = [0, 132], sizes = [1, 6], strides = [1, 1]} : vector<1x168xf32> to vector<1x6xf32>
    %132 = arith.addf %130, %131 : vector<1x6xf32>
    %133 = vector.extract_strided_slice %87 {offsets = [0, 138], sizes = [1, 6], strides = [1, 1]} : vector<1x168xf32> to vector<1x6xf32>
    %134 = arith.addf %132, %133 : vector<1x6xf32>
    %135 = vector.extract_strided_slice %87 {offsets = [0, 144], sizes = [1, 6], strides = [1, 1]} : vector<1x168xf32> to vector<1x6xf32>
    %136 = arith.addf %134, %135 : vector<1x6xf32>
    %137 = vector.extract_strided_slice %87 {offsets = [0, 150], sizes = [1, 6], strides = [1, 1]} : vector<1x168xf32> to vector<1x6xf32>
    %138 = arith.addf %136, %137 : vector<1x6xf32>
    %139 = vector.extract_strided_slice %87 {offsets = [0, 156], sizes = [1, 6], strides = [1, 1]} : vector<1x168xf32> to vector<1x6xf32>
    %140 = arith.addf %138, %139 : vector<1x6xf32>
    %141 = vector.extract_strided_slice %87 {offsets = [0, 162], sizes = [1, 6], strides = [1, 1]} : vector<1x168xf32> to vector<1x6xf32>
    %142 = arith.addf %140, %141 : vector<1x6xf32>
    %cst_13 = arith.constant 6.37755089E-4 : f32
    %143 = vector.broadcast %cst_13 : f32 to vector<1x6xf32>
    %144 = arith.mulf %142, %143 : vector<1x6xf32>
    %cst_14 = arith.constant 9.99999974E-6 : f32
    %145 = vector.broadcast %cst_14 : f32 to vector<1x6xf32>
    %146 = arith.addf %144, %145 : vector<1x6xf32>
    %147 = math.rsqrt %146 : vector<1x6xf32>
    %148 = tpu.concatenate %147, %147, %147, %147, %147, %147, %147, %147, %147, %147, %147, %147, %147, %147, %147, %147 in 1 : vector<1x6xf32>, vector<1x6xf32>, vector<1x6xf32>, vector<1x6xf32>, vector<1x6xf32>, vector<1x6xf32>, vector<1x6xf32>, vector<1x6xf32>, vector<1x6xf32>, vector<1x6xf32>, vector<1x6xf32>, vector<1x6xf32>, vector<1x6xf32>, vector<1x6xf32>, vector<1x6xf32>, vector<1x6xf32> -> vector<1x96xf32>
    %149 = tpu.concatenate %147, %147, %147, %147, %147, %147, %147, %147, %147, %147, %147, %147 in 1 : vector<1x6xf32>, vector<1x6xf32>, vector<1x6xf32>, vector<1x6xf32>, vector<1x6xf32>, vector<1x6xf32>, vector<1x6xf32>, vector<1x6xf32>, vector<1x6xf32>, vector<1x6xf32>, vector<1x6xf32>, vector<1x6xf32> -> vector<1x72xf32>
    %150 = tpu.concatenate %148, %149 in 1 : vector<1x96xf32>, vector<1x72xf32> -> vector<1x168xf32>
    %151 = arith.mulf %150, %3 : vector<1x168xf32>
    %152 = vector.shape_cast %151 : vector<1x168xf32> to vector<1x1x168xf32>
    %153 = vector.broadcast %152 : vector<1x1x168xf32> to vector<2x28x168xf32>
    %154 = arith.mulf %83, %153 : vector<2x28x168xf32>
    %155 = vector.shape_cast %4 : vector<1x168xf32> to vector<1x1x168xf32>
    %156 = vector.broadcast %155 : vector<1x1x168xf32> to vector<2x28x168xf32>
    %157 = arith.addf %154, %156 : vector<2x28x168xf32>
    %cst_15 = arith.constant 0.000000e+00 : f32
    %158 = vector.broadcast %cst_15 : f32 to vector<2x28x168xf32>
    %159 = arith.maximumf %157, %158 : vector<2x28x168xf32>
    %c1192 = arith.constant 1192 : index
    %c0_16 = arith.constant 0 : index
    %160 = vector.load %arg2[%c1192, %c0_16] : memref<1552x168xbf16, #tpu.memory_space<vmem>>, vector<28x54xbf16>
    %c1224 = arith.constant 1224 : index
    %c0_17 = arith.constant 0 : index
    %161 = vector.load %arg2[%c1224, %c0_17] : memref<1552x168xbf16, #tpu.memory_space<vmem>>, vector<162x84xbf16>
    %162 = vector.extract_strided_slice %159 {offsets = [0, 0, 0], sizes = [2, 27, 168], strides = [1, 1, 1]} : vector<2x28x168xf32> to vector<2x27x168xf32>
    %163 = vector.extract_strided_slice %159 {offsets = [0, 1, 0], sizes = [2, 27, 168], strides = [1, 1, 1]} : vector<2x28x168xf32> to vector<2x27x168xf32>
    %164 = arith.maximumf %162, %163 : vector<2x27x168xf32>
    %165 = vector.extract_strided_slice %164 {offsets = [0, 0, 0], sizes = [2, 27, 162], strides = [1, 1, 1]} : vector<2x27x168xf32> to vector<2x27x162xf32>
    %166 = vector.extract_strided_slice %164 {offsets = [0, 0, 6], sizes = [2, 27, 162], strides = [1, 1, 1]} : vector<2x27x168xf32> to vector<2x27x162xf32>
    %167 = arith.maximumf %165, %166 : vector<2x27x162xf32>
    %168 = vector.shape_cast %167 : vector<2x27x162xf32> to vector<54x162xf32>
    %169 = arith.truncf %168 : vector<54x162xf32> to vector<54x162xbf16>
    %cst_18 = arith.constant dense<0.000000e+00> : vector<28x162xf32>
    %170 = tpu.matmul %160, %169, %cst_18 {dimension_numbers = #tpu.dot_dimension_numbers<[1], [0], [0], [1], [0, 0, 1, 1], [], []>} : vector<28x54xbf16>, vector<54x162xbf16>, vector<28x162xf32> -> vector<28x162xf32>
    %171 = arith.truncf %170 : vector<28x162xf32> to vector<28x162xbf16>
    %cst_19 = arith.constant dense<0.000000e+00> : vector<28x84xf32>
    %172 = tpu.matmul %171, %161, %cst_19 {dimension_numbers = #tpu.dot_dimension_numbers<[1], [0], [0], [1], [0, 0, 1, 1], [], []>} : vector<28x162xbf16>, vector<162x84xbf16>, vector<28x84xf32> -> vector<28x84xf32>
    %173 = vector.shape_cast %172 : vector<28x84xf32> to vector<2x14x84xf32>
    %c160 = arith.constant 160 : index
    %c0_20 = arith.constant 0 : index
    %174 = vector.load %arg2[%c160, %c0_20] : memref<1552x168xbf16, #tpu.memory_space<vmem>>, vector<420x160xbf16>
    %c3 = arith.constant 3 : index
    %c0_21 = arith.constant 0 : index
    %175 = vector.load %arg3[%c3, %c0_21] : memref<11x168xf32, #tpu.memory_space<vmem>>, vector<1x160xf32>
    %c4 = arith.constant 4 : index
    %c0_22 = arith.constant 0 : index
    %176 = vector.load %arg3[%c4, %c0_22] : memref<11x168xf32, #tpu.memory_space<vmem>>, vector<1x160xf32>
    %c5 = arith.constant 5 : index
    %c0_23 = arith.constant 0 : index
    %177 = vector.load %arg3[%c5, %c0_23] : memref<11x168xf32, #tpu.memory_space<vmem>>, vector<1x160xf32>
    %178 = arith.truncf %173 : vector<2x14x84xf32> to vector<2x14x84xbf16>
    %179 = vector.extract_strided_slice %178 {offsets = [0, 0, 0], sizes = [2, 10, 84], strides = [1, 1, 1]} : vector<2x14x84xbf16> to vector<2x10x84xbf16>
    %180 = vector.extract_strided_slice %178 {offsets = [0, 1, 0], sizes = [2, 10, 84], strides = [1, 1, 1]} : vector<2x14x84xbf16> to vector<2x10x84xbf16>
    %181 = vector.extract_strided_slice %178 {offsets = [0, 2, 0], sizes = [2, 10, 84], strides = [1, 1, 1]} : vector<2x14x84xbf16> to vector<2x10x84xbf16>
    %182 = vector.extract_strided_slice %178 {offsets = [0, 3, 0], sizes = [2, 10, 84], strides = [1, 1, 1]} : vector<2x14x84xbf16> to vector<2x10x84xbf16>
    %183 = vector.extract_strided_slice %178 {offsets = [0, 4, 0], sizes = [2, 10, 84], strides = [1, 1, 1]} : vector<2x14x84xbf16> to vector<2x10x84xbf16>
    %184 = tpu.concatenate %179, %180, %181, %182, %183 in 2 : vector<2x10x84xbf16>, vector<2x10x84xbf16>, vector<2x10x84xbf16>, vector<2x10x84xbf16>, vector<2x10x84xbf16> -> vector<2x10x420xbf16>
    %185 = vector.shape_cast %184 : vector<2x10x420xbf16> to vector<20x420xbf16>
    %cst_24 = arith.constant dense<0.000000e+00> : vector<20x160xf32>
    %186 = tpu.matmul %185, %174, %cst_24 {dimension_numbers = #tpu.dot_dimension_numbers<[1], [0], [0], [1], [0, 0, 1, 1], [], []>} : vector<20x420xbf16>, vector<420x160xbf16>, vector<20x160xf32> -> vector<20x160xf32>
    %187 = vector.shape_cast %186 : vector<20x160xf32> to vector<2x10x160xf32>
    %188 = vector.shape_cast %175 : vector<1x160xf32> to vector<1x1x160xf32>
    %189 = vector.broadcast %188 : vector<1x1x160xf32> to vector<2x10x160xf32>
    %190 = arith.addf %187, %189 : vector<2x10x160xf32>
    %cst_25 = arith.constant dense<0.000000e+00> : vector<10x160xf32>
    %191 = vector.multi_reduction <add>, %190, %cst_25 [0] : vector<2x10x160xf32> to vector<10x160xf32>
    %cst_26 = arith.constant dense<0.000000e+00> : vector<160xf32>
    %192 = vector.multi_reduction <add>, %191, %cst_26 [0] : vector<10x160xf32> to vector<160xf32>
    %193 = vector.shape_cast %192 : vector<160xf32> to vector<1x160xf32>
    %194 = vector.extract_strided_slice %193 {offsets = [0, 0], sizes = [1, 16], strides = [1, 1]} : vector<1x160xf32> to vector<1x16xf32>
    %195 = vector.extract_strided_slice %193 {offsets = [0, 16], sizes = [1, 16], strides = [1, 1]} : vector<1x160xf32> to vector<1x16xf32>
    %196 = arith.addf %194, %195 : vector<1x16xf32>
    %197 = vector.extract_strided_slice %193 {offsets = [0, 32], sizes = [1, 16], strides = [1, 1]} : vector<1x160xf32> to vector<1x16xf32>
    %198 = arith.addf %196, %197 : vector<1x16xf32>
    %199 = vector.extract_strided_slice %193 {offsets = [0, 48], sizes = [1, 16], strides = [1, 1]} : vector<1x160xf32> to vector<1x16xf32>
    %200 = arith.addf %198, %199 : vector<1x16xf32>
    %201 = vector.extract_strided_slice %193 {offsets = [0, 64], sizes = [1, 16], strides = [1, 1]} : vector<1x160xf32> to vector<1x16xf32>
    %202 = arith.addf %200, %201 : vector<1x16xf32>
    %203 = vector.extract_strided_slice %193 {offsets = [0, 80], sizes = [1, 16], strides = [1, 1]} : vector<1x160xf32> to vector<1x16xf32>
    %204 = arith.addf %202, %203 : vector<1x16xf32>
    %205 = vector.extract_strided_slice %193 {offsets = [0, 96], sizes = [1, 16], strides = [1, 1]} : vector<1x160xf32> to vector<1x16xf32>
    %206 = arith.addf %204, %205 : vector<1x16xf32>
    %207 = vector.extract_strided_slice %193 {offsets = [0, 112], sizes = [1, 16], strides = [1, 1]} : vector<1x160xf32> to vector<1x16xf32>
    %208 = arith.addf %206, %207 : vector<1x16xf32>
    %209 = vector.extract_strided_slice %193 {offsets = [0, 128], sizes = [1, 16], strides = [1, 1]} : vector<1x160xf32> to vector<1x16xf32>
    %210 = arith.addf %208, %209 : vector<1x16xf32>
    %211 = vector.extract_strided_slice %193 {offsets = [0, 144], sizes = [1, 16], strides = [1, 1]} : vector<1x160xf32> to vector<1x16xf32>
    %212 = arith.addf %210, %211 : vector<1x16xf32>
    %cst_27 = arith.constant 5.000000e-03 : f32
    %213 = vector.broadcast %cst_27 : f32 to vector<1x16xf32>
    %214 = arith.mulf %212, %213 : vector<1x16xf32>
    %215 = tpu.concatenate %214, %214, %214, %214, %214, %214, %214, %214, %214, %214 in 1 : vector<1x16xf32>, vector<1x16xf32>, vector<1x16xf32>, vector<1x16xf32>, vector<1x16xf32>, vector<1x16xf32>, vector<1x16xf32>, vector<1x16xf32>, vector<1x16xf32>, vector<1x16xf32> -> vector<1x160xf32>
    %216 = vector.shape_cast %215 : vector<1x160xf32> to vector<1x1x160xf32>
    %217 = vector.broadcast %216 : vector<1x1x160xf32> to vector<2x10x160xf32>
    %218 = arith.subf %190, %217 : vector<2x10x160xf32>
    %219 = arith.mulf %218, %218 : vector<2x10x160xf32>
    %cst_28 = arith.constant dense<0.000000e+00> : vector<10x160xf32>
    %220 = vector.multi_reduction <add>, %219, %cst_28 [0] : vector<2x10x160xf32> to vector<10x160xf32>
    %cst_29 = arith.constant dense<0.000000e+00> : vector<160xf32>
    %221 = vector.multi_reduction <add>, %220, %cst_29 [0] : vector<10x160xf32> to vector<160xf32>
    %222 = vector.shape_cast %221 : vector<160xf32> to vector<1x160xf32>
    %223 = vector.extract_strided_slice %222 {offsets = [0, 0], sizes = [1, 16], strides = [1, 1]} : vector<1x160xf32> to vector<1x16xf32>
    %224 = vector.extract_strided_slice %222 {offsets = [0, 16], sizes = [1, 16], strides = [1, 1]} : vector<1x160xf32> to vector<1x16xf32>
    %225 = arith.addf %223, %224 : vector<1x16xf32>
    %226 = vector.extract_strided_slice %222 {offsets = [0, 32], sizes = [1, 16], strides = [1, 1]} : vector<1x160xf32> to vector<1x16xf32>
    %227 = arith.addf %225, %226 : vector<1x16xf32>
    %228 = vector.extract_strided_slice %222 {offsets = [0, 48], sizes = [1, 16], strides = [1, 1]} : vector<1x160xf32> to vector<1x16xf32>
    %229 = arith.addf %227, %228 : vector<1x16xf32>
    %230 = vector.extract_strided_slice %222 {offsets = [0, 64], sizes = [1, 16], strides = [1, 1]} : vector<1x160xf32> to vector<1x16xf32>
    %231 = arith.addf %229, %230 : vector<1x16xf32>
    %232 = vector.extract_strided_slice %222 {offsets = [0, 80], sizes = [1, 16], strides = [1, 1]} : vector<1x160xf32> to vector<1x16xf32>
    %233 = arith.addf %231, %232 : vector<1x16xf32>
    %234 = vector.extract_strided_slice %222 {offsets = [0, 96], sizes = [1, 16], strides = [1, 1]} : vector<1x160xf32> to vector<1x16xf32>
    %235 = arith.addf %233, %234 : vector<1x16xf32>
    %236 = vector.extract_strided_slice %222 {offsets = [0, 112], sizes = [1, 16], strides = [1, 1]} : vector<1x160xf32> to vector<1x16xf32>
    %237 = arith.addf %235, %236 : vector<1x16xf32>
    %238 = vector.extract_strided_slice %222 {offsets = [0, 128], sizes = [1, 16], strides = [1, 1]} : vector<1x160xf32> to vector<1x16xf32>
    %239 = arith.addf %237, %238 : vector<1x16xf32>
    %240 = vector.extract_strided_slice %222 {offsets = [0, 144], sizes = [1, 16], strides = [1, 1]} : vector<1x160xf32> to vector<1x16xf32>
    %241 = arith.addf %239, %240 : vector<1x16xf32>
    %cst_30 = arith.constant 5.000000e-03 : f32
    %242 = vector.broadcast %cst_30 : f32 to vector<1x16xf32>
    %243 = arith.mulf %241, %242 : vector<1x16xf32>
    %cst_31 = arith.constant 9.99999974E-6 : f32
    %244 = vector.broadcast %cst_31 : f32 to vector<1x16xf32>
    %245 = arith.addf %243, %244 : vector<1x16xf32>
    %246 = math.rsqrt %245 : vector<1x16xf32>
    %247 = tpu.concatenate %246, %246, %246, %246, %246, %246, %246, %246, %246, %246 in 1 : vector<1x16xf32>, vector<1x16xf32>, vector<1x16xf32>, vector<1x16xf32>, vector<1x16xf32>, vector<1x16xf32>, vector<1x16xf32>, vector<1x16xf32>, vector<1x16xf32>, vector<1x16xf32> -> vector<1x160xf32>
    %248 = arith.mulf %247, %176 : vector<1x160xf32>
    %249 = vector.shape_cast %248 : vector<1x160xf32> to vector<1x1x160xf32>
    %250 = vector.broadcast %249 : vector<1x1x160xf32> to vector<2x10x160xf32>
    %251 = arith.mulf %218, %250 : vector<2x10x160xf32>
    %252 = vector.shape_cast %177 : vector<1x160xf32> to vector<1x1x160xf32>
    %253 = vector.broadcast %252 : vector<1x1x160xf32> to vector<2x10x160xf32>
    %254 = arith.addf %251, %253 : vector<2x10x160xf32>
    %cst_32 = arith.constant 0.000000e+00 : f32
    %255 = vector.broadcast %cst_32 : f32 to vector<2x10x160xf32>
    %256 = arith.maximumf %254, %255 : vector<2x10x160xf32>
    %c1392 = arith.constant 1392 : index
    %c0_33 = arith.constant 0 : index
    %257 = vector.load %arg2[%c1392, %c0_33] : memref<1552x168xbf16, #tpu.memory_space<vmem>>, vector<10x18xbf16>
    %c1408 = arith.constant 1408 : index
    %c0_34 = arith.constant 0 : index
    %258 = vector.load %arg2[%c1408, %c0_34] : memref<1552x168xbf16, #tpu.memory_space<vmem>>, vector<144x80xbf16>
    %259 = vector.extract_strided_slice %256 {offsets = [0, 0, 0], sizes = [2, 9, 160], strides = [1, 1, 1]} : vector<2x10x160xf32> to vector<2x9x160xf32>
    %260 = vector.extract_strided_slice %256 {offsets = [0, 1, 0], sizes = [2, 9, 160], strides = [1, 1, 1]} : vector<2x10x160xf32> to vector<2x9x160xf32>
    %261 = arith.maximumf %259, %260 : vector<2x9x160xf32>
    %262 = vector.extract_strided_slice %261 {offsets = [0, 0, 0], sizes = [2, 9, 144], strides = [1, 1, 1]} : vector<2x9x160xf32> to vector<2x9x144xf32>
    %263 = vector.extract_strided_slice %261 {offsets = [0, 0, 16], sizes = [2, 9, 144], strides = [1, 1, 1]} : vector<2x9x160xf32> to vector<2x9x144xf32>
    %264 = arith.maximumf %262, %263 : vector<2x9x144xf32>
    %265 = vector.shape_cast %264 : vector<2x9x144xf32> to vector<18x144xf32>
    %266 = arith.truncf %265 : vector<18x144xf32> to vector<18x144xbf16>
    %cst_35 = arith.constant dense<0.000000e+00> : vector<10x144xf32>
    %267 = tpu.matmul %257, %266, %cst_35 {dimension_numbers = #tpu.dot_dimension_numbers<[1], [0], [0], [1], [0, 0, 1, 1], [], []>} : vector<10x18xbf16>, vector<18x144xbf16>, vector<10x144xf32> -> vector<10x144xf32>
    %268 = arith.truncf %267 : vector<10x144xf32> to vector<10x144xbf16>
    %cst_36 = arith.constant dense<0.000000e+00> : vector<10x80xf32>
    %269 = tpu.matmul %268, %258, %cst_36 {dimension_numbers = #tpu.dot_dimension_numbers<[1], [0], [0], [1], [0, 0, 1, 1], [], []>} : vector<10x144xbf16>, vector<144x80xbf16>, vector<10x80xf32> -> vector<10x80xf32>
    %270 = vector.shape_cast %269 : vector<10x80xf32> to vector<2x5x80xf32>
    %c584 = arith.constant 584 : index
    %c0_37 = arith.constant 0 : index
    %271 = vector.load %arg2[%c584, %c0_37] : memref<1552x168xbf16, #tpu.memory_space<vmem>>, vector<400x120xbf16>
    %c6 = arith.constant 6 : index
    %c0_38 = arith.constant 0 : index
    %272 = vector.load %arg3[%c6, %c0_38] : memref<11x168xf32, #tpu.memory_space<vmem>>, vector<1x120xf32>
    %c7 = arith.constant 7 : index
    %c0_39 = arith.constant 0 : index
    %273 = vector.load %arg3[%c7, %c0_39] : memref<11x168xf32, #tpu.memory_space<vmem>>, vector<1x120xf32>
    %c8 = arith.constant 8 : index
    %c0_40 = arith.constant 0 : index
    %274 = vector.load %arg3[%c8, %c0_40] : memref<11x168xf32, #tpu.memory_space<vmem>>, vector<1x120xf32>
    %275 = arith.truncf %270 : vector<2x5x80xf32> to vector<2x5x80xbf16>
    %276 = vector.extract_strided_slice %275 {offsets = [0, 0, 0], sizes = [2, 1, 80], strides = [1, 1, 1]} : vector<2x5x80xbf16> to vector<2x1x80xbf16>
    %277 = vector.extract_strided_slice %275 {offsets = [0, 1, 0], sizes = [2, 1, 80], strides = [1, 1, 1]} : vector<2x5x80xbf16> to vector<2x1x80xbf16>
    %278 = vector.extract_strided_slice %275 {offsets = [0, 2, 0], sizes = [2, 1, 80], strides = [1, 1, 1]} : vector<2x5x80xbf16> to vector<2x1x80xbf16>
    %279 = vector.extract_strided_slice %275 {offsets = [0, 3, 0], sizes = [2, 1, 80], strides = [1, 1, 1]} : vector<2x5x80xbf16> to vector<2x1x80xbf16>
    %280 = vector.extract_strided_slice %275 {offsets = [0, 4, 0], sizes = [2, 1, 80], strides = [1, 1, 1]} : vector<2x5x80xbf16> to vector<2x1x80xbf16>
    %281 = tpu.concatenate %276, %277, %278, %279, %280 in 2 : vector<2x1x80xbf16>, vector<2x1x80xbf16>, vector<2x1x80xbf16>, vector<2x1x80xbf16>, vector<2x1x80xbf16> -> vector<2x1x400xbf16>
    %282 = vector.shape_cast %281 : vector<2x1x400xbf16> to vector<2x400xbf16>
    %cst_41 = arith.constant dense<0.000000e+00> : vector<2x120xf32>
    %283 = tpu.matmul %282, %271, %cst_41 {dimension_numbers = #tpu.dot_dimension_numbers<[1], [0], [0], [1], [0, 0, 1, 1], [], []>} : vector<2x400xbf16>, vector<400x120xbf16>, vector<2x120xf32> -> vector<2x120xf32>
    %284 = vector.shape_cast %283 : vector<2x120xf32> to vector<2x1x120xf32>
    %285 = vector.shape_cast %272 : vector<1x120xf32> to vector<1x1x120xf32>
    %286 = vector.broadcast %285 : vector<1x1x120xf32> to vector<2x1x120xf32>
    %287 = arith.addf %284, %286 : vector<2x1x120xf32>
    %cst_42 = arith.constant dense<0.000000e+00> : vector<1x120xf32>
    %288 = vector.multi_reduction <add>, %287, %cst_42 [0] : vector<2x1x120xf32> to vector<1x120xf32>
    %cst_43 = arith.constant dense<0.000000e+00> : vector<120xf32>
    %289 = vector.multi_reduction <add>, %288, %cst_43 [0] : vector<1x120xf32> to vector<120xf32>
    %290 = vector.shape_cast %289 : vector<120xf32> to vector<1x120xf32>
    %cst_44 = arith.constant 5.000000e-01 : f32
    %291 = vector.broadcast %cst_44 : f32 to vector<1x120xf32>
    %292 = arith.mulf %290, %291 : vector<1x120xf32>
    %293 = vector.shape_cast %292 : vector<1x120xf32> to vector<1x1x120xf32>
    %294 = vector.broadcast %293 : vector<1x1x120xf32> to vector<2x1x120xf32>
    %295 = arith.subf %287, %294 : vector<2x1x120xf32>
    %296 = arith.mulf %295, %295 : vector<2x1x120xf32>
    %cst_45 = arith.constant dense<0.000000e+00> : vector<1x120xf32>
    %297 = vector.multi_reduction <add>, %296, %cst_45 [0] : vector<2x1x120xf32> to vector<1x120xf32>
    %cst_46 = arith.constant dense<0.000000e+00> : vector<120xf32>
    %298 = vector.multi_reduction <add>, %297, %cst_46 [0] : vector<1x120xf32> to vector<120xf32>
    %299 = vector.shape_cast %298 : vector<120xf32> to vector<1x120xf32>
    %cst_47 = arith.constant 5.000000e-01 : f32
    %300 = vector.broadcast %cst_47 : f32 to vector<1x120xf32>
    %301 = arith.mulf %299, %300 : vector<1x120xf32>
    %cst_48 = arith.constant 9.99999974E-6 : f32
    %302 = vector.broadcast %cst_48 : f32 to vector<1x120xf32>
    %303 = arith.addf %301, %302 : vector<1x120xf32>
    %304 = math.rsqrt %303 : vector<1x120xf32>
    %305 = arith.mulf %304, %273 : vector<1x120xf32>
    %306 = vector.shape_cast %305 : vector<1x120xf32> to vector<1x1x120xf32>
    %307 = vector.broadcast %306 : vector<1x1x120xf32> to vector<2x1x120xf32>
    %308 = arith.mulf %295, %307 : vector<2x1x120xf32>
    %309 = vector.shape_cast %274 : vector<1x120xf32> to vector<1x1x120xf32>
    %310 = vector.broadcast %309 : vector<1x1x120xf32> to vector<2x1x120xf32>
    %311 = arith.addf %308, %310 : vector<2x1x120xf32>
    %cst_49 = arith.constant 0.000000e+00 : f32
    %312 = vector.broadcast %cst_49 : f32 to vector<2x1x120xf32>
    %313 = arith.maximumf %311, %312 : vector<2x1x120xf32>
    %314 = vector.shape_cast %313 : vector<2x1x120xf32> to vector<2x120xf32>
    %315 = arith.truncf %314 : vector<2x120xf32> to vector<2x120xbf16>
    %c984 = arith.constant 984 : index
    %c0_50 = arith.constant 0 : index
    %316 = vector.load %arg2[%c984, %c0_50] : memref<1552x168xbf16, #tpu.memory_space<vmem>>, vector<120x84xbf16>
    %cst_51 = arith.constant dense<0.000000e+00> : vector<2x84xf32>
    %317 = tpu.matmul %315, %316, %cst_51 {dimension_numbers = #tpu.dot_dimension_numbers<[1], [0], [0], [1], [0, 0, 1, 1], [], []>} : vector<2x120xbf16>, vector<120x84xbf16>, vector<2x84xf32> -> vector<2x84xf32>
    %c9 = arith.constant 9 : index
    %c0_52 = arith.constant 0 : index
    %318 = vector.load %arg3[%c9, %c0_52] : memref<11x168xf32, #tpu.memory_space<vmem>>, vector<1x84xf32>
    %319 = vector.broadcast %318 : vector<1x84xf32> to vector<2x84xf32>
    %320 = arith.addf %317, %319 : vector<2x84xf32>
    %cst_53 = arith.constant 0.000000e+00 : f32
    %321 = vector.broadcast %cst_53 : f32 to vector<2x84xf32>
    %322 = arith.maximumf %320, %321 : vector<2x84xf32>
    %323 = arith.truncf %322 : vector<2x84xf32> to vector<2x84xbf16>
    %c1104 = arith.constant 1104 : index
    %c0_54 = arith.constant 0 : index
    %324 = vector.load %arg2[%c1104, %c0_54] : memref<1552x168xbf16, #tpu.memory_space<vmem>>, vector<84x10xbf16>
    %cst_55 = arith.constant dense<0.000000e+00> : vector<2x10xf32>
    %325 = tpu.matmul %323, %324, %cst_55 {dimension_numbers = #tpu.dot_dimension_numbers<[1], [0], [0], [1], [0, 0, 1, 1], [], []>} : vector<2x84xbf16>, vector<84x10xbf16>, vector<2x10xf32> -> vector<2x10xf32>
    %c10 = arith.constant 10 : index
    %c0_56 = arith.constant 0 : index
    %326 = vector.load %arg3[%c10, %c0_56] : memref<11x168xf32, #tpu.memory_space<vmem>>, vector<1x10xf32>
    %327 = vector.broadcast %326 : vector<1x10xf32> to vector<2x10xf32>
    %328 = arith.addf %325, %327 : vector<2x10xf32>
    %cst_57 = arith.constant dense<0xFF800000> : vector<2xf32>
    %329 = vector.multi_reduction <maximumf>, %328, %cst_57 [1] : vector<2x10xf32> to vector<2xf32>
    %330 = vector.shape_cast %329 : vector<2xf32> to vector<2x1xf32>
    %331 = vector.broadcast %330 : vector<2x1xf32> to vector<2x10xf32>
    %332 = arith.subf %328, %331 : vector<2x10xf32>
    %333 = math.exp %332 : vector<2x10xf32>
    %cst_58 = arith.constant dense<0.000000e+00> : vector<2xf32>
    %334 = vector.multi_reduction <add>, %333, %cst_58 [1] : vector<2x10xf32> to vector<2xf32>
    %335 = vector.shape_cast %334 : vector<2xf32> to vector<2x1xf32>
    %336 = math.log %335 : vector<2x1xf32>
    %337 = vector.broadcast %336 : vector<2x1xf32> to vector<2x10xf32>
    %338 = arith.subf %332, %337 : vector<2x10xf32>
    %c0_59 = arith.constant 0 : index
    %c0_60 = arith.constant 0 : index
    %339 = vector.load %arg4[%c0_59, %c0_60] : memref<2x10xf32, #tpu.memory_space<vmem>>, vector<2x10xf32>
    tpu.vector_store %arg4[%c0_59, %c0_60], %338 {strides = array<i32>} : memref<2x10xf32, #tpu.memory_space<vmem>>, vector<2x10xf32>,
    return
  }
  func.func @transform_0(%arg0: i32) -> (i32, i32, i32) {
    %c0_i32 = arith.constant 0 : i32
    %c0_i32_0 = arith.constant 0 : i32
    %c0_i32_1 = arith.constant 0 : i32
    %c0_i32_2 = arith.constant 0 : i32
    return %c0_i32, %c0_i32_0, %c0_i32_1 : i32, i32, i32
  }
  func.func @transform_1(%arg0: i32) -> (i32, i32) {
    %c0_i32 = arith.constant 0 : i32
    %c0_i32_0 = arith.constant 0 : i32
    %c0_i32_1 = arith.constant 0 : i32
    return %c0_i32, %c0_i32_0 : i32, i32
  }
  func.func @transform_2(%arg0: i32) -> (i32, i32) {
    %c0_i32 = arith.constant 0 : i32
    %c0_i32_0 = arith.constant 0 : i32
    %c0_i32_1 = arith.constant 0 : i32
    return %c0_i32, %c0_i32_0 : i32, i32
  }
  func.func @transform_3(%arg0: i32) -> (i32, i32) {
    %c0_i32 = arith.constant 0 : i32
    %c0_i32_0 = arith.constant 0 : i32
    %c0_i32_1 = arith.constant 0 : i32
    return %c0_i32, %c0_i32_0 : i32, i32
  }
}

</mosaic_0001>

<bundles_post_ra>
// kernel: tpu_custom_call.1
= control target key start
LH: loop header
LB: loop body
LE: loop exit
PB: predicated region body
PF: predicated region fallthrough
CT: control target
= control target key end

     0   :  { %vm96_vm0 = vcmask 1046528   ;;  %vm111_vm1 = vsmask.f32 6400  ;;  %vm53_vm2 = vsmask.f32 7424  ;;  %s7578_s6 = smov 64   ;;  %s7574_s0 = inlined_call_operand.vmem [shape: f32[2,32,32], index: 0, kind: input, shape index: {}]   ;;  %s7575_s1 = inlined_call_operand.vmem [shape: bf16[1552,168], index: 1, kind: input, shape index: {}]   ;;  %s7576_s2 = inlined_call_operand.vmem [shape: f32[11,168], index: 2, kind: input, shape index: {}]   ;;  %s7577_s3 = inlined_call_operand.hbm [shape: f32[2,10], index: 3, kind: output, shape index: {}]  }
   0x1   :  { %v16_v0 = vld [vmem:[%s7574_s0] sm:$0xff]  ;;  %v17_v1 = vld [vmem:[%s7574_s0 + $0x8] sm:$0xff]  ;;  %v18_v2 = vld [vmem:[%s7574_s0 + $0x10] sm:$0xff]  ;;  %s5782_s11 = smov 96   ;;  %s5783_s12 = smov 32  }
   0x2   :  { %v19_v3 = vld [vmem:[%s7574_s0 + $0x18] sm:$0xff]  ;;  %v5865_v4 = vpack.c.bf16 %v17_v1, %v16_v0  ;;  %v20_v6 = vld [vmem:[%s7574_s0 + $0x20] sm:$0xff]  ;;  %v21_v7 = vld [vmem:[%s7574_s0 + $0x28] sm:$0xff] }
   0x3   :  { %v5867_v5 = vpack.c.bf16 %v19_v3, %v18_v2  ;;  %v22_v8 = vld [vmem:[%s7574_s0 + $0x30] sm:$0xff]  ;;  %v23_v12 = vld [vmem:[%s7574_s0 + $0x38] sm:$0xff]  ;;  %v5884_v13 = vpack.c.bf16 %v21_v7, %v20_v6  ;;  %v5580_v27 = vld [vmem:[%s7575_s1 + $0x64] ss:$8 sps:$4 sm:$0xff]  }
   0x4   :  { %v97_v9 = vrot.slane %v5865_v4, 1  ;;  %v55_v10 = vshrl.u32 %v5865_v4, 16  ;;  %v57_v11 = vshll.u32 %v5865_v4, 16  ;;  %v5889_v17 = vpack.c.bf16 %v23_v12, %v22_v8  ;;  %v5577_v18 = vld [vmem:[%s7575_s1 + $0x74] ss:$8 sps:$4 sm:$0xff]  }
   0x5   :  { %v98_v14 = vrot.slane %v5867_v5, 1  ;;  %v62_v15 = vshll.u32 %v5867_v5, 16  ;;  %v66_v16 = vshrl.u32 %v5867_v5, 16  ;;  %v5579_v22 = vld [vmem:[%s7575_s1 + $0x70] ss:$8 sps:$4 sm:$0xff]   ;;  %421 = vmatprep.subr.bf16.mxu0 %v5577_v18  ;;  %v72_v30 = vshll.u32 %v5884_v13, 16 }
   0x6   :  { %v112_v19 = vrot.slane %v55_v10, 1  ;;  %v113_v20 = vrot.slane %v57_v11, 2  ;;  %v59_v21 = vrot.slane %v57_v11, 1  ;;  %v77_v31 = vshll.u32 %v5889_v17, 16  ;;  %422 = vmatpush1.bf16.msra.mxu0 %v5579_v22  ;;  %v5582_v34 = vld [vmem:[%s7575_s1 + $0x60] ss:$8 sps:$4 sm:$0xff]  }
   0x7   :  { %v99_v23 = vsel %vm96_vm0, %v97_v9, %v98_v14  ;;  %v115_v24 = vrot.slane %v66_v16, 1  ;;  %v116_v25 = vrot.slane %v62_v15, 2  ;;  %v64_v26 = vrot.slane %v62_v15, 1  ;;  %423 = vmatprep.subr.bf16.mxu0 %v5580_v27  ;;  %v5583_v35 = vld [vmem:[%s7575_s1 + $0x54] ss:$8 sps:$4 sm:$0xff]  }
   0x8   :  { %103 = vrot.lane.b32.xlu0 %v99_v23, %s7578_s6  ;;  %v114_v28 = vor.u32 %v113_v20, %v112_v19  ;;  %v60_v29 = vor.u32 %v59_v21, %v55_v10  ;;  %v70_v33 = vshrl.u32 %v5884_v13, 16  ;;  %v74_v37 = vrot.slane %v72_v30, 1  ;;  %v5585_v43 = vld [vmem:[%s7575_s1 + $0x50] ss:$8 sps:$4 sm:$0xff]   ;;  %v5586_v48 = vld [vmem:[%s7575_s1 + $0x44] ss:$8 sps:$4 sm:$0xff]  }
   0x9   :  { %v117_v32 = vor.u32 %v116_v25, %v115_v24  ;;  %v81_v38 = vshrl.u32 %v5889_v17, 16  ;;  %v68_v40 = vor.u32 %v66_v16, %v64_v26  ;;  %v79_v41 = vrot.slane %v77_v31, 1  ;;  %v5588_v54 = vld [vmem:[%s7575_s1 + $0x40] ss:$8 sps:$4 sm:$0xff]   ;;  %v5589_v55 = vld [vmem:[%s7575_s1 + $0x34] ss:$8 sps:$4 sm:$0xff]  }
   0xa   :  { %v65_v36 = vsel %vm53_vm2, %v60_v29, %v64_v26  ;;  %v119_v42 = vrot.slane %v70_v33, 1  ;;  %v75_v44 = vor.u32 %v74_v37, %v70_v33  ;;  %v120_v45 = vrot.slane %v72_v30, 2  ;;  %424 = vmatpush1.bf16.msra.mxu0 %v5582_v34  ;;  %v5591_v56 = vld [vmem:[%s7575_s1 + $0x30] ss:$8 sps:$4 sm:$0xff]   ;;  %v5592_v59 = vld [vmem:[%s7575_s1 + $0x24] ss:$8 sps:$4 sm:$0xff]  }
   0xb   :  { %v118_v39 = vsel %vm111_vm1, %v114_v28, %v117_v32  ;;  %v122_v46 = vrot.slane %v81_v38, 1  ;;  %v123_v47 = vrot.slane %v77_v31, 2  ;;  %425 = vmatprep.subr.bf16.mxu0 %v5583_v35  ;;  %v100_v49 = vrot.slane %v5884_v13, 1  ;;  %v5594_v60 = vld [vmem:[%s7575_s1 + $0x20] ss:$8 sps:$4 sm:$0xff]  }
   0xc   :  { %126 = vrot.lane.b32.xlu1 %v118_v39, %s5782_s11  ;;  %84 = vrot.lane.b32.xlu0 %v65_v36, %s5783_s12  ;;  %v80_v50 = vsel %vm53_vm2, %v75_v44, %v79_v41  ;;  %v101_v51 = vrot.slane %v5889_v17, 1  ;;  %v121_v52 = vor.u32 %v120_v45, %v119_v42  ;;  %v83_v61 = vor.u32 %v81_v38, %v79_v41  ;;  %v5595_v62 = vld [vmem:[%s7575_s1 + $0x14] ss:$8 sps:$4 sm:$0xff]   ;;  %v5597_v63 = vld [vmem:[%s7575_s1 + $0x10] ss:$8 sps:$4 sm:$0xff]  }
   0xd   :  { %v124_v53 = vor.u32 %v123_v47, %v122_v46  ;;  %v5598_v0 = vld [vmem:[%s7575_s1 + $0x4] ss:$8 sps:$4 sm:$0xff]   ;;  %v5600_v1 = vld [vmem:[%s7575_s1] ss:$8 sps:$4 sm:$0xff]   ;;  %v5601_v2 = vld [vmem:[%s7575_s1 + $0x94] ss:$8 sps:$4 sm:$0xff]  }
   0xe   :  { %426 = vmatpush1.bf16.msra.mxu0 %v5585_v43  ;;  %v102_v57 = vsel %vm96_vm0, %v100_v49, %v101_v51  ;;  %v5603_v3 = vld [vmem:[%s7575_s1 + $0x90] ss:$8 sps:$4 sm:$0xff]   ;;  %v5604_v6 = vld [vmem:[%s7575_s1 + $0x84] ss:$8 sps:$4 sm:$0xff]   ;;  %v5606_v7 = vld [vmem:[%s7575_s1 + $0x80] ss:$8 sps:$4 sm:$0xff]  }
   0xf   :  { %427 = vmatprep.subr.bf16.mxu0 %v5586_v48  ;;  %v125_v58 = vsel %vm111_vm1, %v121_v52, %v124_v53 }
  0x10   :  { %86 = vrot.lane.b32.xlu1 %v68_v40, %s5783_s12  ;;  %105 = vrot.lane.b32.xlu0 %v98_v14, %s7578_s6 }
  0x12   :  { %428 = vmatpush1.bf16.msra.mxu0 %v5588_v54 }
  0x13   :  { %429 = vmatprep.subr.bf16.mxu0 %v5589_v55 }
  0x14   :  { %88 = vrot.lane.b32.xlu1 %v80_v50, %s5783_s12  ;;  %128 = vrot.lane.b32.xlu0 %v117_v32, %s5782_s11 }
  0x16   :  { %430 = vmatpush1.bf16.msra.mxu0 %v5591_v56 }
  0x17   :  { %431 = vmatprep.subr.bf16.mxu0 %v5592_v59 }
  0x18   :  { %107 = vrot.lane.b32.xlu1 %v102_v57, %s7578_s6  ;;  %130 = vrot.lane.b32.xlu0 %v125_v58, %s5782_s11 }
  0x1a   :  { %432 = vmatpush1.bf16.msra.mxu0 %v5594_v60 }
  0x1b   :  { %433 = vmatprep.subr.bf16.mxu0 %v5595_v62 }
  0x1c   :  { %90 = vrot.lane.b32.xlu1 %v83_v61, %s5783_s12  ;;  %109 = vrot.lane.b32.xlu0 %v101_v51, %s7578_s6 }
  0x1e   :  { %434 = vmatpush1.bf16.msra.mxu0 %v5597_v63 }
  0x1f   :  { %435 = vmatprep.subr.bf16.mxu0 %v5598_v0 }
  0x20   :  { %132 = vrot.lane.b32.xlu1 %v124_v53, %s5782_s11 }
  0x22   :  { %436 = vmatpush1.bf16.msra.mxu0 %v5600_v1 }
  0x23   :  { %449 = vmatprep.subr.bf16.mxu0 %v5601_v2 }
  0x26   :  { %450 = vmatpush2.bf16.msra.mxu0 %v5603_v3 }
  0x27   :  { %451 = vmatprep.subr.bf16.mxu0 %v5604_v6 }
  0x2a   :  { %452 = vmatpush2.bf16.msra.mxu0 %v5606_v7 }
  0x2b   :  { %8 = vsyncpa [#allocation3], 0  ;;  %v5784_v8 = vmov 1983009808   ;;  %v177_v10 = vlaneseq  ;;  %v136_v12 = vrot.slane %v5867_v5, 2  ;;  %v135_v14 = vrot.slane %v5865_v4, 2 }
  0x2c   :  { %v175_v9 = vunpack.c.l.s4 %v5784_v8  ;;  %vm7600_vm3 = vcmask 261120   ;;  %vm134_vm4 = vcmask 1045504   ;;  %vm7599_vm5 = vcmask 523264   ;;  %s5785_s20 = smov 116   ;;  %s5786_s21 = smov 122  }
  0x2d   :  { %v5977_v16 = vshrl.u32 %v177_v10, 7  ;;  %vm159_vm6 = vcmask 785408   ;;  %v137_v21 = vsel %vm134_vm4, %v135_v14, %v136_v12  ;;  %v138_v31 = vrot.slane %v5884_v13, 2  ;;  %s5787_s22 = smov 104   ;;  %s5788_s23 = smov 110  }
  0x2e   :  { %v176_v15 = vunpack.c.0.s8 %v175_v9  ;;  %v139_v32 = vrot.slane %v5889_v17, 2  ;;  %vm7605_vm7 = vcmask 1043456   ;;  %vm604_vm8 = vcmask 326656   ;;  %s5789_s24 = smov 92   ;;  %s5790_s25 = smov 98  }
  0x2f   :  { %vm620_vm9 = vcmask 322560   ;;  %s5791_s26 = smov 80   ;;  %s5792_s27 = smov 86   ;;  %vm733_vm10 = vcmask 15360   ;;  %vm808_vm11 = vcmask 48128   ;;  %vm810_vm12 = vcmask 97280  }
  0x30   :  { %v5984_v23 = vsub.s32 %v176_v15, %v5977_v16  ;;  %s5793_s28 = smov 68   ;;  %s5794_s29 = smov 74   ;;  %vm812_vm13 = vcmask 146432   ;;  %vm814_vm14 = vcmask 195584   ;;  %vm816_vm15 = vcmask 244736  }
  0x31   :  { %s5795_s30 = smov 56   ;;  %s5796_s4 = smov 62   ;;  %vm7602_vm0 = vcmask 293888   ;;  %vm7601_vm1 = vcmask 343040   ;;  %vm7603_vm2 = vcmask 392192  }
  0x32   :  { %s5797_s0 = smov 44   ;;  %s5798_s5 = smov 50  }
  0x33   :  { %s5799_s7 = smov 38   ;;  %s5800_s8 = smov 20  }
  0x34   :  { %s5801_s9 = smov 26   ;;  %s5802_s10 = smov 8  }
  0x35   :  { %s7590_s13 = smov 14   ;;  %s7588_s14 = smov 2  }
  0x36   :  { %s7587_s15 = smov 118   ;;  %s7585_s16 = smov 124  }
  0x37   :  { %s7584_s17 = smov 106   ;;  %s7582_s18 = smov 112  }
  0x38   :  { %s7581_s19 = smov 94   ;;  %s7580_s6 = smov 100  }
  0x7a   :  { %v104_v11 = vpop.permute.xlu0 %103 }
  0x7e   :  { %v127_v18 = vpop.permute.xlu1 %126  ;;  %v85_v19 = vpop.permute.xlu0 %84 }
  0x7f   :  { %v143_v20 = vsel %vm7600_vm3, %v5865_v4, %v85_v19 }
  0x80   :  { %v152_v22 = vsel %vm7599_vm5, %v143_v20, %v104_v11 }
  0x81   :  { %v161_v24 = vsel %vm159_vm6, %v152_v22, %v127_v18 }
  0x82   :  { %v87_v25 = vpop.permute.xlu1 %86  ;;  %v106_v26 = vpop.permute.xlu0 %105  ;;  %v172_v27 = vcombine.low %v161_v24, %v137_v21  ;;  %v173_v28 = vcombine.high %v161_v24, %v137_v21 }
  0x83   :  { %v145_v29 = vsel %vm7600_vm3, %v5867_v5, %v87_v25  ;;  %v140_v5 = vsel %vm134_vm4, %v138_v31, %v139_v32  ;;  %vm7604_vm4 = vcmask 441344  }
  0x84   :  { %v180_v30 = vrot.slane %v172_v27, %v5984_v23  ;;  %v187_v4 = vrot.slane %v173_v28, %v5984_v23  ;;  %v154_v33 = vsel %vm7599_vm5, %v145_v29, %v106_v26 }
  0x86   :  { %v89_v34 = vpop.permute.xlu1 %88  ;;  %v129_v35 = vpop.permute.xlu0 %128  ;;  %v188_v36 = vcombine.high %v180_v30, %v180_v30  ;;  %v189_v37 = vcombine.high %v187_v4, %v187_v4 }
  0x87   :  { %v163_v38 = vsel %vm159_vm6, %v154_v33, %v129_v35  ;;  %v147_v42 = vsel %vm7600_vm3, %v5884_v13, %v89_v34  ;;  %v6025_v33 = vsub.s32 1, %v5977_v16  ;;  %v44_v35 = vld [vmem:[%s7576_s2] ss:$8 sm:$0x3] }
  0x88   :  { %v190_v39 = vcombine.low %v163_v38, %v136_v12  ;;  %v242_v40 = vcombine.low %v180_v30, %v188_v36  ;;  %v243_v41 = vcombine.low %v187_v4, %v189_v37  ;;  %v191_v48 = vcombine.high %v163_v38, %v136_v12 }
  0x89   :  { %v542_v38 = vrot.slane %v44_v35, %v6025_v33 }
  0x8a   :  { %v198_v43 = vrot.slane %v190_v39, %v5984_v23  ;;  %v108_v44 = vpop.permute.xlu1 %107  ;;  %v131_v45 = vpop.permute.xlu0 %130  ;;  %v250_v46 = vrot.slane %v242_v40, %v5984_v23  ;;  %v257_v47 = vrot.slane %v243_v41, %v5984_v23  ;;  %v205_v57 = vrot.slane %v191_v48, %v5984_v23 }
  0x8b   :  { %v156_v49 = vsel %vm7599_vm5, %v147_v42, %v108_v44 }
  0x8c   :  { %v206_v50 = vcombine.high %v198_v43, %v198_v43  ;;  %v165_v51 = vsel %vm159_vm6, %v156_v49, %v131_v45  ;;  %v259_v52 = vcombine.high %v250_v46, %v257_v47  ;;  %v258_v53 = vcombine.low %v250_v46, %v257_v47 }
  0x8d   :  { %v207_v54 = vcombine.low %v165_v51, %v140_v5  ;;  %v208_v55 = vcombine.high %v165_v51, %v140_v5 }
  0x8e   :  { %v91_v56 = vpop.permute.xlu1 %90  ;;  %5302 = vmatprep.mubr.msk.bf16.mxu0 %vm7600_vm3, %v259_v52  ;;  %v110_v13 = vpop.permute.xlu0 %109  ;;  %v260_v58 = vcombine.low %v198_v43, %v206_v50 }
  0x8f   :  { %v215_v59 = vrot.slane %v207_v54, %v5984_v23  ;;  %v149_v60 = vsel %vm7600_vm3, %v5889_v17, %v91_v56  ;;  %454 = vmatmul.mubr.bf16.vlgmr.msra.gmra.mxu0 %v258_v53  ;;  %v222_v63 = vrot.slane %v208_v55, %v5984_v23 }
  0x90   :  { %v158_v61 = vsel %vm7599_vm5, %v149_v60, %v110_v13  ;;  %v268_v2 = vrot.slane %v260_v58, %v5984_v23  ;;  %vm826_vm5 = vcmask 490496  }
  0x91   :  { %v261_v62 = vcombine.low %v205_v57, %v215_v59  ;;  %v223_v0 = vcombine.high %v215_v59, %v215_v59  ;;  %v224_v11 = vcombine.high %v222_v63, %v222_v63 }
  0x92   :  { %v133_v1 = vpop.permute.xlu1 %132 }
  0x93   :  { %v275_v3 = vrot.slane %v261_v62, %v5984_v23  ;;  %v167_v6 = vsel %vm159_vm6, %v158_v61, %v133_v1  ;;  %v278_v17 = vcombine.low %v223_v0, %v222_v63 }
  0x94   :  { %v225_v7 = vcombine.low %v167_v6, %v139_v32  ;;  %v226_v8 = vcombine.high %v167_v6, %v139_v32  ;;  %v6022_v32 = vsub.s32 0, %v5977_v16 }
  0x95   :  { %v277_v9 = vcombine.high %v268_v2, %v275_v3  ;;  %v276_v10 = vcombine.low %v268_v2, %v275_v3  ;;  %v286_v19 = vrot.slane %v278_v17, %v5984_v23 }
  0x96   :  { %v233_v12 = vrot.slane %v225_v7, %v5984_v23  ;;  %v240_v14 = vrot.slane %v226_v8, %v5984_v23  ;;  %v538_v37 = vrot.slane %v44_v35, %v6022_v32 }
  0x97   :  { %5303 = vmatprep.mubr.msk.bf16.mxu0 %vm7600_vm3, %v277_v9 }
  0x98   :  { %v241_v15 = vcombine.high %v233_v12, %v233_v12  ;;  %v279_v18 = vcombine.low %v224_v11, %v233_v12  ;;  %464 = vmatmul.mubr.bf16.gmra.mxu0 %v276_v10  ;;  %v543_v45 = vcombine.low %v538_v37, %v542_v38  ;;  %v544_v46 = vcombine.high %v538_v37, %v542_v38 }
  0x9a   :  { %v293_v20 = vrot.slane %v279_v18, %v5984_v23  ;;  %v296_v21 = vcombine.low %v241_v15, %v240_v14 }
  0x9c   :  { %v303_v22 = vrot.slane %v296_v21, %v5984_v23  ;;  %v295_v24 = vcombine.high %v286_v19, %v293_v20  ;;  %v294_v25 = vcombine.low %v286_v19, %v293_v20 }
  0x9e   :  { %5304 = vmatprep.mubr.msk.bf16.mxu0 %vm7600_vm3, %v295_v24  ;;  %v304_v26 = vcombine.high %v303_v22, %v303_v22 }
  0xa0   :  { %474 = vmatmul.mubr.bf16.gmra.mxu0 %v294_v25 }
  0xa1   :  { %5305 = vmatprep.mubr.msk.bf16.mxu0 %vm7600_vm3, %v304_v26  ;;  %vm828_vm3 = vcmask 539648  }
  0xa8   :  { %484 = vmatmul.mubr.bf16.gmra.mxu0 %v303_v22 }
 0x14f   :  { %v455_v27 = vpop.f32.mrf.mxu0 }
 0x151   :  { %v457_v28 = vpop.f32.mrf.mxu0 }
 0x152   :  { %v506_v43 = vcombine.low %v455_v27, %v457_v28  ;;  %v507_v44 = vcombine.high %v455_v27, %v457_v28 }
 0x153   :  { %v459_v29 = vpop.f32.mrf.mxu0 }
 0x154   :  { %v6038_v13 = vadd.f32 %v543_v45, %v506_v43  ;;  %v6040_v57 = vadd.f32 %v544_v46, %v507_v44 }
 0x155   :  { %v461_v30 = vpop.f32.mrf.mxu0 }
 0x156   :  { %v508_v40 = vcombine.low %v459_v29, %v461_v30  ;;  %v509_v41 = vcombine.high %v459_v29, %v461_v30  ;;  %v575_v10 = vcombine.low %v6038_v13, %v6040_v57 }
 0x158   :  { %v465_v4 = vpop.f32.mrf.mxu0  ;;  %v6032_v50 = vadd.f32 %v543_v45, %v508_v40  ;;  %v6034_v51 = vadd.f32 %v544_v46, %v509_v41 }
 0x15a   :  { %v467_v31 = vpop.f32.mrf.mxu0  ;;  %v577_v0 = vcombine.low %v6032_v50, %v6034_v51  ;;  %v578_v38 = vcombine.high %v6032_v50, %v6034_v51 }
 0x15b   :  { %v510_v52 = vcombine.low %v465_v4, %v467_v31  ;;  %v511_v53 = vcombine.high %v465_v4, %v467_v31 }
 0x15c   :  { %v469_v34 = vpop.f32.mrf.mxu0 }
 0x15d   :  { %v6050_v1 = vadd.f32 %v543_v45, %v510_v52  ;;  %v6052_v2 = vadd.f32 %v544_v46, %v511_v53 }
 0x15e   :  { %v471_v36 = vpop.f32.mrf.mxu0 }
 0x15f   :  { %v513_v48 = vcombine.high %v469_v34, %v471_v36  ;;  %v512_v58 = vcombine.low %v469_v34, %v471_v36  ;;  %v579_v20 = vcombine.low %v6050_v1, %v6052_v2 }
 0x160   :  { %v475_v39 = vpop.f32.mrf.mxu0 }
 0x161   :  { %v6042_v60 = vadd.f32 %v543_v45, %v513_v48  ;;  %v6060_v11 = vadd.f32 %v543_v45, %v512_v58 }
 0x162   :  { %v477_v5 = vpop.f32.mrf.mxu0 }
 0x163   :  { %v514_v42 = vcombine.low %v475_v39, %v477_v5  ;;  %v515_v49 = vcombine.high %v475_v39, %v477_v5  ;;  %v617_v24 = vsel %vm7605_vm7, %v6060_v11, 0.0  ;;  %v576_v5 = vcombine.high %v6038_v13, %v6040_v57 }
 0x164   :  { %v479_v47 = vpop.f32.mrf.mxu0  ;;  %v581_v58 = vcombine.high %v6060_v11, %v6060_v11 }
 0x165   :  { %v6036_v55 = vadd.f32 %v544_v46, %v514_v42  ;;  %v6044_v61 = vadd.f32 %v543_v45, %v515_v49  ;;  %v580_v42 = vcombine.high %v6050_v1, %v6052_v2  ;;  %v605_v49 = vsel %vm604_vm8, %v576_v5, 0.0 }
 0x166   :  { %v481_v54 = vpop.f32.mrf.mxu0 }
 0x167   :  { %v516_v56 = vcombine.low %v479_v47, %v481_v54  ;;  %v517_v62 = vcombine.high %v479_v47, %v481_v54  ;;  %v582_v6 = vcombine.low %v6042_v60, %v6036_v55  ;;  %v583_v39 = vcombine.high %v6042_v60, %v6036_v55 }
 0x168   :  { %v485_v59 = vpop.f32.mrf.mxu0  ;;  %v613_v52 = vsel %vm604_vm8, %v580_v42, 0.0 }
 0x169   :  { %v6046_v63 = vadd.f32 %v544_v46, %v516_v56  ;;  %v6062_v12 = vadd.f32 %v543_v45, %v517_v62  ;;  %v603_v21 = vadd.f32 %v582_v6, %v575_v10  ;;  %v621_v6 = vsel %vm620_vm9, %v581_v58, 0.0 }
 0x16a   :  { %v487_v3 = vpop.f32.mrf.mxu0 }
 0x16b   :  { %v584_v7 = vcombine.low %v6044_v61, %v6046_v63  ;;  %v518_v8 = vcombine.low %v485_v59, %v487_v3  ;;  %v519_v9 = vcombine.high %v485_v59, %v487_v3  ;;  %v585_v36 = vcombine.high %v6044_v61, %v6046_v63 }
 0x16c   :  { %v489_v17 = vpop.f32.mrf.mxu0 }
 0x16d   :  { %v608_v14 = vadd.f32 %v584_v7, %v577_v0  ;;  %v6064_v15 = vadd.f32 %v544_v46, %v518_v8  ;;  %v6066_v18 = vadd.f32 %v543_v45, %v519_v9  ;;  %v610_v43 = vsel %vm604_vm8, %v585_v36, 0.0 }
 0x16e   :  { %v490_v19 = vpop.f32.mrf.mxu0  ;;  %v609_v45 = vsel %vm604_vm8, %v578_v38, 0.0  ;;  %v606_v46 = vsel %vm604_vm8, %v583_v39, 0.0 }
 0x16f   :  { %v586_v22 = vcombine.low %v6062_v12, %v6064_v15  ;;  %v618_v25 = vsel %vm7605_vm7, %v6066_v18, 0.0  ;;  %v624_v26 = vadd.f32 %v608_v14, %v603_v21  ;;  %v587_v40 = vcombine.high %v6062_v12, %v6064_v15 }
 0x170   :  { %v619_v28 = vadd.f32 %v618_v25, %v617_v24  ;;  %v611_v48 = vadd.f32 %v610_v43, %v609_v45  ;;  %v588_v53 = vcombine.high %v6066_v18, %v6066_v18  ;;  %v607_v54 = vadd.f32 %v606_v46, %v605_v49 }
 0x171   :  { %v612_v27 = vadd.f32 %v586_v22, %v579_v20  ;;  %v614_v47 = vsel %vm604_vm8, %v587_v40, 0.0 }
 0x172   :  { %v626_v30 = vsel %vm7605_vm7, %v619_v28, 0.0  ;;  %v615_v56 = vadd.f32 %v614_v47, %v613_v52  ;;  %v635_v59 = vsel %vm604_vm8, %v611_v48, 0.0  ;;  %v622_v62 = vsel %vm620_vm9, %v588_v53, 0.0 }
 0x173   :  { %v625_v29 = vadd.f32 %v624_v26, %v612_v27  ;;  %v634_v0 = vsel %vm604_vm8, %v607_v54, 0.0  ;;  %v623_v8 = vadd.f32 %v622_v62, %v621_v6 }
 0x174   :  { %v637_v3 = vsel %vm604_vm8, %v615_v56, 0.0  ;;  %v636_v7 = vadd.f32 %v635_v59, %v634_v0 }
 0x175   :  { %v627_v4 = vadd.f32 %v626_v30, %v625_v29  ;;  %v639_v10 = vsel %vm620_vm9, %v623_v8, 0.0 }
 0x176   :  { %v638_v9 = vadd.f32 %v637_v3, %v636_v7 }
 0x177   :  { %v628_v31 = vrot.slane %v627_v4, 4 }
 0x178   :  { %v640_v17 = vadd.f32 %v639_v10, %v638_v9 }
 0x179   :  { %v629_v34 = vadd.f32 %v628_v31, %v627_v4 }
 0x17a   :  { %v641_v14 = vrot.slane %v640_v17, 4 }
 0x17b   :  { %v630_v35 = vrot.slane %v629_v34, 2 }
 0x17c   :  { %v642_v19 = vadd.f32 %v641_v14, %v640_v17 }
 0x17d   :  { %v631_v37 = vadd.f32 %v630_v35, %v629_v34 }
 0x17e   :  { %v643_v20 = vrot.slane %v642_v19, 2 }
 0x17f   :  { %v632_v41 = vrot.slane %v631_v37, 1 }
 0x180   :  { %v644_v21 = vadd.f32 %v643_v20, %v642_v19 }
 0x181   :  { %v6090_v44 = vadd.f32 %v632_v41, %v631_v37 }
 0x182   :  { %v645_v22 = vrot.slane %v644_v21, 1 }
 0x183   :  { %652 = vrot.lane.b32.xlu1 %v6090_v44, %s5785_s20  ;;  %648 = vrot.lane.b32.xlu0 %v6090_v44, %s5786_s21 }
 0x184   :  { %v646_v24 = vadd.f32 %v645_v22, %v644_v21 }
 0x187   :  { %660 = vrot.lane.b32.xlu1 %v6090_v44, %s5787_s22  ;;  %656 = vrot.lane.b32.xlu0 %v6090_v44, %s5788_s23 }
 0x18b   :  { %668 = vrot.lane.b32.xlu1 %v6090_v44, %s5789_s24  ;;  %664 = vrot.lane.b32.xlu0 %v6090_v44, %s5790_s25 }
 0x18f   :  { %676 = vrot.lane.b32.xlu1 %v6090_v44, %s5791_s26  ;;  %672 = vrot.lane.b32.xlu0 %v6090_v44, %s5792_s27 }
 0x193   :  { %684 = vrot.lane.b32.xlu1 %v6090_v44, %s5793_s28  ;;  %680 = vrot.lane.b32.xlu0 %v6090_v44, %s5794_s29 }
 0x197   :  { %692 = vrot.lane.b32.xlu1 %v6090_v44, %s5795_s30  ;;  %688 = vrot.lane.b32.xlu0 %v6090_v44, %s5796_s4 }
 0x19b   :  { %700 = vrot.lane.b32.xlu1 %v6090_v44, %s5797_s0  ;;  %696 = vrot.lane.b32.xlu0 %v6090_v44, %s5798_s5 }
 0x19f   :  { %708 = vrot.lane.b32.xlu1 %v6090_v44, %s5783_s12  ;;  %704 = vrot.lane.b32.xlu0 %v6090_v44, %s5799_s7 }
 0x1a3   :  { %716 = vrot.lane.b32.xlu1 %v6090_v44, %s5800_s8  ;;  %712 = vrot.lane.b32.xlu0 %v6090_v44, %s5801_s9 }
 0x1a7   :  { %724 = vrot.lane.b32.xlu1 %v6090_v44, %s5802_s10  ;;  %720 = vrot.lane.b32.xlu0 %v6090_v44, %s7590_s13  ;;  %s5818_s13 = smov 42  }
 0x1ab   :  { %731 = vrot.lane.b32.xlu1 %v646_v24, %s7588_s14  ;;  %729 = vrot.lane.b32.xlu0 %v6090_v44, %s7588_s14  ;;  %s7597_s14 = smov 48  }
 0x1af   :  { %741 = vrot.lane.b32.xlu1 %v646_v24, %s7587_s15  ;;  %737 = vrot.lane.b32.xlu0 %v646_v24, %s7585_s16  ;;  %s7595_s16 = smov 36   ;;  %s7596_s15 = smov 30  }
 0x1b3   :  { %749 = vrot.lane.b32.xlu1 %v646_v24, %s7584_s17  ;;  %745 = vrot.lane.b32.xlu0 %v646_v24, %s7582_s18  ;;  %s7593_s18 = smov 24   ;;  %s7594_s17 = smov 18  }
 0x1b7   :  { %757 = vrot.lane.b32.xlu1 %v646_v24, %s7581_s19  ;;  %753 = vrot.lane.b32.xlu0 %v646_v24, %s7580_s6  ;;  %s7591_s6 = smov 12   ;;  %s7592_s19 = smov 6  }
 0x1f5   :  { %v653_v25 = vpop.permute.xlu1 %652  ;;  %v649_v26 = vpop.permute.xlu0 %648 }
 0x1f6   :  { %v651_v27 = vadd.f32 %v649_v26, %v6090_v44 }
 0x1f8   :  { %v655_v28 = vadd.f32 %v653_v25, %v651_v27 }
 0x1f9   :  { %v661_v29 = vpop.permute.xlu1 %660  ;;  %v657_v30 = vpop.permute.xlu0 %656 }
 0x1fa   :  { %v659_v4 = vadd.f32 %v657_v30, %v655_v28 }
 0x1fc   :  { %v663_v31 = vadd.f32 %v661_v29, %v659_v4 }
 0x1fd   :  { %v669_v34 = vpop.permute.xlu1 %668  ;;  %v665_v35 = vpop.permute.xlu0 %664 }
 0x1fe   :  { %v667_v36 = vadd.f32 %v665_v35, %v663_v31 }
 0x200   :  { %v671_v37 = vadd.f32 %v669_v34, %v667_v36 }
 0x201   :  { %v677_v38 = vpop.permute.xlu1 %676  ;;  %v673_v39 = vpop.permute.xlu0 %672 }
 0x202   :  { %v675_v40 = vadd.f32 %v673_v39, %v671_v37 }
 0x204   :  { %v679_v41 = vadd.f32 %v677_v38, %v675_v40 }
 0x205   :  { %v685_v5 = vpop.permute.xlu1 %684  ;;  %v681_v42 = vpop.permute.xlu0 %680 }
 0x206   :  { %v683_v43 = vadd.f32 %v681_v42, %v679_v41 }
 0x208   :  { %v687_v45 = vadd.f32 %v685_v5, %v683_v43 }
 0x209   :  { %v693_v46 = vpop.permute.xlu1 %692  ;;  %v689_v47 = vpop.permute.xlu0 %688 }
 0x20a   :  { %v691_v44 = vadd.f32 %v689_v47, %v687_v45 }
 0x20c   :  { %v695_v48 = vadd.f32 %v693_v46, %v691_v44 }
 0x20d   :  { %v701_v49 = vpop.permute.xlu1 %700  ;;  %v697_v52 = vpop.permute.xlu0 %696 }
 0x20e   :  { %v699_v53 = vadd.f32 %v697_v52, %v695_v48 }
 0x210   :  { %v703_v54 = vadd.f32 %v701_v49, %v699_v53 }
 0x211   :  { %v709_v56 = vpop.permute.xlu1 %708  ;;  %v705_v58 = vpop.permute.xlu0 %704 }
 0x212   :  { %v707_v59 = vadd.f32 %v705_v58, %v703_v54 }
 0x214   :  { %v711_v62 = vadd.f32 %v709_v56, %v707_v59 }
 0x215   :  { %v717_v0 = vpop.permute.xlu1 %716  ;;  %v713_v3 = vpop.permute.xlu0 %712 }
 0x216   :  { %v715_v6 = vadd.f32 %v713_v3, %v711_v62 }
 0x218   :  { %v719_v7 = vadd.f32 %v717_v0, %v715_v6 }
 0x219   :  { %v725_v8 = vpop.permute.xlu1 %724  ;;  %v721_v9 = vpop.permute.xlu0 %720 }
 0x21a   :  { %v723_v10 = vadd.f32 %v721_v9, %v719_v7 }
 0x21c   :  { %v727_v17 = vadd.f32 %v725_v8, %v723_v10 }
 0x21d   :  { %v732_v14 = vpop.permute.xlu1 %731  ;;  %v730_v19 = vpop.permute.xlu0 %729 }
 0x21e   :  { %v734_v20 = vsel %vm733_vm10, %v730_v19, %v732_v14 }
 0x21f   :  { %v736_v21 = vadd.f32 %v734_v20, %v727_v17 }
 0x221   :  { %v742_v22 = vpop.permute.xlu1 %741  ;;  %v738_v24 = vpop.permute.xlu0 %737 }
 0x222   :  { %v740_v25 = vadd.f32 %v738_v24, %v736_v21 }
 0x224   :  { %v744_v26 = vadd.f32 %v742_v22, %v740_v25 }
 0x225   :  { %v750_v27 = vpop.permute.xlu1 %749  ;;  %v746_v28 = vpop.permute.xlu0 %745 }
 0x226   :  { %v748_v29 = vadd.f32 %v746_v28, %v744_v26 }
 0x228   :  { %v752_v30 = vadd.f32 %v750_v27, %v748_v29 }
 0x229   :  { %v754_v4 = vpop.permute.xlu0 %753  ;;  %v758_v34 = vpop.permute.xlu1 %757 }
 0x22a   :  { %v756_v31 = vadd.f32 %v754_v4, %v752_v30 }
 0x22c   :  { %v760_v35 = vadd.f32 %v758_v34, %v756_v31 }
 0x22e   :  { %v761_v36 = vmul.f32 0.0006377551, %v760_v35 }
 0x230   :  { %766 = vrot.lane.b32.xlu1 %v761_v36, %s7591_s6  ;;  %763 = vrot.lane.b32.xlu0 %v761_v36, %s7592_s19  ;;  %s5819_s6 = smov 60   ;;  %s5820_s19 = smov 54  }
 0x234   :  { %772 = vrot.lane.b32.xlu1 %v761_v36, %s7593_s18  ;;  %769 = vrot.lane.b32.xlu0 %v761_v36, %s7594_s17  ;;  %s5821_s18 = smov 72   ;;  %s5822_s17 = smov 66  }
 0x238   :  { %778 = vrot.lane.b32.xlu1 %v761_v36, %s7595_s16  ;;  %775 = vrot.lane.b32.xlu0 %v761_v36, %s7596_s15  ;;  %s5823_s16 = smov 84   ;;  %s5824_s15 = smov 78  }
 0x23c   :  { %784 = vrot.lane.b32.xlu1 %v761_v36, %s7597_s14  ;;  %781 = vrot.lane.b32.xlu0 %v761_v36, %s5818_s13  ;;  %s5825_s14 = smov 90  }
 0x240   :  { %790 = vrot.lane.b32.xlu1 %v761_v36, %s5819_s6  ;;  %787 = vrot.lane.b32.xlu0 %v761_v36, %s5820_s19 }
 0x244   :  { %796 = vrot.lane.b32.xlu1 %v761_v36, %s5821_s18  ;;  %793 = vrot.lane.b32.xlu0 %v761_v36, %s5822_s17 }
 0x248   :  { %802 = vrot.lane.b32.xlu1 %v761_v36, %s5823_s16  ;;  %799 = vrot.lane.b32.xlu0 %v761_v36, %s5824_s15 }
 0x24c   :  { %805 = vrot.lane.b32.xlu0 %v761_v36, %s5825_s14 }
 0x2a2   :  { %v767_v37 = vpop.permute.xlu1 %766  ;;  %v764_v38 = vpop.permute.xlu0 %763 }
 0x2a3   :  { %v809_v39 = vsel %vm808_vm11, %v761_v36, %v764_v38 }
 0x2a4   :  { %v811_v41 = vsel %vm810_vm12, %v809_v39, %v767_v37 }
 0x2a6   :  { %v773_v40 = vpop.permute.xlu1 %772  ;;  %v770_v5 = vpop.permute.xlu0 %769 }
 0x2a7   :  { %v813_v42 = vsel %vm812_vm13, %v811_v41, %v770_v5 }
 0x2a8   :  { %v815_v45 = vsel %vm814_vm14, %v813_v42, %v773_v40 }
 0x2aa   :  { %v779_v43 = vpop.permute.xlu1 %778  ;;  %v776_v46 = vpop.permute.xlu0 %775 }
 0x2ab   :  { %v817_v47 = vsel %vm816_vm15, %v815_v45, %v776_v46 }
 0x2ac   :  { %v819_v48 = vsel %vm7602_vm0, %v817_v47, %v779_v43  ;;  %vm832_vm0 = vcmask 637952  }
 0x2ae   :  { %v785_v44 = vpop.permute.xlu1 %784  ;;  %v782_v49 = vpop.permute.xlu0 %781 }
 0x2af   :  { %v821_v52 = vsel %vm7601_vm1, %v819_v48, %v782_v49  ;;  %vm830_vm1 = vcmask 588800  }
 0x2b0   :  { %v823_v53 = vsel %vm7603_vm2, %v821_v52, %v785_v44  ;;  %vm834_vm2 = vcmask 687104  }
 0x2b2   :  { %v788_v54 = vpop.permute.xlu0 %787  ;;  %v791_v56 = vpop.permute.xlu1 %790 }
 0x2b3   :  { %v825_v58 = vsel %vm7604_vm4, %v823_v53, %v788_v54  ;;  %vm836_vm4 = vcmask 736256  }
 0x2b4   :  { %v827_v62 = vsel %vm826_vm5, %v825_v58, %v791_v56 }
 0x2b6   :  { %v794_v59 = vpop.permute.xlu0 %793  ;;  %v797_v3 = vpop.permute.xlu1 %796 }
 0x2b7   :  { %v829_v0 = vsel %vm828_vm3, %v827_v62, %v794_v59 }
 0x2b8   :  { %839 = vrot.lane.b32.xlu1 %v829_v0, %s5782_s11  ;;  %v831_v7 = vsel %vm830_vm1, %v829_v0, %v797_v3 }
 0x2ba   :  { %v800_v6 = vpop.permute.xlu0 %799  ;;  %v803_v8 = vpop.permute.xlu1 %802 }
 0x2bb   :  { %v833_v9 = vsel %vm832_vm0, %v831_v7, %v800_v6 }
 0x2bc   :  { %v835_v17 = vsel %vm834_vm2, %v833_v9, %v803_v8 }
 0x2be   :  { %v806_v10 = vpop.permute.xlu0 %805 }
 0x2bf   :  { %v837_v14 = vsel %vm836_vm4, %v835_v17, %v806_v10 }
 0x32a   :  { %v840_v19 = vpop.permute.xlu1 %839 }
 0x32b   :  { %v842_v20 = vsel %vm159_vm6, %v837_v14, %v840_v19  ;;  %v850_v21 = vrot.slane %v840_v19, %v6022_v32 }
 0x32c   :  { %v846_v22 = vrot.slane %v842_v20, %v6022_v32 }
 0x32e   :  { %v853_v24 = vcombine.low %v846_v22, %v850_v21  ;;  %v854_v25 = vcombine.high %v846_v22, %v850_v21 }
 0x330   :  { %v6193_v26 = vsub.f32 %v6038_v13, %v853_v24  ;;  %v6196_v27 = vsub.f32 %v6040_v57, %v854_v25  ;;  %v6199_v28 = vsub.f32 %v6032_v50, %v853_v24  ;;  %v6202_v29 = vsub.f32 %v6034_v51, %v854_v25 }
 0x331   :  { %v6205_v30 = vsub.f32 %v6050_v1, %v853_v24  ;;  %v6208_v4 = vsub.f32 %v6052_v2, %v854_v25  ;;  %v6211_v31 = vsub.f32 %v6042_v60, %v853_v24  ;;  %v6214_v13 = vsub.f32 %v6036_v55, %v854_v25 }
 0x332   :  { %v6217_v57 = vsub.f32 %v6044_v61, %v853_v24  ;;  %v6220_v50 = vsub.f32 %v6046_v63, %v854_v25  ;;  %v6223_v51 = vsub.f32 %v6062_v12, %v853_v24  ;;  %v6226_v1 = vsub.f32 %v6060_v11, %v853_v24 }
 0x333   :  { %v6229_v2 = vsub.f32 %v6064_v15, %v854_v25  ;;  %v871_v60 = vmul.f32 %v6193_v26, %v6193_v26  ;;  %v872_v55 = vmul.f32 %v6196_v27, %v6196_v27  ;;  %v6236_v61 = vsub.f32 %v6066_v18, %v853_v24 }
 0x334   :  { %v873_v63 = vmul.f32 %v6199_v28, %v6199_v28  ;;  %v874_v12 = vmul.f32 %v6202_v29, %v6202_v29  ;;  %v875_v11 = vmul.f32 %v6205_v30, %v6205_v30  ;;  %v876_v15 = vmul.f32 %v6208_v4, %v6208_v4 }
 0x335   :  { %v878_v34 = vmul.f32 %v6211_v31, %v6211_v31  ;;  %v879_v35 = vmul.f32 %v6214_v13, %v6214_v13  ;;  %v880_v18 = vmul.f32 %v6217_v57, %v6217_v57  ;;  %v881_v36 = vmul.f32 %v6220_v50, %v6220_v50 }
 0x336   :  { %v882_v37 = vmul.f32 %v6223_v51, %v6223_v51  ;;  %v883_v38 = vmul.f32 %v6229_v2, %v6229_v2  ;;  %v899_v39 = vcombine.low %v871_v60, %v872_v55  ;;  %v901_v40 = vcombine.low %v873_v63, %v874_v12 }
 0x337   :  { %v877_v41 = vmul.f32 %v6226_v1, %v6226_v1  ;;  %v906_v5 = vcombine.low %v878_v34, %v879_v35  ;;  %v884_v42 = vmul.f32 %v6236_v61, %v6236_v61  ;;  %v903_v43 = vcombine.low %v875_v11, %v876_v15 }
 0x338   :  { %v908_v45 = vcombine.low %v880_v18, %v881_v36  ;;  %v910_v46 = vcombine.low %v882_v37, %v883_v38  ;;  %v900_v3 = vcombine.high %v871_v60, %v872_v55  ;;  %v902_v6 = vcombine.high %v873_v63, %v874_v12 }
 0x339   :  { %v927_v47 = vadd.f32 %v906_v5, %v899_v39  ;;  %v939_v48 = vsel %vm7605_vm7, %v877_v41, 0.0  ;;  %v940_v52 = vsel %vm7605_vm7, %v884_v42, 0.0  ;;  %v907_v7 = vcombine.high %v878_v34, %v879_v35 }
 0x33a   :  { %v931_v44 = vadd.f32 %v908_v45, %v901_v40  ;;  %v935_v49 = vadd.f32 %v910_v46, %v903_v43  ;;  %v941_v54 = vadd.f32 %v940_v52, %v939_v48  ;;  %v909_v8 = vcombine.high %v880_v18, %v881_v36 }
 0x33b   :  { %v928_v17 = vsel %vm604_vm8, %v900_v3, 0.0  ;;  %v929_v14 = vsel %vm604_vm8, %v907_v7, 0.0  ;;  %v932_v19 = vsel %vm604_vm8, %v902_v6, 0.0  ;;  %v904_v22 = vcombine.high %v875_v11, %v876_v15 }
 0x33c   :  { %v945_v53 = vadd.f32 %v931_v44, %v927_v47  ;;  %v947_v58 = vsel %vm7605_vm7, %v941_v54, 0.0  ;;  %v933_v20 = vsel %vm604_vm8, %v909_v8, 0.0  ;;  %v911_v24 = vcombine.high %v882_v37, %v883_v38 }
 0x33d   :  { %v930_v39 = vadd.f32 %v929_v14, %v928_v17  ;;  %v934_v40 = vadd.f32 %v933_v20, %v932_v19  ;;  %v936_v60 = vsel %vm604_vm8, %v904_v22, 0.0  ;;  %v905_v63 = vcombine.high %v877_v41, %v877_v41 }
 0x33e   :  { %v946_v56 = vadd.f32 %v945_v53, %v935_v49  ;;  %v937_v55 = vsel %vm604_vm8, %v911_v24, 0.0  ;;  %v912_v12 = vcombine.high %v884_v42, %v884_v42  ;;  %vm7623_vm7 = vcmask 392192  }
 0x33f   :  { %v955_v34 = vsel %vm604_vm8, %v930_v39, 0.0  ;;  %v956_v35 = vsel %vm604_vm8, %v934_v40, 0.0  ;;  %v938_v11 = vadd.f32 %v937_v55, %v936_v60  ;;  %v942_v18 = vsel %vm620_vm9, %v905_v63, 0.0 }
 0x340   :  { %v948_v59 = vadd.f32 %v947_v58, %v946_v56  ;;  %v957_v15 = vadd.f32 %v956_v35, %v955_v34  ;;  %v943_v36 = vsel %vm620_vm9, %v912_v12, 0.0 }
 0x341   :  { %v958_v37 = vsel %vm604_vm8, %v938_v11, 0.0  ;;  %v944_v38 = vadd.f32 %v943_v36, %v942_v18 }
 0x342   :  { %v949_v62 = vrot.slane %v948_v59, 4  ;;  %v959_v41 = vadd.f32 %v958_v37, %v957_v15 }
 0x343   :  { %v960_v5 = vsel %vm620_vm9, %v944_v38, 0.0  ;;  %vm7621_vm9 = vcmask 293888  }
 0x344   :  { %v950_v0 = vadd.f32 %v949_v62, %v948_v59  ;;  %v961_v42 = vadd.f32 %v960_v5, %v959_v41 }
 0x346   :  { %v951_v9 = vrot.slane %v950_v0, 2  ;;  %v962_v43 = vrot.slane %v961_v42, 4 }
 0x348   :  { %v952_v10 = vadd.f32 %v951_v9, %v950_v0  ;;  %v963_v45 = vadd.f32 %v962_v43, %v961_v42 }
 0x34a   :  { %v953_v21 = vrot.slane %v952_v10, 1  ;;  %v964_v46 = vrot.slane %v963_v45, 2 }
 0x34c   :  { %v954_v25 = vadd.f32 %v953_v21, %v952_v10  ;;  %v965_v47 = vadd.f32 %v964_v46, %v963_v45 }
 0x34e   :  { %973 = vrot.lane.b32.xlu1 %v954_v25, %s5785_s20  ;;  %969 = vrot.lane.b32.xlu0 %v954_v25, %s5786_s21  ;;  %v966_v44 = vrot.slane %v965_v47, 1  ;;  %s7606_s20 = smov 14  }
 0x350   :  { %v967_v48 = vadd.f32 %v966_v44, %v965_v47 }
 0x352   :  { %981 = vrot.lane.b32.xlu1 %v954_v25, %s5787_s22  ;;  %977 = vrot.lane.b32.xlu0 %v954_v25, %s5788_s23  ;;  %s7607_s22 = smov 2   ;;  %s7608_s23 = smov 118  }
 0x356   :  { %989 = vrot.lane.b32.xlu1 %v954_v25, %s5789_s24  ;;  %985 = vrot.lane.b32.xlu0 %v954_v25, %s5790_s25  ;;  %s7609_s24 = smov 124   ;;  %s7610_s25 = smov 106  }
 0x35a   :  { %997 = vrot.lane.b32.xlu1 %v954_v25, %s5791_s26  ;;  %993 = vrot.lane.b32.xlu0 %v954_v25, %s5792_s27  ;;  %s7611_s27 = smov 112  }
 0x35e   :  { %1005 = vrot.lane.b32.xlu1 %v954_v25, %s5793_s28  ;;  %1001 = vrot.lane.b32.xlu0 %v954_v25, %s5794_s29  ;;  %s7612_s28 = smov 94   ;;  %s7613_s29 = smov 100  }
 0x362   :  { %1013 = vrot.lane.b32.xlu1 %v954_v25, %s5795_s30  ;;  %1009 = vrot.lane.b32.xlu0 %v954_v25, %s5796_s4  ;;  %s7614_s30 = smov 12   ;;  %s7615_s4 = smov 6  }
 0x366   :  { %1021 = vrot.lane.b32.xlu1 %v954_v25, %s5797_s0  ;;  %1017 = vrot.lane.b32.xlu0 %v954_v25, %s5798_s5  ;;  %s7616_s0 = smov 24   ;;  %s7617_s5 = smov 18  }
 0x36a   :  { %1029 = vrot.lane.b32.xlu1 %v954_v25, %s5783_s12  ;;  %1025 = vrot.lane.b32.xlu0 %v954_v25, %s5799_s7  ;;  %s7618_s7 = smov 36  }
 0x36e   :  { %1037 = vrot.lane.b32.xlu1 %v954_v25, %s5800_s8  ;;  %1033 = vrot.lane.b32.xlu0 %v954_v25, %s5801_s9  ;;  %s7619_s8 = smov 30   ;;  %s7620_s9 = smov 48  }
 0x372   :  { %1045 = vrot.lane.b32.xlu1 %v954_v25, %s5802_s10  ;;  %1041 = vrot.lane.b32.xlu0 %v954_v25, %s7606_s20 }
 0x376   :  { %1052 = vrot.lane.b32.xlu1 %v967_v48, %s7607_s22  ;;  %1050 = vrot.lane.b32.xlu0 %v954_v25, %s7607_s22  ;;  %s7634_s22 = smov 64  }
 0x37a   :  { %1061 = vrot.lane.b32.xlu1 %v967_v48, %s7608_s23  ;;  %1057 = vrot.lane.b32.xlu0 %v967_v48, %s7609_s24  ;;  %s5829_s23 = smov 16  }
 0x37e   :  { %1069 = vrot.lane.b32.xlu1 %v967_v48, %s7610_s25  ;;  %1065 = vrot.lane.b32.xlu0 %v967_v48, %s7611_s27 }
 0x382   :  { %1077 = vrot.lane.b32.xlu1 %v967_v48, %s7612_s28  ;;  %1073 = vrot.lane.b32.xlu0 %v967_v48, %s7613_s29 }
 0x3c0   :  { %v974_v49 = vpop.permute.xlu1 %973  ;;  %v970_v52 = vpop.permute.xlu0 %969 }
 0x3c1   :  { %v972_v53 = vadd.f32 %v970_v52, %v954_v25 }
 0x3c3   :  { %v976_v54 = vadd.f32 %v974_v49, %v972_v53 }
 0x3c4   :  { %v982_v56 = vpop.permute.xlu1 %981  ;;  %v978_v58 = vpop.permute.xlu0 %977 }
 0x3c5   :  { %v980_v59 = vadd.f32 %v978_v58, %v976_v54 }
 0x3c7   :  { %v984_v62 = vadd.f32 %v982_v56, %v980_v59 }
 0x3c8   :  { %v990_v0 = vpop.permute.xlu1 %989  ;;  %v986_v3 = vpop.permute.xlu0 %985 }
 0x3c9   :  { %v988_v6 = vadd.f32 %v986_v3, %v984_v62 }
 0x3cb   :  { %v992_v7 = vadd.f32 %v990_v0, %v988_v6 }
 0x3cc   :  { %v998_v8 = vpop.permute.xlu1 %997  ;;  %v994_v9 = vpop.permute.xlu0 %993 }
 0x3cd   :  { %v996_v10 = vadd.f32 %v994_v9, %v992_v7 }
 0x3cf   :  { %v1000_v17 = vadd.f32 %v998_v8, %v996_v10 }
 0x3d0   :  { %v1006_v14 = vpop.permute.xlu1 %1005  ;;  %v1002_v19 = vpop.permute.xlu0 %1001 }
 0x3d1   :  { %v1004_v20 = vadd.f32 %v1002_v19, %v1000_v17 }
 0x3d3   :  { %v1008_v21 = vadd.f32 %v1006_v14, %v1004_v20 }
 0x3d4   :  { %v1014_v22 = vpop.permute.xlu1 %1013  ;;  %v1010_v24 = vpop.permute.xlu0 %1009 }
 0x3d5   :  { %v1012_v25 = vadd.f32 %v1010_v24, %v1008_v21 }
 0x3d7   :  { %v1016_v39 = vadd.f32 %v1014_v22, %v1012_v25 }
 0x3d8   :  { %v1022_v40 = vpop.permute.xlu1 %1021  ;;  %v1018_v60 = vpop.permute.xlu0 %1017 }
 0x3d9   :  { %v1020_v55 = vadd.f32 %v1018_v60, %v1016_v39 }
 0x3db   :  { %v1024_v63 = vadd.f32 %v1022_v40, %v1020_v55 }
 0x3dc   :  { %v1030_v12 = vpop.permute.xlu1 %1029  ;;  %v1026_v34 = vpop.permute.xlu0 %1025 }
 0x3dd   :  { %v1028_v35 = vadd.f32 %v1026_v34, %v1024_v63 }
 0x3df   :  { %v1032_v11 = vadd.f32 %v1030_v12, %v1028_v35 }
 0x3e0   :  { %v1038_v15 = vpop.permute.xlu1 %1037  ;;  %v1034_v18 = vpop.permute.xlu0 %1033 }
 0x3e1   :  { %v1036_v36 = vadd.f32 %v1034_v18, %v1032_v11 }
 0x3e3   :  { %v1040_v37 = vadd.f32 %v1038_v15, %v1036_v36 }
 0x3e4   :  { %v1046_v38 = vpop.permute.xlu1 %1045  ;;  %v1042_v41 = vpop.permute.xlu0 %1041 }
 0x3e5   :  { %v1044_v5 = vadd.f32 %v1042_v41, %v1040_v37  ;;  %v5280_v41 = vld [vmem:[%s7576_s2 + $0x1] ss:$8 sm:$0x3] }
 0x3e7   :  { %v1048_v42 = vadd.f32 %v1046_v38, %v1044_v5 }
 0x3e8   :  { %v1053_v43 = vpop.permute.xlu1 %1052  ;;  %v1051_v45 = vpop.permute.xlu0 %1050 }
 0x3e9   :  { %v1054_v46 = vsel %vm733_vm10, %v1051_v45, %v1053_v43  ;;  %vm7622_vm10 = vcmask 343040  }
 0x3ea   :  { %v1056_v47 = vadd.f32 %v1054_v46, %v1048_v42  ;;  %v1158_v46 = vrot.slane %v5280_v41, %v6025_v33 }
 0x3ec   :  { %v1062_v44 = vpop.permute.xlu1 %1061  ;;  %v1058_v48 = vpop.permute.xlu0 %1057 }
 0x3ed   :  { %v1060_v49 = vadd.f32 %v1058_v48, %v1056_v47  ;;  %v1154_v47 = vrot.slane %v5280_v41, %v6022_v32  ;;  %v5281_v48 = vld [vmem:[%s7576_s2 + $0x2] ss:$8 sm:$0x3] }
 0x3ef   :  { %v1064_v52 = vadd.f32 %v1062_v44, %v1060_v49 }
 0x3f0   :  { %v1070_v53 = vpop.permute.xlu1 %1069  ;;  %v1066_v54 = vpop.permute.xlu0 %1065 }
 0x3f1   :  { %v1068_v56 = vadd.f32 %v1066_v54, %v1064_v52 }
 0x3f3   :  { %v1072_v58 = vadd.f32 %v1070_v53, %v1068_v56 }
 0x3f4   :  { %v1074_v59 = vpop.permute.xlu0 %1073  ;;  %v1078_v0 = vpop.permute.xlu1 %1077 }
 0x3f5   :  { %v1076_v62 = vadd.f32 %v1074_v59, %v1072_v58  ;;  %v1195_v58 = vrot.slane %v5281_v48, %v6022_v32  ;;  %v1199_v59 = vrot.slane %v5281_v48, %v6025_v33 }
 0x3f7   :  { %v1080_v3 = vadd.f32 %v1078_v0, %v1076_v62 }
 0x3f9   :  { %v1081_v6 = vmul.f32 0.0006377551, %v1080_v3 }
 0x3fb   :  { %v1082_v7 = vadd.f32 1e-05, %v1081_v6 }
 0x3fd   :  { %5749 = vrsqrt.f32 %v1082_v7  ;;  %v6350_v7 = vcombine.low %v1195_v58, %v1199_v59 }
 0x40a   :  { %v5750_v8 = vpop.eup %5749 }
 0x40b   :  { %1088 = vrot.lane.b32.xlu1 %v5750_v8, %s7614_s30  ;;  %1085 = vrot.lane.b32.xlu0 %v5750_v8, %s7615_s4 }
 0x40f   :  { %1094 = vrot.lane.b32.xlu1 %v5750_v8, %s7616_s0  ;;  %1091 = vrot.lane.b32.xlu0 %v5750_v8, %s7617_s5 }
 0x413   :  { %1100 = vrot.lane.b32.xlu1 %v5750_v8, %s7618_s7  ;;  %1097 = vrot.lane.b32.xlu0 %v5750_v8, %s7619_s8 }
 0x417   :  { %1106 = vrot.lane.b32.xlu1 %v5750_v8, %s7620_s9  ;;  %1103 = vrot.lane.b32.xlu0 %v5750_v8, %s5818_s13 }
 0x41b   :  { %1112 = vrot.lane.b32.xlu1 %v5750_v8, %s5819_s6  ;;  %1109 = vrot.lane.b32.xlu0 %v5750_v8, %s5820_s19 }
 0x41f   :  { %1118 = vrot.lane.b32.xlu1 %v5750_v8, %s5821_s18  ;;  %1115 = vrot.lane.b32.xlu0 %v5750_v8, %s5822_s17 }
 0x423   :  { %1124 = vrot.lane.b32.xlu1 %v5750_v8, %s5823_s16  ;;  %1121 = vrot.lane.b32.xlu0 %v5750_v8, %s5824_s15 }
 0x427   :  { %1127 = vrot.lane.b32.xlu0 %v5750_v8, %s5825_s14 }
 0x47d   :  { %v1089_v9 = vpop.permute.xlu1 %1088  ;;  %v1086_v10 = vpop.permute.xlu0 %1085 }
 0x47e   :  { %v1130_v17 = vsel %vm808_vm11, %v5750_v8, %v1086_v10  ;;  %vm7624_vm11 = vcmask 441344   ;;  %v6352_v8 = vcombine.high %v1195_v58, %v1199_v59 }
 0x47f   :  { %v1131_v19 = vsel %vm810_vm12, %v1130_v17, %v1089_v9  ;;  %vm1398_vm12 = vcmask 998400  }
 0x481   :  { %v1095_v14 = vpop.permute.xlu1 %1094  ;;  %v1092_v20 = vpop.permute.xlu0 %1091 }
 0x482   :  { %v1132_v21 = vsel %vm812_vm13, %v1131_v19, %v1092_v20 }
 0x483   :  { %v1133_v24 = vsel %vm814_vm14, %v1132_v21, %v1095_v14  ;;  %vm7627_vm14 = vmmov %vm7624_vm11 }
 0x485   :  { %v1101_v22 = vpop.permute.xlu1 %1100  ;;  %v1098_v25 = vpop.permute.xlu0 %1097 }
 0x486   :  { %v1134_v39 = vsel %vm816_vm15, %v1133_v24, %v1098_v25  ;;  %vm7628_vm15 = vmmov %vm7624_vm11 }
 0x487   :  { %v1135_v60 = vsel %vm7621_vm9, %v1134_v39, %v1101_v22  ;;  %vm2710_vm9 = vcmask 1014784  }
 0x489   :  { %v1107_v40 = vpop.permute.xlu1 %1106  ;;  %v1104_v55 = vpop.permute.xlu0 %1103 }
 0x48a   :  { %v1136_v63 = vsel %vm7622_vm10, %v1135_v60, %v1104_v55  ;;  %vm2715_vm10 = vcmask 654336  }
 0x48b   :  { %v1137_v12 = vsel %vm7623_vm7, %v1136_v63, %v1107_v40 }
 0x48d   :  { %v1110_v34 = vpop.permute.xlu0 %1109  ;;  %v1113_v35 = vpop.permute.xlu1 %1112 }
 0x48e   :  { %v1138_v11 = vsel %vm7624_vm11, %v1137_v12, %v1110_v34 }
 0x48f   :  { %v1139_v15 = vsel %vm826_vm5, %v1138_v11, %v1113_v35  ;;  %vm1272_vm5 = vcmask 1046532  }
 0x491   :  { %v1116_v18 = vpop.permute.xlu0 %1115  ;;  %v1119_v37 = vpop.permute.xlu1 %1118 }
 0x492   :  { %v1140_v36 = vsel %vm828_vm3, %v1139_v15, %v1116_v18  ;;  %vm1271_vm3 = vcmask 1042432  }
 0x493   :  { %1146 = vrot.lane.b32.xlu1 %v1140_v36, %s5782_s11  ;;  %v1141_v5 = vsel %vm830_vm1, %v1140_v36, %v1119_v37  ;;  %vm6376_vm7 = vmor %vm1271_vm3, %vm1272_vm5  ;;  %vm2406_vm1 = vcmask 277504   ;;  %vm7631_vm5 = vcmask 261120  }
 0x495   :  { %v1122_v38 = vpop.permute.xlu0 %1121  ;;  %v1125_v42 = vpop.permute.xlu1 %1124 }
 0x496   :  { %v1142_v43 = vsel %vm832_vm0, %v1141_v5, %v1122_v38  ;;  %vm2413_vm0 = vcmask 1040384  }
 0x497   :  { %v1143_v44 = vsel %vm834_vm2, %v1142_v43, %v1125_v42 }
 0x499   :  { %v1128_v45 = vpop.permute.xlu0 %1127 }
 0x49a   :  { %v1144_v49 = vsel %vm836_vm4, %v1143_v44, %v1128_v45  ;;  %vm3212_vm4 = vcmask 1041408  }
 0x505   :  { %v1147_v52 = vpop.permute.xlu1 %1146 }
 0x506   :  { %v1149_v53 = vsel %vm159_vm6, %v1144_v49, %v1147_v52  ;;  %v1162_v54 = vmul.f32 %v1158_v46, %v1147_v52 }
 0x507   :  { %v1161_v56 = vmul.f32 %v1154_v47, %v1149_v53 }
 0x508   :  { %v1170_v62 = vrot.slane %v1162_v54, %v6022_v32 }
 0x509   :  { %v1166_v0 = vrot.slane %v1161_v56, %v6022_v32 }
 0x50b   :  { %v1173_v3 = vcombine.low %v1166_v0, %v1170_v62  ;;  %v1174_v6 = vcombine.high %v1166_v0, %v1170_v62 }
 0x50d   :  { %v1184_v9 = vmul.f32 %v1173_v3, %v6211_v31  ;;  %v1185_v10 = vmul.f32 %v1174_v6, %v6214_v13  ;;  %v1190_v17 = vmul.f32 %v1173_v3, %v6236_v61  ;;  %v1189_v14 = vmul.f32 %v1174_v6, %v6229_v2 }
 0x50e   :  { %v1183_v19 = vmul.f32 %v1173_v3, %v6226_v1  ;;  %v1186_v20 = vmul.f32 %v1173_v3, %v6217_v57  ;;  %v1187_v21 = vmul.f32 %v1174_v6, %v6220_v50  ;;  %v1188_v22 = vmul.f32 %v1173_v3, %v6223_v51 }
 0x50f   :  { %v1211_v24 = vadd.f32 %v6350_v7, %v1184_v9  ;;  %v1212_v25 = vadd.f32 %v6352_v8, %v1185_v10  ;;  %v1217_v31 = vadd.f32 %v6350_v7, %v1190_v17  ;;  %v1216_v13 = vadd.f32 %v6352_v8, %v1189_v14 }
 0x510   :  { %v1210_v61 = vadd.f32 %v6350_v7, %v1183_v19  ;;  %v1213_v2 = vadd.f32 %v6350_v7, %v1186_v20  ;;  %v6369_v1 = vadd.f32 %v6352_v8, %v1187_v21  ;;  %v6372_v57 = vadd.f32 %v6350_v7, %v1188_v22 }
 0x511   :  { %v1225_v50 = vmax.f32 %v1211_v24, 0.0  ;;  %v1226_v51 = vmax.f32 %v1212_v25, 0.0  ;;  %v1231_v39 = vmax.f32 %v1217_v31, 0.0  ;;  %v1230_v40 = vmax.f32 %v1216_v13, 0.0 }
 0x512   :  { %v1224_v55 = vmax.f32 %v1210_v61, 0.0  ;;  %v1227_v63 = vmax.f32 %v1213_v2, 0.0  ;;  %v1228_v12 = vmax.f32 %v6369_v1, 0.0  ;;  %v1229_v38 = vmax.f32 %v6372_v57, 0.0 }
 0x513   :  { %v5307_v34 = vrot.slane %v1225_v50, 9  ;;  %v1296_v35 = vrot.slane %v1226_v51, 5  ;;  %v1311_v11 = vrot.slane %v1231_v39, 5  ;;  %v1308_v15 = vrot.slane %v1230_v40, 5 }
 0x514   :  { %v6381_v18 = vrot.slane %v1224_v55, 5  ;;  %v1299_v36 = vrot.slane %v1227_v63, 5  ;;  %v1302_v37 = vrot.slane %v1228_v12, 5  ;;  %v1305_v49 = vrot.slane %v1229_v38, 5 }
 0x515   :  { %v1297_v41 = vsel %vm6376_vm7, %v5307_v34, %v1296_v35  ;;  %v1313_v5 = vrot.slane %v1311_v11, 4  ;;  %v1310_v42 = vrot.slane %v1308_v15, 4  ;;  %v1298_v43 = vrot.slane %v1296_v35, 4 }
 0x516   :  { %v6386_v45 = vmax.f32 %v1225_v50, %v1297_v41  ;;  %v1293_v46 = vrot.slane %v6381_v18, 4  ;;  %v1301_v47 = vrot.slane %v1299_v36, 4  ;;  %v1304_v54 = vrot.slane %v1302_v37, 4 }
 0x517   :  { %v6389_v44 = vmax.f32 %v1231_v39, %v1313_v5  ;;  %v1312_v48 = vsel %vm6376_vm7, %v1310_v42, %v1311_v11  ;;  %v1300_v53 = vsel %vm6376_vm7, %v1298_v43, %v1299_v36  ;;  %v1177_v56 = vmul.f32 %v1173_v3, %v6193_v26 }
 0x518   :  { %1370 = vrot.lane.b32.xlu0 %v6386_v45, %s5786_s21  ;;  %v6397_v52 = vmax.f32 %v1230_v40, %v1312_v48  ;;  %v6402_v58 = vmax.f32 %v1224_v55, %v1293_v46  ;;  %v1303_v59 = vsel %vm6376_vm7, %v1301_v47, %v1302_v37  ;;  %v1178_v62 = vmul.f32 %v1174_v6, %v6196_v27 }
 0x519   :  { %1382 = vrot.lane.b32.xlu1 %v6389_v44, %s5786_s21  ;;  %v1181_v0 = vmul.f32 %v1173_v3, %v6205_v30  ;;  %v1204_v9 = vadd.f32 %v6350_v7, %v1177_v56  ;;  %v1182_v10 = vmul.f32 %v1174_v6, %v6208_v4  ;;  %v1179_v17 = vmul.f32 %v1173_v3, %v6199_v28 }
 0x51a   :  { %v1180_v14 = vmul.f32 %v1174_v6, %v6202_v29  ;;  %v1307_v26 = vrot.slane %v1305_v49, 4  ;;  %v1205_v19 = vadd.f32 %v6352_v8, %v1178_v62  ;;  %v6421_v3 = vmax.f32 %v1226_v51, %v1300_v53 }
 0x51b   :  { %v1208_v20 = vadd.f32 %v6350_v7, %v1181_v0  ;;  %v1218_v27 = vmax.f32 %v1204_v9, 0.0  ;;  %v1209_v30 = vadd.f32 %v6352_v8, %v1182_v10  ;;  %v1206_v4 = vadd.f32 %v6350_v7, %v1179_v17 }
 0x51c   :  { %1380 = vrot.lane.b32.xlu0 %v6397_v52, %s5786_s21  ;;  %v1207_v28 = vadd.f32 %v6352_v8, %v1180_v14  ;;  %v6423_v29 = vmax.f32 %v1227_v63, %v1303_v59  ;;  %v1219_v6 = vmax.f32 %v1205_v19, 0.0  ;;  %v1306_v22 = vsel %vm6376_vm7, %v1304_v54, %v1305_v49 }
 0x51d   :  { %1368 = vrot.lane.b32.xlu1 %v6402_v58, %s5786_s21  ;;  %v1222_v21 = vmax.f32 %v1208_v20, 0.0  ;;  %v5306_v24 = vrot.slane %v1218_v27, 9  ;;  %v1223_v25 = vmax.f32 %v1209_v30, 0.0  ;;  %v1220_v31 = vmax.f32 %v1206_v4, 0.0 }
 0x51e   :  { %v1309_v7 = vsel %vm6376_vm7, %v1307_v26, %v1308_v15  ;;  %v1276_v13 = vrot.slane %v1219_v6, 5  ;;  %v1221_v61 = vmax.f32 %v1207_v28, 0.0  ;;  %v6433_v1 = vmax.f32 %v1228_v12, %v1306_v22 }
 0x51f   :  { %v1285_v8 = vrot.slane %v1222_v21, 5  ;;  %v1288_v2 = vrot.slane %v1223_v25, 5  ;;  %v6435_v50 = vmax.f32 %v1229_v38, %v1309_v7  ;;  %v1279_v40 = vrot.slane %v1220_v31, 5 }
 0x520   :  { %1372 = vrot.lane.b32.xlu0 %v6421_v3, %s5786_s21  ;;  %v1277_v51 = vsel %vm6376_vm7, %v5306_v24, %v1276_v13  ;;  %v1278_v63 = vrot.slane %v1276_v13, 4  ;;  %v1282_v34 = vrot.slane %v1221_v61, 5  ;;  %v5826_v46 = vmov 0  }
 0x521   :  { %1374 = vrot.lane.b32.xlu1 %v6423_v29, %s5786_s21  ;;  %v1287_v57 = vrot.slane %v1285_v8, 4  ;;  %v1290_v39 = vrot.slane %v1288_v2, 4  ;;  %v6445_v12 = vmax.f32 %v1218_v27, %v1277_v51  ;;  %v1281_v15 = vrot.slane %v1279_v40, 4  ;;  %2318 = vmatprep.mubr.bf16.mxu1 %v5826_v46 }
 0x522   :  { %v1280_v36 = vsel %vm6376_vm7, %v1278_v63, %v1279_v40  ;;  %v1284_v37 = vrot.slane %v1282_v34, 4  ;;  %v5827_v47 = vmov 1966171168  }
 0x523   :  { %v1289_v55 = vsel %vm6376_vm7, %v1287_v57, %v1288_v2  ;;  %v1292_v11 = vsel %vm6376_vm7, %v1290_v39, %v6381_v18  ;;  %v6460_v41 = vmax.f32 %v1219_v6, %v1280_v36  ;;  %v1283_v5 = vsel %vm6376_vm7, %v1281_v15, %v1282_v34 }
 0x524   :  { %1376 = vrot.lane.b32.xlu0 %v6433_v1, %s5786_s21  ;;  %v6447_v35 = vmax.f32 %v1222_v21, %v1289_v55  ;;  %v6458_v38 = vmax.f32 %v1223_v25, %v1292_v11  ;;  %v1286_v18 = vsel %vm6376_vm7, %v1284_v37, %v1285_v8  ;;  %v6470_v42 = vmax.f32 %v1220_v31, %v1283_v5  ;;  %vm7632_vm7 = vmmov %vm7631_vm5 }
 0x525   :  { %1378 = vrot.lane.b32.xlu1 %v6435_v50, %s5786_s21  ;;  %v6472_v43 = vmax.f32 %v1221_v61, %v1286_v18  ;;  %v1456_v48 = vunpack.c.l.s4 %v5827_v47 }
 0x527   :  { %v1457_v60 = vunpack.c.0.s8 %v1456_v48 }
 0x528   :  { %1356 = vrot.lane.b32.xlu0 %v6445_v12, %s5786_s21 }
 0x529   :  { %1364 = vrot.lane.b32.xlu1 %v6447_v35, %s5786_s21  ;;  %v6480_v56 = vsub.s32 %v1457_v60, %v5977_v16 }
 0x52c   :  { %1366 = vrot.lane.b32.xlu0 %v6458_v38, %s5786_s21 }
 0x52d   :  { %1358 = vrot.lane.b32.xlu1 %v6460_v41, %s5786_s21 }
 0x530   :  { %1360 = vrot.lane.b32.xlu0 %v6470_v42, %s5786_s21 }
 0x531   :  { %1362 = vrot.lane.b32.xlu1 %v6472_v43, %s5786_s21  ;;  %s5828_s21 = smov 40  }
 0x58a   :  { %v1371_v49 = vpop.permute.xlu0 %1370 }
 0x58b   :  { %v1391_v53 = vrot.slane %v1371_v49, 4  ;;  %v1383_v54 = vpop.permute.xlu1 %1382 }
 0x58c   :  { %v1397_v59 = vrot.slane %v1383_v54, 4 }
 0x58d   :  { %v1406_v62 = vsel %vm1398_vm12, %v1371_v49, %v1391_v53 }
 0x58e   :  { %v1434_v0 = vmax.f32 %v6386_v45, %v1406_v62  ;;  %v1412_v9 = vsel %vm1398_vm12, %v1383_v54, %v1397_v59  ;;  %v1381_v10 = vpop.permute.xlu0 %1380 }
 0x58f   :  { %v1440_v17 = vmax.f32 %v6389_v44, %v1412_v9  ;;  %v1396_v14 = vrot.slane %v1381_v10, 4  ;;  %v1369_v26 = vpop.permute.xlu1 %1368 }
 0x590   :  { %v1628_v19 = vrot.slane %v1434_v0, %v6480_v56  ;;  %v1390_v20 = vrot.slane %v1369_v26, 4 }
 0x591   :  { %v1772_v27 = vrot.slane %v1440_v17, %v6480_v56  ;;  %v1411_v16 = vsel %vm1398_vm12, %v1381_v10, %v1396_v14 }
 0x592   :  { %v1629_v30 = vcombine.high %v1628_v19, %v1628_v19  ;;  %v1636_v4 = vrot.slane %v1628_v19, %v6480_v56  ;;  %v1439_v28 = vmax.f32 %v6397_v52, %v1411_v16  ;;  %v1405_v45 = vsel %vm1398_vm12, %v1369_v26, %v1390_v20  ;;  %v1373_v6 = vpop.permute.xlu0 %1372 }
 0x593   :  { %v1773_v21 = vcombine.high %v1772_v27, %v1772_v27  ;;  %v6493_v44 = vrot.slane %v1772_v27, %v6480_v56  ;;  %v1433_v22 = vmax.f32 %v6402_v58, %v1405_v45  ;;  %v1392_v24 = vrot.slane %v1373_v6, 4  ;;  %v1375_v25 = vpop.permute.xlu1 %1374 }
 0x594   :  { %v1643_v31 = vrot.slane %v1629_v30, %v6480_v56  ;;  %v1644_v7 = vcombine.high %v1636_v4, %v1636_v4  ;;  %v1748_v13 = vrot.slane %v1439_v28, %v6480_v56  ;;  %v1393_v8 = vrot.slane %v1375_v25, 4 }
 0x595   :  { %v6499_v61 = vrot.slane %v1773_v21, %v6480_v56  ;;  %v1605_v52 = vrot.slane %v1433_v22, %v6480_v56  ;;  %v1407_v2 = vsel %vm1398_vm12, %v1373_v6, %v1392_v24  ;;  %v1788_v58 = vcombine.high %v6493_v44, %v6493_v44 }
 0x596   :  { %v6503_v57 = vcombine.low %v1643_v31, %v1644_v7  ;;  %v1749_v51 = vcombine.high %v1748_v13, %v1748_v13  ;;  %v6508_v39 = vrot.slane %v1748_v13, %v6480_v56  ;;  %v1377_v40 = vpop.permute.xlu0 %1376  ;;  %v1435_v34 = vmax.f32 %v6421_v3, %v1407_v2 }
 0x597   :  { %v1606_v55 = vcombine.high %v1605_v52, %v1605_v52  ;;  %v1613_v63 = vrot.slane %v1605_v52, %v6480_v56  ;;  %v1408_v11 = vsel %vm1398_vm12, %v1375_v25, %v1393_v8  ;;  %v1379_v15 = vpop.permute.xlu1 %1378  ;;  %v1394_v18 = vrot.slane %v1377_v40, 4 }
 0x598   :  { %v6514_v36 = vrot.slane %v1749_v51, %v6480_v56  ;;  %v1764_v37 = vcombine.high %v6508_v39, %v6508_v39  ;;  %v1436_v5 = vmax.f32 %v6423_v29, %v1408_v11  ;;  %v1652_v60 = vrot.slane %v1435_v34, %v6480_v56 }
 0x599   :  { %v1620_v47 = vrot.slane %v1606_v55, %v6480_v56  ;;  %v1621_v48 = vcombine.high %v1613_v63, %v1613_v63  ;;  %v1395_v49 = vrot.slane %v1379_v15, 4  ;;  %v1645_v53 = vcombine.high %v1643_v31, %v1643_v31 }
 0x59a   :  { %v1765_v3 = vcombine.high %v6514_v36, %v6514_v36  ;;  %v1676_v54 = vrot.slane %v1436_v5, %v6480_v56  ;;  %v1409_v59 = vsel %vm1398_vm12, %v1377_v40, %v1394_v18  ;;  %v1653_v0 = vcombine.high %v1652_v60, %v1652_v60  ;;  %v1357_v29 = vpop.permute.xlu0 %1356 }
 0x59b   :  { %v1987_v62 = vcombine.low %v1613_v63, %v1620_v47  ;;  %v1660_v9 = vrot.slane %v1652_v60, %v6480_v56  ;;  %v6527_v10 = vcombine.low %v6514_v36, %v1764_v37  ;;  %v1437_v26 = vmax.f32 %v6433_v1, %v1409_v59  ;;  %v1365_v20 = vpop.permute.xlu1 %1364 }
 0x59c   :  { %v1677_v17 = vcombine.high %v1676_v54, %v1676_v54  ;;  %v1684_v14 = vrot.slane %v1676_v54, %v6480_v56  ;;  %v1410_v19 = vsel %vm1398_vm12, %v1379_v15, %v1395_v49  ;;  %v6532_v27 = vcombine.low %v1621_v48, %v1636_v4 }
 0x59d   :  { %v1667_v16 = vrot.slane %v1653_v0, %v6480_v56  ;;  %v1668_v30 = vcombine.high %v1660_v9, %v1660_v9  ;;  %v1990_v28 = vcombine.low %v1645_v53, %v1660_v9  ;;  %v6536_v45 = vrot.slane %v1987_v62, %v6480_v56 }
 0x59e   :  { %v1691_v6 = vrot.slane %v1677_v17, %v6480_v56  ;;  %v1700_v21 = vrot.slane %v1437_v26, %v6480_v56  ;;  %v1438_v22 = vmax.f32 %v6435_v50, %v1410_v19  ;;  %v1692_v25 = vcombine.high %v1684_v14, %v1684_v14  ;;  %v1367_v55 = vpop.permute.xlu0 %1366 }
 0x59f   :  { %v6542_v1 = vrot.slane %v1990_v28, %v6480_v56  ;;  %v1669_v24 = vcombine.high %v1667_v16, %v1667_v16  ;;  %v1384_v4 = vrot.slane %v1357_v29, 4  ;;  %v6544_v31 = vcombine.low %v1667_v16, %v1668_v30  ;;  %v1359_v15 = vpop.permute.xlu1 %1358 }
 0x5a0   :  { %v1693_v7 = vcombine.high %v1691_v6, %v1691_v6  ;;  %v1701_v13 = vcombine.high %v1700_v21, %v1700_v21  ;;  %v1708_v8 = vrot.slane %v1700_v21, %v6480_v56  ;;  %v1724_v2 = vrot.slane %v1438_v22, %v6480_v56 }
 0x5a1   :  { %v2054_v52 = vcombine.low %v1669_v24, %v1684_v14  ;;  %v1399_v51 = vsel %vm1398_vm12, %v1357_v29, %v1384_v4  ;;  %v1388_v40 = vrot.slane %v1365_v20, 4  ;;  %v6551_v37 = vcombine.low %v1691_v6, %v1692_v25 }
 0x5a2   :  { %v1715_v50 = vrot.slane %v1701_v13, %v6480_v56  ;;  %v1716_v63 = vcombine.high %v1708_v8, %v1708_v8  ;;  %v2056_v34 = vcombine.low %v1693_v7, %v1708_v8  ;;  %v1427_v11 = vmax.f32 %v6445_v12, %v1399_v51  ;;  %v1361_v16 = vpop.permute.xlu0 %1360 }
 0x5a3   :  { %v1725_v5 = vcombine.high %v1724_v2, %v1724_v2  ;;  %v1732_v18 = vrot.slane %v1724_v2, %v6480_v56  ;;  %v1403_v47 = vsel %vm1398_vm12, %v1365_v20, %v1388_v40  ;;  %v6556_v48 = vrot.slane %v2054_v52, %v6480_v56  ;;  %v1363_v21 = vpop.permute.xlu1 %1362 }
 0x5a4   :  { %v6559_v60 = vrot.slane %v2056_v34, %v6480_v56  ;;  %v1717_v49 = vcombine.high %v1715_v50, %v1715_v50  ;;  %v1461_v53 = vrot.slane %v1427_v11, %v6480_v56  ;;  %v1431_v59 = vmax.f32 %v6447_v35, %v1403_v47 }
 0x5a5   :  { %v1739_v54 = vrot.slane %v1725_v5, %v6480_v56  ;;  %v1740_v12 = vcombine.high %v1732_v18, %v1732_v18  ;;  %v1389_v62 = vrot.slane %v1367_v55, 4  ;;  %v6564_v0 = vcombine.low %v1715_v50, %v1716_v63 }
 0x5a6   :  { %v2120_v9 = vcombine.low %v1717_v49, %v1732_v18  ;;  %v1462_v29 = vcombine.high %v1461_v53, %v1461_v53  ;;  %v1385_v17 = vrot.slane %v1359_v15, 4  ;;  %v1469_v26 = vrot.slane %v1461_v53, %v6480_v56 }
 0x5a7   :  { %v1741_v14 = vcombine.high %v1739_v54, %v1739_v54  ;;  %v1557_v19 = vrot.slane %v1431_v59, %v6480_v56  ;;  %v1404_v20 = vsel %vm1398_vm12, %v1367_v55, %v1389_v62  ;;  %v6569_v30 = vcombine.low %v1739_v54, %v1740_v12 }
 0x5a8   :  { %v1476_v28 = vrot.slane %v1462_v29, %v6480_v56  ;;  %v1432_v35 = vmax.f32 %v6458_v38, %v1404_v20  ;;  %v1400_v6 = vsel %vm1398_vm12, %v1359_v15, %v1385_v17  ;;  %v6578_v24 = vrot.slane %v2120_v9, %v6480_v56 }
 0x5a9   :  { %v6575_v22 = vcombine.low %v1741_v14, %v6508_v39  ;;  %v1558_v25 = vcombine.high %v1557_v19, %v1557_v19  ;;  %v1428_v4 = vmax.f32 %v6460_v41, %v1400_v6  ;;  %v1386_v52 = vrot.slane %v1361_v16, 4 }
 0x5aa   :  { %v1789_v7 = vcombine.low %v1469_v26, %v1476_v28  ;;  %v5308_v13 = vcombine.high %v1469_v26, %v1476_v28  ;;  %v1581_v8 = vrot.slane %v1432_v35, %v6480_v56  ;;  %v1565_v2 = vrot.slane %v1557_v19, %v6480_v56 }
 0x5ab   :  { %v1572_v38 = vrot.slane %v1558_v25, %v6480_v56  ;;  %v1485_v51 = vrot.slane %v1428_v4, %v6480_v56  ;;  %v1387_v40 = vrot.slane %v1363_v21, 4  ;;  %v2186_v41 = vcombine.low %v1765_v3, %v6493_v44 }
 0x5ac   :  { %v6586_v39 = vrot.slane %v1789_v7, %v6480_v56  ;;  %v6589_v55 = vrot.slane %v5308_v13, %v6480_v56  ;;  %v1582_v50 = vcombine.high %v1581_v8, %v1581_v8  ;;  %v1589_v11 = vrot.slane %v1581_v8, %v6480_v56 }
 0x5ad   :  { %v1921_v63 = vcombine.low %v1565_v2, %v1572_v38  ;;  %v5312_v34 = vcombine.high %v1565_v2, %v1572_v38  ;;  %v1486_v15 = vcombine.high %v1485_v51, %v1485_v51  ;;  %v1401_v18 = vsel %vm1398_vm12, %v1361_v16, %v1386_v52 }
 0x5ae   :  { %v1596_v5 = vrot.slane %v1582_v50, %v6480_v56  ;;  %v1402_v47 = vsel %vm1398_vm12, %v1363_v21, %v1387_v40  ;;  %v2187_v49 = vcombine.low %v6499_v61, %v1788_v58  ;;  %v1493_v36 = vrot.slane %v1485_v51, %v6480_v56  ;;  %vm7633_vm12 = vmmov %vm7631_vm5 }
 0x5af   :  { %v6604_v53 = vrot.slane %v1921_v63, %v6480_v56  ;;  %v1500_v3 = vrot.slane %v1486_v15, %v6480_v56  ;;  %v1429_v54 = vmax.f32 %v6470_v42, %v1401_v18  ;;  %v6610_v12 = vrot.slane %v5312_v34, %v6480_v56 }
 0x5b0   :  { %v1923_v59 = vcombine.low %v1589_v11, %v1596_v5  ;;  %v5313_v62 = vcombine.high %v1589_v11, %v1596_v5  ;;  %v1430_v9 = vmax.f32 %v6472_v43, %v1402_v47  ;;  %v2194_v61 = vrot.slane %v6527_v10, %v6480_v56 }
 0x5b1   :  { %v1791_v29 = vcombine.low %v1493_v36, %v1500_v3  ;;  %v1509_v44 = vrot.slane %v1429_v54, %v6480_v56  ;;  %v2201_v58 = vrot.slane %v2186_v41, %v6480_v56  ;;  %v5309_v14 = vcombine.high %v1493_v36, %v1500_v3 }
 0x5b2   :  { %v6618_v17 = vrot.slane %v1923_v59, %v6480_v56  ;;  %v1533_v42 = vrot.slane %v1430_v9, %v6480_v56  ;;  %v2208_v26 = vrot.slane %v2187_v49, %v6480_v56  ;;  %v6623_v19 = vrot.slane %v5313_v62, %v6480_v56 }
 0x5b3   :  { %v6626_v43 = vrot.slane %v1791_v29, %v6480_v56  ;;  %v1510_v20 = vcombine.high %v1509_v44, %v1509_v44  ;;  %v1517_v16 = vrot.slane %v1509_v44, %v6480_v56  ;;  %v2210_v35 = vcombine.high %v2194_v61, %v2201_v58 }
 0x5b4   :  { %v1534_v10 = vcombine.high %v1533_v42, %v1533_v42  ;;  %v1541_v28 = vrot.slane %v1533_v42, %v6480_v56  ;;  %v2211_v6 = vcombine.high %v2208_v26, %v2208_v26  ;;  %v2209_v25 = vcombine.low %v2194_v61, %v2201_v58 }
 0x5b5   :  { %v1524_v21 = vrot.slane %v1510_v20, %v6480_v56  ;;  %v2232_v4 = vrot.slane %v2208_v26, %v6480_v56  ;;  %v2063_v7 = vrot.slane %v6544_v31, %v6480_v56  ;;  %v2225_v8 = vrot.slane %v2210_v35, %v6480_v56 }
 0x5b6   :  { %v1548_v13 = vrot.slane %v1534_v10, %v6480_v56  ;;  %v2239_v52 = vrot.slane %v2211_v6, %v6480_v56  ;;  %v2077_v2 = vrot.slane %v6551_v37, %v6480_v56  ;;  %v2218_v40 = vrot.slane %v2209_v25, %v6480_v56 }
 0x5b7   :  { %v1855_v38 = vcombine.low %v1517_v16, %v1524_v21  ;;  %v5310_v51 = vcombine.high %v1517_v16, %v1524_v21  ;;  %v2086_v50 = vcombine.high %v2063_v7, %v6556_v48  ;;  %v6643_v11 = vrot.slane %v5309_v14, %v6480_v56 }
 0x5b8   :  { %v1857_v41 = vcombine.low %v1541_v28, %v1548_v13  ;;  %v5311_v63 = vcombine.high %v1541_v28, %v1548_v13  ;;  %v2241_v34 = vcombine.low %v2225_v8, %v2239_v52  ;;  %v2088_v31 = vcombine.high %v2077_v2, %v6559_v60 }
 0x5b9   :  { %v6646_v15 = vrot.slane %v1855_v38, %v6480_v56  ;;  %v6649_v5 = vrot.slane %v5310_v51, %v6480_v56  ;;  %v2240_v37 = vcombine.low %v2218_v40, %v2232_v4  ;;  %v2102_v49 = vrot.slane %v2086_v50, %v6480_v56 }
 0x5ba   :  { %v6652_v18 = vrot.slane %v1857_v41, %v6480_v56  ;;  %v2263_v47 = vpack.c.bf16 %v2241_v34, %v2241_v34  ;;  %v2116_v36 = vrot.slane %v2088_v31, %v6480_v56  ;;  %v2129_v54 = vrot.slane %v6564_v0, %v6480_v56 }
 0x5bb   :  { %v2262_v3 = vpack.c.bf16 %v2240_v37, %v2240_v37  ;;  %v2143_v59 = vrot.slane %v6569_v30, %v6480_v56  ;;  %v2150_v62 = vrot.slane %v6575_v22, %v6480_v56  ;;  %v6663_v9 = vrot.slane %v5311_v63, %v6480_v56 }
 0x5bc   :  { %5316 = vmatprep.subr.msk.bf16.mxu1 %vm1271_vm3, %v2263_v47  ;;  %v2085_v29 = vcombine.low %v2063_v7, %v6556_v48  ;;  %v2087_v44 = vcombine.low %v2077_v2, %v6559_v60  ;;  %v1954_v61 = vcombine.high %v6604_v53, %v6610_v12  ;;  %v2152_v58 = vcombine.high %v2129_v54, %v6578_v24 }
 0x5bd   :  { %v2281_v0 = vsel %vm1271_vm3, %v2262_v3, 0  ;;  %v2154_v30 = vcombine.high %v2143_v59, %v2150_v62  ;;  %v2151_v14 = vcombine.low %v2129_v54, %v6578_v24  ;;  %v2153_v26 = vcombine.low %v2143_v59, %v2150_v62 }
 0x5be   :  { %2295 = vmatpush1.bf16.msra.mxu1 %v2281_v0  ;;  %v2095_v22 = vrot.slane %v2085_v29, %v6480_v56  ;;  %v2109_v42 = vrot.slane %v2087_v44, %v6480_v56  ;;  %v1956_v48 = vcombine.high %v6618_v17, %v6623_v19  ;;  %v2118_v60 = vcombine.low %v2102_v49, %v2116_v36 }
 0x5bf   :  { %v2168_v20 = vrot.slane %v2152_v58, %v6480_v56  ;;  %v2182_v16 = vrot.slane %v2154_v30, %v6480_v56  ;;  %v2161_v10 = vrot.slane %v2151_v14, %v6480_v56  ;;  %v2175_v28 = vrot.slane %v2153_v26, %v6480_v56  ;;  %v5608_v26 = vld [vmem:[%s7575_s1 + $0x4b8] ss:$8 sps:$4 sm:$0x3f]  }
 0x5c0   :  { %v1970_v24 = vrot.slane %v1954_v61, %v6480_v56  ;;  %v1984_v35 = vrot.slane %v1956_v48, %v6480_v56  ;;  %v2004_v6 = vrot.slane %v6532_v27, %v6480_v56  ;;  %v2011_v25 = vrot.slane %v6503_v57, %v6480_v56  ;;  %v5611_v48 = vld [vmem:[%s7575_s1 + $0x518] ss:$8 sps:$4 sm:$0xff]  }
 0x5c1   :  { %v2184_v21 = vcombine.low %v2168_v20, %v2182_v16  ;;  %v1953_v4 = vcombine.low %v6604_v53, %v6610_v12  ;;  %v1955_v7 = vcombine.low %v6618_v17, %v6623_v19  ;;  %v2117_v13 = vcombine.low %v2095_v22, %v2109_v42  ;;  %v5613_v20 = vld [vmem:[%s7575_s1 + $0x4f8] ss:$8 sps:$4 sm:$0xff]   ;;  %v5614_v16 = vld [vmem:[%s7575_s1 + $0x4e8] ss:$8 sps:$4 sm:$0xff]  }
 0x5c2   :  { %v2183_v8 = vcombine.low %v2161_v10, %v2175_v28  ;;  %v2020_v52 = vcombine.high %v6536_v45, %v2004_v6  ;;  %v2019_v2 = vcombine.low %v6536_v45, %v2004_v6  ;;  %v2022_v51 = vcombine.high %v2011_v25, %v6542_v1  ;;  %v5615_v10 = vld [vmem:[%s7575_s1 + $0x4d8] ss:$8 sps:$4 sm:$0xff]   ;;  %v5616_v28 = vld [vmem:[%s7575_s1 + $0x4c8] ss:$8 sps:$4 sm:$0xff]  }
 0x5c3   :  { %v2261_v38 = vpack.c.bf16 %v2184_v21, %v2118_v60  ;;  %v1963_v27 = vrot.slane %v1953_v4, %v6480_v56  ;;  %v1977_v40 = vrot.slane %v1955_v7, %v6480_v56  ;;  %v2021_v53 = vcombine.low %v2011_v25, %v6542_v1  ;;  %v5612_v60 = vld [vmem:[%s7575_s1 + $0x508] ss:$8 sps:$4 sm:$0xff]   ;;  %v5618_v6 = vld [vmem:[%s7575_s1 + $0x558] ss:$8 sps:$4 sm:$0xff]  }
 0x5c4   :  { %v2260_v57 = vpack.c.bf16 %v2183_v8, %v2117_v13  ;;  %v2036_v50 = vrot.slane %v2020_v52, %v6480_v56  ;;  %v2029_v12 = vrot.slane %v2019_v2, %v6480_v56  ;;  %v1986_v17 = vcombine.low %v1970_v24, %v1984_v35  ;;  %v5617_v24 = vld [vmem:[%s7575_s1 + $0x568] ss:$0 sps:$4 sm:$0x11]  }
 0x5c5   :  { %2296 = vmatprep.subr.bf16.mxu1 %v2261_v38  ;;  %v2050_v19 = vrot.slane %v2022_v51, %v6480_v56  ;;  %v1822_v45 = vcombine.high %v6586_v39, %v6589_v55  ;;  %v1824_v41 = vcombine.high %v6626_v43, %v6643_v11  ;;  %v1985_v63 = vcombine.low %v1963_v27, %v1977_v40  ;;  %v5619_v21 = vld [vmem:[%s7575_s1 + $0x548] ss:$8 sps:$4 sm:$0xff]  }
 0x5c6   :  { %2297 = vmatpush1.bf16.msra.mxu1 %v2260_v57  ;;  %v2043_v34 = vrot.slane %v2021_v53, %v6480_v56  ;;  %v1888_v31 = vcombine.high %v6646_v15, %v6649_v5  ;;  %v1890_v1 = vcombine.high %v6652_v18, %v6663_v9  ;;  %v1823_v36 = vcombine.low %v6626_v43, %v6643_v11  ;;  %v5622_v53 = vld [vmem:[%s7575_s1 + $0x114] ss:$8 sps:$4 sm:$0xff]  }
 0x5c7   :  { %v2052_v37 = vcombine.low %v2036_v50, %v2050_v19  ;;  %v1838_v47 = vrot.slane %v1822_v45, %v6480_v56  ;;  %v1852_v49 = vrot.slane %v1824_v41, %v6480_v56  ;;  %v1821_v62 = vcombine.low %v6586_v39, %v6589_v55  ;;  %v5620_v50 = vld [vmem:[%s7575_s1 + $0x110] ss:$8 sps:$4 sm:$0xff]   ;;  %3219 = vmatprep.subr.bf16.mxu0 %v5622_v53  ;;  %v5628_v19 = vld [vmem:[%s7575_s1 + $0xf4] ss:$8 sps:$4 sm:$0xff]  }
 0x5c8   :  { %v2051_v3 = vcombine.low %v2029_v12, %v2043_v34  ;;  %v1904_v54 = vrot.slane %v1888_v31, %v6480_v56  ;;  %v1918_v59 = vrot.slane %v1890_v1, %v6480_v56  ;;  %v1887_v61 = vcombine.low %v6646_v15, %v6649_v5  ;;  %v5607_v5 = vld [vmem:[%s7575_s1 + $0x4a8] ss:$8 sps:$4 sm:$0xff]   ;;  %v5625_v12 = vld [vmem:[%s7575_s1 + $0x104] ss:$8 sps:$4 sm:$0xff]   ;;  %3220 = vmatpush1.bf16.msra.mxu0 %v5620_v50  ;;  %v5640_v41 = vld [vmem:[%s7575_s1 + $0x214] ss:$8 sps:$4 sm:$0xff]  }
 0x5c9   :  { %v2259_v29 = vpack.c.bf16 %v2052_v37, %v1986_v17  ;;  %v1854_v44 = vcombine.low %v1838_v47, %v1852_v49  ;;  %v1845_v30 = vrot.slane %v1823_v36, %v6480_v56  ;;  %v1889_v43 = vcombine.low %v6652_v18, %v6663_v9  ;;  %v5609_v18 = vld [vmem:[%s7575_s1 + $0x538] ss:$8 sps:$4 sm:$0xff]   ;;  %v5610_v9 = vld [vmem:[%s7575_s1 + $0x528] ss:$8 sps:$4 sm:$0xff]   ;;  %3221 = vmatprep.subr.bf16.mxu0 %v5625_v12  ;;  %v5631_v1 = vld [vmem:[%s7575_s1 + $0xe4] ss:$8 sps:$4 sm:$0xff]  }
 0x5ca   :  { %v2258_v0 = vpack.c.bf16 %v2051_v3, %v1985_v63  ;;  %v1920_v58 = vcombine.low %v1904_v54, %v1918_v59  ;;  %v1897_v11 = vrot.slane %v1887_v61, %v6480_v56  ;;  %v1831_v22 = vrot.slane %v1821_v62, %v6480_v56  ;;  %v5623_v17 = vld [vmem:[%s7575_s1 + $0x100] ss:$8 sps:$4 sm:$0xff]   ;;  %v5638_v45 = vld [vmem:[%s7575_s1 + $0x210] ss:$8 sps:$4 sm:$0xff]   ;;  %v5646_v63 = vld [vmem:[%s7575_s1 + $0x204] ss:$8 sps:$4 sm:$0xff]  }
 0x5cb   :  { %2298 = vmatprep.subr.bf16.mxu1 %v2259_v29  ;;  %v1911_v39 = vrot.slane %v1889_v43, %v6480_v56  ;;  %v2415_v35 = vsel %vm2413_vm0, %v5617_v24, 0  ;;  %v5626_v34 = vld [vmem:[%s7575_s1 + $0xf0] ss:$8 sps:$4 sm:$0xff]   ;;  %v5644_v31 = vld [vmem:[%s7575_s1 + $0x200] ss:$8 sps:$4 sm:$0xff]   ;;  %vm3500_vm3 = vcmask 254976  }
 0x5cc   :  { %2299 = vmatpush1.bf16.msra.mxu1 %v2258_v0  ;;  %v2257_v14 = vpack.c.bf16 %v1920_v58, %v1854_v44  ;;  %v1853_v55 = vcombine.low %v1831_v22, %v1845_v30  ;;  %3222 = vmatpush1.bf16.msra.mxu0 %v5623_v17  ;;  %v5629_v37 = vld [vmem:[%s7575_s1 + $0xe0] ss:$8 sps:$4 sm:$0xff]   ;;  %v5634_v47 = vld [vmem:[%s7575_s1 + $0xd4] ss:$8 sps:$4 sm:$0xff]   ;;  %v5632_v49 = vld [vmem:[%s7575_s1 + $0xd0] ss:$8 sps:$4 sm:$0xff]  }
 0x5cd   :  { %v1919_v42 = vcombine.low %v1897_v11, %v1911_v39  ;;  %3223 = vmatprep.subr.bf16.mxu0 %v5628_v19  ;;  %v5637_v36 = vld [vmem:[%s7575_s1 + $0xc4] ss:$8 sps:$4 sm:$0xff]   ;;  %v5635_v3 = vld [vmem:[%s7575_s1 + $0xc0] ss:$8 sps:$4 sm:$0xff]   ;;  %v5643_v54 = vld [vmem:[%s7575_s1 + $0xb4] ss:$8 sps:$4 sm:$0xff]  }
 0x5ce   :  { %2300 = vmatprep.subr.bf16.mxu1 %v2257_v14  ;;  %v5641_v59 = vld [vmem:[%s7575_s1 + $0xb0] ss:$8 sps:$4 sm:$0xff]   ;;  %v5647_v22 = vld [vmem:[%s7575_s1 + $0xa0] ss:$8 sps:$4 sm:$0xff]   ;;  %v5649_v39 = vld [vmem:[%s7575_s1 + $0xa4] ss:$8 sps:$4 sm:$0xff]  }
 0x5cf   :  { %v2256_v15 = vpack.c.bf16 %v1919_v42, %v1853_v55  ;;  %v5650_v55 = vld [vmem:[%s7575_s1 + $0x1f0] ss:$8 sps:$4 sm:$0xff]  }
 0x5d0   :  { %3224 = vmatpush1.bf16.msra.mxu0 %v5626_v34 }
 0x5d1   :  { %2301 = vmatpush1.bf16.msra.mxu1 %v2256_v15  ;;  %3225 = vmatprep.subr.bf16.mxu0 %v5631_v1  ;;  %v5652_v15 = vld [vmem:[%s7575_s1 + $0x1f4] ss:$8 sps:$4 sm:$0xff]  }
 0x5d2   :  { %2417 = vmatprep.subr.bf16.mxu1 %v5826_v46 }
 0x5d4   :  { %5317 = vmatmul.mubr.msk.bf16.vlgmr.msra.gmra.mxu1 %vm7627_vm14, %v5607_v5  ;;  %3226 = vmatpush1.bf16.msra.mxu0 %v5629_v37  ;;  %vm3579_vm14 = vcmask 130048  }
 0x5d5   :  { %2328 = vmatprep.mubr.bf16.mxu1 %v5826_v46  ;;  %2418 = vmatpush1.bf16.msra.mxu1 %v5609_v18 }
 0x5d6   :  { %2419 = vmatprep.subr.bf16.mxu1 %v5826_v46  ;;  %3227 = vmatprep.subr.bf16.mxu0 %v5634_v47  ;;  %v5661_v47 = vld [vmem:[%s7575_s1 + $0x184] ss:$8 sps:$4 sm:$0xff]  }
 0x5d8   :  { %3228 = vmatpush1.bf16.msra.mxu0 %v5632_v49  ;;  %v5662_v49 = vld [vmem:[%s7575_s1 + $0x1d0] ss:$8 sps:$4 sm:$0xff]  }
 0x5d9   :  { %2420 = vmatpush1.bf16.msra.mxu1 %v5610_v9  ;;  %3229 = vmatprep.subr.bf16.mxu0 %v5637_v36 }
 0x5da   :  { %2421 = vmatprep.subr.bf16.mxu1 %v5826_v46 }
 0x5dc   :  { %5318 = vmatmul.mubr.msk.bf16.gmra.mxu1 %vm7628_vm15, %v5608_v26  ;;  %3230 = vmatpush1.bf16.msra.mxu0 %v5635_v3  ;;  %vm7635_vm15 = vmmov %vm7631_vm5 }
 0x5dd   :  { %2422 = vmatpush1.bf16.msra.mxu1 %v5611_v48  ;;  %3231 = vmatprep.subr.bf16.mxu0 %v5643_v54  ;;  %v5664_v54 = vld [vmem:[%s7575_s1 + $0x1d4] ss:$8 sps:$4 sm:$0xff]  }
 0x5de   :  { %2423 = vmatprep.subr.bf16.mxu1 %v5826_v46 }
 0x5e0   :  { %3232 = vmatpush1.bf16.msra.mxu0 %v5641_v59 }
 0x5e1   :  { %2424 = vmatpush1.bf16.msra.mxu1 %v5612_v60  ;;  %3233 = vmatprep.subr.bf16.mxu0 %v5649_v39 }
 0x5e2   :  { %2425 = vmatprep.subr.bf16.mxu1 %v5826_v46 }
 0x5e4   :  { %3234 = vmatpush1.bf16.msra.mxu0 %v5647_v22 }
 0x5e5   :  { %2426 = vmatpush1.bf16.msra.mxu1 %v5613_v20 }
 0x5e6   :  { %2427 = vmatprep.subr.bf16.mxu1 %v5826_v46 }
 0x5e9   :  { %2428 = vmatpush1.bf16.msra.mxu1 %v5614_v16 }
 0x5ea   :  { %2429 = vmatprep.subr.bf16.mxu1 %v5826_v46 }
 0x5ed   :  { %2430 = vmatpush1.bf16.msra.mxu1 %v5615_v10 }
 0x5ee   :  { %2431 = vmatprep.subr.bf16.mxu1 %v5826_v46 }
 0x5f1   :  { %2432 = vmatpush1.bf16.msra.mxu1 %v5616_v28 }
 0x5f2   :  { %2443 = vmatprep.subr.bf16.mxu1 %v5826_v46 }
 0x5f5   :  { %2444 = vmatpush2.bf16.msra.mxu1 %v2415_v35 }
 0x5f6   :  { %2445 = vmatprep.subr.bf16.mxu1 %v5826_v46 }
 0x5f9   :  { %2446 = vmatpush2.bf16.msra.mxu1 %v5618_v6 }
 0x5fa   :  { %2447 = vmatprep.subr.bf16.mxu1 %v5826_v46 }
 0x5fd   :  { %2448 = vmatpush2.bf16.msra.mxu1 %v5619_v21 }
 0x5fe   :  { %3270 = vmatprep.subr.bf16.mxu1 %v5640_v41 }
 0x694   :  { %v2320_v25 = vpop.f32.mrf.mxu1 }
 0x696   :  { %v2322_v4 = vpop.f32.mrf.mxu1 }
 0x698   :  { %v2324_v7 = vpop.f32.mrf.mxu1 }
 0x699   :  { %v2339_v52 = vpack.c.bf16 %v2324_v7, %v2320_v25 }
 0x69a   :  { %v2326_v13 = vpop.f32.mrf.mxu1 }
 0x69b   :  { %v2340_v8 = vpack.c.bf16 %v2326_v13, %v2322_v4  ;;  %v5653_v13 = vld [vmem:[%s7575_s1 + $0x190] ss:$8 sps:$4 sm:$0xff]  }
 0x69c   :  { %v2330_v2 = vpop.f32.mrf.mxu1 }
 0x69d   :  { %5330 = vmatprep.mubr.msk.bf16.mxu1 %vm2406_vm1, %v2340_v8  ;;  %v5655_v8 = vld [vmem:[%s7575_s1 + $0x194] ss:$8 sps:$4 sm:$0xff]  }
 0x69e   :  { %v2332_v38 = vpop.f32.mrf.mxu1  ;;  %2450 = vmatmul.mubr.bf16.vlgmr.msra.gmra.mxu1 %v2339_v52  ;;  %v5656_v52 = vld [vmem:[%s7575_s1 + $0x1e0] ss:$8 sps:$4 sm:$0xff]   ;;  %3235 = vmatprep.subr.bf16.mxu0 %v5655_v8 }
 0x69f   :  { %3271 = vmatpush1.bf16.msra.mxu1 %v5638_v45  ;;  %3236 = vmatpush2.bf16.msra.mxu0 %v5653_v13  ;;  %v5683_v13 = vld [vmem:[%s7575_s1 + $0x140] ss:$8 sps:$4 sm:$0xff]  }
 0x6a0   :  { %v2334_v51 = vpop.f32.mrf.mxu1  ;;  %3272 = vmatprep.subr.bf16.mxu1 %v5646_v63  ;;  %3237 = vmatprep.subr.bf16.mxu0 %v5661_v47 }
 0x6a1   :  { %v2341_v57 = vpack.c.bf16 %v2334_v51, %v2330_v2 }
 0x6a2   :  { %v2336_v27 = vpop.f32.mrf.mxu1 }
 0x6a3   :  { %v2342_v40 = vpack.c.bf16 %v2336_v27, %v2332_v38  ;;  %3273 = vmatpush1.bf16.msra.mxu1 %v5644_v31  ;;  %v5658_v27 = vld [vmem:[%s7575_s1 + $0x1e4] ss:$8 sps:$4 sm:$0xff]   ;;  %v5659_v31 = vld [vmem:[%s7575_s1 + $0x180] ss:$8 sps:$4 sm:$0xff]  }
 0x6a4   :  { %3274 = vmatprep.subr.bf16.mxu1 %v5652_v15  ;;  %3238 = vmatpush2.bf16.msra.mxu0 %v5659_v31 }
 0x6a5   :  { %5331 = vmatprep.mubr.msk.bf16.mxu1 %vm2406_vm1, %v2342_v40  ;;  %vm7636_vm1 = vcmask 392192  }
 0x6a6   :  { %2458 = vmatmul.mubr.bf16.gmra.mxu1 %v2341_v57 }
 0x6a7   :  { %3275 = vmatpush1.bf16.msra.mxu1 %v5650_v55 }
 0x6a8   :  { %3276 = vmatprep.subr.bf16.mxu1 %v5658_v27  ;;  %v5696_v27 = vld [vmem:[%s7575_s1 + $0x124] ss:$8 sps:$4 sm:$0xff]  }
 0x6ab   :  { %3277 = vmatpush1.bf16.msra.mxu1 %v5656_v52  ;;  %v5690_v52 = vld [vmem:[%s7575_s1 + $0x134] ss:$8 sps:$4 sm:$0xff]  }
 0x6ac   :  { %3278 = vmatprep.subr.bf16.mxu1 %v5664_v54 }
 0x6af   :  { %3279 = vmatpush1.bf16.msra.mxu1 %v5662_v49 }
 0x75e   :  { %v2451_v62 = vpop.f32.mrf.mxu1 }
 0x75f   :  { %v2470_v29 = vcombine.high %v2451_v62, %v2451_v62  ;;  %v2477_v44 = vrot.slane %v2451_v62, %v5984_v23 }
 0x760   :  { %v2453_v61 = vpop.f32.mrf.mxu1 }
 0x761   :  { %v2484_v0 = vrot.slane %v2470_v29, %v5984_v23  ;;  %v2485_v58 = vcombine.high %v2477_v44, %v2477_v44 }
 0x762   :  { %v2454_v30 = vpop.f32.mrf.mxu1 }
 0x763   :  { %v2486_v43 = vcombine.high %v2484_v0, %v2484_v0  ;;  %v2487_v11 = vcombine.high %v2454_v30, %v2454_v30  ;;  %v2494_v14 = vrot.slane %v2454_v30, %v5984_v23  ;;  %v2588_v5 = vcombine.low %v2477_v44, %v2485_v58 }
 0x764   :  { %v2456_v42 = vpop.f32.mrf.mxu1 }
 0x765   :  { %v2589_v18 = vcombine.low %v2484_v0, %v2486_v43  ;;  %v2501_v9 = vrot.slane %v2487_v11, %v5984_v23  ;;  %v2502_v26 = vcombine.high %v2494_v14, %v2494_v14  ;;  %v2596_v35 = vrot.slane %v2588_v5, %v5984_v23  ;;  %v5665_v5 = vld [vmem:[%s7575_s1 + $0x170] ss:$8 sps:$4 sm:$0xff]  }
 0x766   :  { %v2459_v48 = vpop.f32.mrf.mxu1 }
 0x767   :  { %v2603_v60 = vrot.slane %v2589_v18, %v5984_v23  ;;  %v2605_v20 = vcombine.low %v2494_v14, %v2502_v26  ;;  %v2503_v16 = vcombine.high %v2501_v9, %v2501_v9  ;;  %v2504_v10 = vcombine.high %v2459_v48, %v2459_v48  ;;  %v5667_v18 = vld [vmem:[%s7575_s1 + $0x174] ss:$8 sps:$4 sm:$0xff]   ;;  %v5670_v26 = vld [vmem:[%s7575_s1 + $0x1c4] ss:$8 sps:$4 sm:$0xff]  }
 0x768   :  { %v2511_v28 = vrot.slane %v2459_v48, %v5984_v23  ;;  %v2461_v24 = vpop.f32.mrf.mxu1  ;;  %v2619_v21 = vrot.slane %v2501_v9, %v5984_v23  ;;  %v5668_v9 = vld [vmem:[%s7575_s1 + $0x1c0] ss:$8 sps:$4 sm:$0xff]   ;;  %3239 = vmatprep.subr.bf16.mxu0 %v5667_v18  ;;  %3280 = vmatprep.subr.bf16.mxu1 %v5670_v26  ;;  %v5673_v48 = vld [vmem:[%s7575_s1 + $0x164] ss:$8 sps:$4 sm:$0xff]  }
 0x769   :  { %v2612_v6 = vrot.slane %v2605_v20, %v5984_v23  ;;  %v2518_v25 = vrot.slane %v2504_v10, %v5984_v23  ;;  %v2604_v2 = vcombine.low %v2596_v35, %v2603_v60  ;;  %3240 = vmatpush2.bf16.msra.mxu0 %v5665_v5  ;;  %3281 = vmatpush1.bf16.msra.mxu1 %v5668_v9  ;;  %v5671_v20 = vld [vmem:[%s7575_s1 + $0x160] ss:$8 sps:$4 sm:$0xff]   ;;  %v5676_v10 = vld [vmem:[%s7575_s1 + $0x1b4] ss:$8 sps:$4 sm:$0xff]   ;;  %v5682_v24 = vld [vmem:[%s7575_s1 + $0x1a4] ss:$8 sps:$4 sm:$0xff]  }
 0x76a   :  { %v2519_v4 = vcombine.high %v2511_v28, %v2511_v28  ;;  %v2462_v7 = vpop.f32.mrf.mxu1  ;;  %v2621_v40 = vcombine.low %v2503_v16, %v2511_v28  ;;  %v5674_v16 = vld [vmem:[%s7575_s1 + $0x1b0] ss:$8 sps:$4 sm:$0xff]   ;;  %3241 = vmatprep.subr.bf16.mxu0 %v5673_v48  ;;  %v5679_v28 = vld [vmem:[%s7575_s1 + $0x154] ss:$8 sps:$4 sm:$0xff]   ;;  %3282 = vmatprep.subr.bf16.mxu1 %v5676_v10  ;;  %v2581_v35 = vld [vmem:[%s7575_s1 + $0x240] sm:$0x33] }
 0x76b   :  { %v2620_v38 = vcombine.low %v2612_v6, %v2619_v21  ;;  %v2527_v51 = vrot.slane %v2462_v7, %v5984_v23  ;;  %v2520_v50 = vcombine.high %v2518_v25, %v2518_v25  ;;  %v5677_v6 = vld [vmem:[%s7575_s1 + $0x150] ss:$8 sps:$4 sm:$0xff]   ;;  %v5680_v21 = vld [vmem:[%s7575_s1 + $0x1a0] ss:$8 sps:$4 sm:$0xff]   ;;  %v5388_v7 = vcombine.low %v2581_v35, %v2581_v35 }
 0x76c   :  { %v2622_v57 = vcombine.low %v2519_v4, %v2518_v25  ;;  %v2464_v53 = vpop.f32.mrf.mxu1  ;;  %v2629_v1 = vrot.slane %v2621_v40, %v5984_v23  ;;  %v5685_v25 = vld [vmem:[%s7575_s1 + $0x144] ss:$8 sps:$4 sm:$0xff]   ;;  %v5389_v4 = vcombine.high %v2581_v35, %v2581_v35 }
 0x76d   :  { %v6868_v12 = vpack.c.bf16 %v2620_v38, %v2604_v2  ;;  %v2528_v17 = vcombine.high %v2527_v51, %v2527_v51  ;;  %v2638_v45 = vcombine.low %v2520_v50, %v2527_v51  ;;  %3242 = vmatpush2.bf16.msra.mxu0 %v5671_v20  ;;  %3283 = vmatpush1.bf16.msra.mxu1 %v5674_v16  ;;  %v3214_v8 = vsel %vm3212_vm4, %v5388_v7, 0  ;;  %v5693_v2 = vld [vmem:[%s7575_s1 + $0x234] ss:$8 sps:$4 sm:$0xff]   ;;  %v5688_v38 = vld [vmem:[%s7575_s1 + $0x130] ss:$8 sps:$4 sm:$0xff]  }
 0x76e   :  { %v2636_v19 = vrot.slane %v2622_v57, %v5984_v23  ;;  %3243 = vmatprep.subr.bf16.mxu0 %v5679_v28  ;;  %3284 = vmatprep.subr.bf16.mxu1 %v5682_v24  ;;  %v5691_v51 = vld [vmem:[%s7575_s1 + $0x230] ss:$8 sps:$4 sm:$0xff]   ;;  %v5699_v40 = vld [vmem:[%s7575_s1 + $0x224] ss:$8 sps:$4 sm:$0xff]   ;;  %v5694_v57 = vld [vmem:[%s7575_s1 + $0x120] ss:$8 sps:$4 sm:$0xff]  }
 0x76f   :  { %v2652_v41 = vrot.slane %v2528_v17, %v5984_v23  ;;  %v2680_v63 = vrot.slane %v6868_v12, 1  ;;  %v2663_v34 = vshll.u32 %v6868_v12, 16  ;;  %v2645_v37 = vrot.slane %v2638_v45, %v5984_v23  ;;  %v5697_v50 = vld [vmem:[%s7575_s1 + $0x220] ss:$8 sps:$4 sm:$0xff]  }
 0x770   :  { %v2661_v36 = vshrl.u32 %v6868_v12, 16  ;;  %v2637_v59 = vcombine.low %v2629_v1, %v2636_v19  ;;  %v2696_v39 = vrot.slane %v6868_v12, 2 }
 0x771   :  { %2682 = vrot.lane.b32.xlu1 %v2680_v63, %s5828_s21  ;;  %v2665_v3 = vrot.slane %v2663_v34, 1  ;;  %v2653_v62 = vcombine.low %v2645_v37, %v2652_v41  ;;  %v2687_v42 = vrot.slane %v2663_v34, 2  ;;  %3244 = vmatpush2.bf16.msra.mxu0 %v5677_v6 }
 0x772   :  { %v2686_v55 = vrot.slane %v2661_v36, 1  ;;  %3285 = vmatpush1.bf16.msra.mxu1 %v5680_v21  ;;  %3245 = vmatprep.subr.bf16.mxu0 %v5685_v25 }
 0x773   :  { %v2666_v29 = vor.u32 %v2665_v3, %v2661_v36  ;;  %v6889_v44 = vpack.c.bf16 %v2653_v62, %v2637_v59  ;;  %5390 = vmatprep.subr.msk.bf16.mxu1 %vm3212_vm4, %v5389_v4 }
 0x774   :  { %v2688_v60 = vor.u32 %v2687_v42, %v2686_v55 }
 0x775   :  { %2674 = vrot.lane.b32.xlu0 %v2666_v29, %s5823_s16  ;;  %v2681_v61 = vrot.slane %v6889_v44, 1  ;;  %v2668_v0 = vshrl.u32 %v6889_v44, 16  ;;  %v2670_v58 = vshll.u32 %v6889_v44, 16  ;;  %v2697_v43 = vrot.slane %v6889_v44, 2  ;;  %3246 = vmatpush2.bf16.msra.mxu0 %v5683_v13 }
 0x776   :  { %3297 = vmatpush2.bf16.msra.mxu1 %v3214_v8  ;;  %3247 = vmatprep.subr.bf16.mxu0 %v5690_v52 }
 0x777   :  { %2684 = vrot.lane.b32.xlu1 %v2681_v61, %s5828_s21  ;;  %v2672_v30 = vrot.slane %v2670_v58, 1  ;;  %v2689_v14 = vrot.slane %v2668_v0, 1  ;;  %v2690_v22 = vrot.slane %v2670_v58, 2  ;;  %3298 = vmatprep.subr.bf16.mxu1 %v5693_v2 }
 0x779   :  { %v2673_v11 = vor.u32 %v2672_v30, %v2668_v0  ;;  %v2691_v15 = vor.u32 %v2690_v22, %v2689_v14  ;;  %3248 = vmatpush2.bf16.msra.mxu0 %v5688_v38 }
 0x77a   :  { %3299 = vmatpush2.bf16.msra.mxu1 %v5691_v51  ;;  %3249 = vmatprep.subr.bf16.mxu0 %v5696_v27 }
 0x77b   :  { %2700 = vrot.lane.b32.xlu1 %v2697_v43, %s5791_s26  ;;  %2676 = vrot.lane.b32.xlu0 %v2673_v11, %s5823_s16 }
 0x77c   :  { %3300 = vmatprep.subr.bf16.mxu1 %v5699_v40 }
 0x77d   :  { %3250 = vmatpush2.bf16.msra.mxu0 %v5694_v57 }
 0x77e   :  { %3301 = vmatpush2.bf16.msra.mxu1 %v5697_v50 }
 0x77f   :  { %2698 = vrot.lane.b32.xlu1 %v2696_v39, %s5791_s26  ;;  %2694 = vrot.lane.b32.xlu0 %v2691_v15, %s7609_s24 }
 0x780   :  { %4433 = vmatprep.subr.bf16.mxu1 %v5826_v46 }
 0x783   :  { %2692 = vrot.lane.b32.xlu0 %v2688_v60, %s7609_s24 }
 0x7e3   :  { %v2683_v53 = vpop.permute.xlu1 %2682 }
 0x7e7   :  { %v2675_v17 = vpop.permute.xlu0 %2674 }
 0x7e8   :  { %v2707_v54 = vsel %vm604_vm8, %v2675_v17, %v2683_v53  ;;  %v2703_v58 = vsel %vm834_vm2, %v6868_v12, %v2675_v17 }
 0x7e9   :  { %v2685_v19 = vpop.permute.xlu1 %2684 }
 0x7ed   :  { %v2677_v45 = vpop.permute.xlu0 %2676  ;;  %v2701_v41 = vpop.permute.xlu1 %2700 }
 0x7ee   :  { %v2709_v63 = vsel %vm604_vm8, %v2677_v45, %v2685_v19  ;;  %v2705_v31 = vsel %vm834_vm2, %v6889_v44, %v2677_v45  ;;  %vm7629_vm8 = vcmask 293888  }
 0x7ef   :  { %vm7630_vm11 = vmmov %vm7629_vm8 }
 0x7f1   :  { %v2695_v34 = vpop.permute.xlu0 %2694  ;;  %v2699_v59 = vpop.permute.xlu1 %2698 }
 0x7f2   :  { %v2714_v1 = vsel %vm2710_vm9, %v2709_v63, %v2695_v34  ;;  %v2719_v37 = vsel %vm2715_vm10, %v2695_v34, %v2701_v41 }
 0x7f3   :  { %v2784_v47 = vcombine.low %v2705_v31, %v2714_v1  ;;  %v2785_v49 = vcombine.high %v2705_v31, %v2714_v1  ;;  %v2786_v36 = vcombine.low %v2719_v37, %v2701_v41  ;;  %v2787_v3 = vcombine.high %v2719_v37, %v2701_v41 }
 0x7f5   :  { %v2794_v62 = vrot.slane %v2784_v47, %v6480_v56  ;;  %v2801_v29 = vrot.slane %v2785_v49, %v6480_v56  ;;  %v2808_v61 = vrot.slane %v2786_v36, %v6480_v56  ;;  %v2815_v0 = vrot.slane %v2787_v3, %v6480_v56  ;;  %v2693_v44 = vpop.permute.xlu0 %2692 }
 0x7f6   :  { %v2712_v30 = vsel %vm2710_vm9, %v2707_v54, %v2693_v44  ;;  %v2717_v43 = vsel %vm2715_vm10, %v2693_v44, %v2699_v59  ;;  %v5332_v54 = vld [vmem:[%s7576_s2 + $0x3] ss:$8 sm:$0x3]  ;;  %vm7637_vm9 = vcmask 523264  }
 0x7f7   :  { %v2816_v11 = vcombine.low %v2794_v62, %v2808_v61  ;;  %v2817_v14 = vcombine.high %v2794_v62, %v2808_v61  ;;  %v2818_v22 = vcombine.low %v2801_v29, %v2815_v0  ;;  %v2726_v39 = vcombine.low %v2703_v58, %v2712_v30 }
 0x7f8   :  { %v2727_v55 = vcombine.high %v2703_v58, %v2712_v30  ;;  %v2728_v42 = vcombine.low %v2717_v43, %v2699_v59  ;;  %v2729_v15 = vcombine.high %v2717_v43, %v2699_v59  ;;  %v3386_v59 = vrot.slane %v5332_v54, %v6022_v32 }
 0x7f9   :  { %v2825_v5 = vrot.slane %v2816_v11, %v6480_v56  ;;  %v2839_v18 = vrot.slane %v2817_v14, %v6480_v56  ;;  %v2736_v9 = vrot.slane %v2726_v39, %v6480_v56  ;;  %v2832_v60 = vrot.slane %v2818_v22, %v6480_v56 }
 0x7fa   :  { %v2743_v26 = vrot.slane %v2727_v55, %v6480_v56  ;;  %v2750_v12 = vrot.slane %v2728_v42, %v6480_v56  ;;  %v2757_v48 = vrot.slane %v2729_v15, %v6480_v56  ;;  %v3390_v62 = vrot.slane %v5332_v54, %v6025_v33 }
 0x7fb   :  { %v2840_v20 = vcombine.high %v2825_v5, %v2825_v5  ;;  %v2841_v16 = vcombine.high %v2839_v18, %v2839_v18 }
 0x7fc   :  { %v2758_v10 = vcombine.low %v2736_v9, %v2750_v12  ;;  %v2759_v28 = vcombine.high %v2736_v9, %v2750_v12  ;;  %v2760_v24 = vcombine.low %v2743_v26, %v2757_v48  ;;  %v3391_v29 = vcombine.low %v3386_v59, %v3390_v62 }
 0x7fd   :  { %v2910_v35 = vcombine.low %v2841_v16, %v2832_v60  ;;  %v2845_v6 = vcombine.low %v2839_v18, %v2840_v20  ;;  %v3392_v61 = vcombine.high %v3386_v59, %v3390_v62 }
 0x7fe   :  { %v2767_v21 = vrot.slane %v2758_v10, %v6480_v56  ;;  %v2774_v25 = vrot.slane %v2760_v24, %v6480_v56  ;;  %v2781_v4 = vrot.slane %v2759_v28, %v6480_v56  ;;  %v3399_v43 = vrot.slane %v3391_v29, %v5984_v23 }
 0x7ff   :  { %v2917_v7 = vrot.slane %v2910_v35, %v6480_v56  ;;  %v2873_v40 = vrot.slane %v2845_v6, %v6480_v56  ;;  %v3406_v22 = vrot.slane %v3392_v61, %v5984_v23 }
 0x800   :  { %v2842_v13 = vcombine.low %v2767_v21, %v2781_v4  ;;  %v5335_v8 = vcombine.high %v2767_v21, %v2781_v4  ;;  %v2844_v52 = vcombine.low %v2774_v25, %v2825_v5  ;;  %v3407_v5 = vcombine.high %v3399_v43, %v3399_v43 }
 0x801   :  { %v2918_v2 = vcombine.high %v2917_v7, %v2917_v7  ;;  %v2925_v36 = vrot.slane %v2917_v7, %v6480_v56  ;;  %v3408_v48 = vcombine.high %v3406_v22, %v3406_v22 }
 0x802   :  { %v2852_v38 = vrot.slane %v2842_v13, %v6480_v56  ;;  %v2859_v51 = vrot.slane %v5335_v8, %v6480_v56  ;;  %v2866_v27 = vrot.slane %v2844_v52, %v6480_v56 }
 0x803   :  { %v2932_v19 = vrot.slane %v2918_v2, %v6480_v56  ;;  %v2933_v3 = vcombine.high %v2925_v36, %v2925_v36 }
 0x804   :  { %v2874_v57 = vcombine.low %v2852_v38, %v2859_v51  ;;  %v2875_v50 = vcombine.high %v2852_v38, %v2859_v51  ;;  %v2876_v53 = vcombine.low %v2866_v27, %v2873_v40  ;;  %v2877_v17 = vcombine.high %v2866_v27, %v2873_v40 }
 0x805   :  { %v2934_v49 = vcombine.high %v2932_v19, %v2932_v19 }
 0x806   :  { %v2891_v45 = vrot.slane %v2875_v50, %v6480_v56  ;;  %v2905_v41 = vrot.slane %v2877_v17, %v6480_v56  ;;  %v2884_v63 = vrot.slane %v2874_v57, %v6480_v56  ;;  %v2898_v34 = vrot.slane %v2876_v53, %v6480_v56 }
 0x808   :  { %v2908_v31 = vcombine.low %v2891_v45, %v2905_v41  ;;  %v2909_v1 = vcombine.high %v2891_v45, %v2905_v41  ;;  %v2906_v37 = vcombine.low %v2884_v63, %v2898_v34  ;;  %v2907_v47 = vcombine.high %v2884_v63, %v2898_v34 }
 0x80a   :  { %3251 = vmatprep.mubr.bf16.mxu0 %v2908_v31  ;;  %5391 = vmatprep.mubr.msk.bf16.mxu1 %vm7629_vm8, %v2909_v1  ;;  %vm3586_vm8 = vcmask 916480  }
 0x80b   :  { %3252 = vmatmul.mubr.bf16.vlgmr.msra.gmra.mxu0 %v2906_v37  ;;  %3303 = vmatmul.mubr.bf16.vlgmr.msra.gmra.mxu1 %v2907_v47 }
 0x80c   :  { %3261 = vmatprep.mubr.bf16.mxu0 %v2932_v19  ;;  %5392 = vmatprep.mubr.msk.bf16.mxu1 %vm7630_vm11, %v2934_v49  ;;  %vm7638_vm11 = vmmov %vm7631_vm5 }
 0x813   :  { %3262 = vmatmul.mubr.bf16.gmra.mxu0 %v2925_v36  ;;  %3313 = vmatmul.mubr.bf16.gmra.mxu1 %v2933_v3 }
 0x814   :  { %4363 = vmatprep.mubr.bf16.mxu0 %v5826_v46 }
 0x8cb   :  { %v3253_v0 = vpop.f32.mrf.mxu0  ;;  %v3304_v44 = vpop.f32.mrf.mxu1 }
 0x8cc   :  { %v3305_v11 = vadd.f32 %v3304_v44, %v3253_v0 }
 0x8cd   :  { %v3255_v58 = vpop.f32.mrf.mxu0  ;;  %v3306_v30 = vpop.f32.mrf.mxu1 }
 0x8ce   :  { %v3307_v14 = vadd.f32 %v3306_v30, %v3255_v58 }
 0x8cf   :  { %v3257_v39 = vpop.f32.mrf.mxu0  ;;  %v3308_v55 = vpop.f32.mrf.mxu1 }
 0x8d0   :  { %v3327_v42 = vcombine.low %v3305_v11, %v3307_v14  ;;  %v3328_v15 = vcombine.high %v3305_v11, %v3307_v14  ;;  %v3309_v20 = vadd.f32 %v3308_v55, %v3257_v39 }
 0x8d1   :  { %v3259_v18 = vpop.f32.mrf.mxu0  ;;  %v3310_v9 = vpop.f32.mrf.mxu1 }
 0x8d2   :  { %v3335_v26 = vrot.slane %v3327_v42, %v5984_v23  ;;  %v3342_v12 = vrot.slane %v3328_v15, %v5984_v23  ;;  %v3311_v60 = vadd.f32 %v3310_v9, %v3259_v18 }
 0x8d3   :  { %v3263_v16 = vpop.f32.mrf.mxu0  ;;  %v3314_v10 = vpop.f32.mrf.mxu1 }
 0x8d4   :  { %v3343_v28 = vcombine.high %v3335_v26, %v3335_v26  ;;  %v3344_v24 = vcombine.high %v3342_v12, %v3342_v12  ;;  %v7021_v35 = vadd.f32 %v3399_v43, %v3335_v26  ;;  %v7023_v6 = vadd.f32 %v3406_v22, %v3342_v12 }
 0x8d5   :  { %v3345_v21 = vcombine.low %v3309_v20, %v3311_v60  ;;  %v3346_v25 = vcombine.high %v3309_v20, %v3311_v60  ;;  %v3265_v4 = vpop.f32.mrf.mxu0  ;;  %v3316_v7 = vpop.f32.mrf.mxu1  ;;  %v3315_v52 = vadd.f32 %v3314_v10, %v3263_v16 }
 0x8d6   :  { %v7025_v13 = vadd.f32 %v3407_v5, %v3343_v28  ;;  %v7027_v8 = vadd.f32 %v3408_v48, %v3344_v24  ;;  %v3317_v2 = vadd.f32 %v3316_v7, %v3265_v4 }
 0x8d7   :  { %v3353_v38 = vrot.slane %v3345_v21, %v5984_v23  ;;  %v3360_v51 = vrot.slane %v3346_v25, %v5984_v23  ;;  %v3267_v27 = vpop.f32.mrf.mxu0  ;;  %v3318_v40 = vpop.f32.mrf.mxu1 }
 0x8d8   :  { %v3433_v57 = vcombine.low %v7021_v35, %v7025_v13  ;;  %v3434_v50 = vcombine.low %v7023_v6, %v7027_v8  ;;  %v3363_v53 = vcombine.low %v3315_v52, %v3317_v2 }
 0x8d9   :  { %v3361_v17 = vcombine.high %v3353_v38, %v3353_v38  ;;  %v3362_v19 = vcombine.high %v3360_v51, %v3360_v51  ;;  %v7035_v45 = vadd.f32 %v3399_v43, %v3353_v38  ;;  %v3268_v41 = vpop.f32.mrf.mxu0  ;;  %v3319_v63 = vpop.f32.mrf.mxu1  ;;  %v7042_v47 = vadd.f32 %v3407_v5, %v3360_v51 }
 0x8da   :  { %v3370_v34 = vrot.slane %v3363_v53, %v5984_v23  ;;  %v3441_v31 = vrot.slane %v3433_v57, %v5984_v23  ;;  %v3448_v1 = vrot.slane %v3434_v50, %v5984_v23 }
 0x8db   :  { %v7040_v37 = vadd.f32 %v3399_v43, %v3361_v17  ;;  %v7044_v49 = vadd.f32 %v3406_v22, %v3362_v19  ;;  %v3457_v36 = vrot.slane %v7035_v45, %v5984_v23 }
 0x8dc   :  { %v3371_v3 = vcombine.high %v3370_v34, %v3370_v34  ;;  %v7048_v54 = vadd.f32 %v3408_v48, %v3370_v34  ;;  %v3450_v61 = vcombine.high %v3441_v31, %v3448_v1  ;;  %v3449_v11 = vcombine.low %v3441_v31, %v3448_v1 }
 0x8dd   :  { %v3459_v59 = vcombine.low %v7040_v37, %v7042_v47  ;;  %v3458_v0 = vcombine.high %v3457_v36, %v3457_v36  ;;  %v3497_v14 = vsel %vm3212_vm4, %v3457_v36, 0.0 }
 0x8de   :  { %v7052_v62 = vadd.f32 %v3399_v43, %v3371_v3  ;;  %v3460_v29 = vcombine.low %v7044_v49, %v7048_v54  ;;  %v3494_v42 = vsel %vm7631_vm5, %v3450_v61, 0.0 }
 0x8df   :  { %v3467_v44 = vrot.slane %v3459_v59, %v5984_v23  ;;  %v3501_v5 = vsel %vm3500_vm3, %v3458_v0, 0.0 }
 0x8e0   :  { %v3474_v58 = vrot.slane %v3460_v29, %v5984_v23  ;;  %v3483_v30 = vrot.slane %v7052_v62, %v5984_v23 }
 0x8e2   :  { %v3475_v22 = vcombine.low %v3467_v44, %v3474_v58  ;;  %v3476_v39 = vcombine.high %v3467_v44, %v3474_v58  ;;  %v3484_v43 = vcombine.high %v3483_v30, %v3483_v30  ;;  %v3498_v55 = vsel %vm3212_vm4, %v3483_v30, 0.0 }
 0x8e3   :  { %v3499_v15 = vadd.f32 %v3498_v55, %v3497_v14 }
 0x8e4   :  { %v3493_v18 = vadd.f32 %v3475_v22, %v3449_v11  ;;  %v3495_v9 = vsel %vm7632_vm7, %v3476_v39, 0.0  ;;  %v3502_v26 = vsel %vm3500_vm3, %v3484_v43, 0.0  ;;  %vm7639_vm7 = vmmov %vm7631_vm5 }
 0x8e5   :  { %v3496_v12 = vadd.f32 %v3495_v9, %v3494_v42  ;;  %v3503_v48 = vadd.f32 %v3502_v26, %v3501_v5  ;;  %v3504_v60 = vsel %vm3212_vm4, %v3499_v15, 0.0 }
 0x8e6   :  { %v3505_v20 = vadd.f32 %v3504_v60, %v3493_v18 }
 0x8e7   :  { %v3512_v16 = vsel %vm7633_vm12, %v3496_v12, 0.0  ;;  %v3513_v10 = vsel %vm3500_vm3, %v3503_v48, 0.0  ;;  %vm7641_vm12 = vmmov %vm7636_vm1 }
 0x8e8   :  { %v3506_v28 = vrot.slane %v3505_v20, 4  ;;  %v3514_v24 = vadd.f32 %v3513_v10, %v3512_v16 }
 0x8ea   :  { %v3507_v21 = vadd.f32 %v3506_v28, %v3505_v20  ;;  %v3515_v25 = vrot.slane %v3514_v24, 4 }
 0x8ec   :  { %v3508_v4 = vrot.slane %v3507_v21, 2  ;;  %v3516_v52 = vadd.f32 %v3515_v25, %v3514_v24 }
 0x8ee   :  { %v3509_v7 = vadd.f32 %v3508_v4, %v3507_v21  ;;  %v3517_v51 = vrot.slane %v3516_v52, 2 }
 0x8f0   :  { %v3510_v2 = vrot.slane %v3509_v7, 1  ;;  %v3518_v27 = vadd.f32 %v3517_v51, %v3516_v52 }
 0x8f2   :  { %v3511_v38 = vadd.f32 %v3510_v2, %v3509_v7  ;;  %v3519_v40 = vrot.slane %v3518_v27, 1 }
 0x8f4   :  { %3526 = vrot.lane.b32.xlu1 %v3511_v38, %s5782_s11  ;;  %3522 = vrot.lane.b32.xlu0 %v3511_v38, %s7611_s27  ;;  %v3520_v57 = vadd.f32 %v3519_v40, %v3518_v27 }
 0x8f8   :  { %3534 = vrot.lane.b32.xlu1 %v3511_v38, %s7634_s22  ;;  %3530 = vrot.lane.b32.xlu0 %v3511_v38, %s5791_s26 }
 0x8fc   :  { %3542 = vrot.lane.b32.xlu1 %v3511_v38, %s5783_s12  ;;  %3538 = vrot.lane.b32.xlu0 %v3511_v38, %s7620_s9 }
 0x900   :  { %3546 = vrot.lane.b32.xlu0 %v3511_v38, %s5829_s23  ;;  %3552 = vrot.lane.b32.xlu1 %v3520_v57, %s7611_s27 }
 0x966   :  { %v3527_v50 = vpop.permute.xlu1 %3526  ;;  %v3523_v53 = vpop.permute.xlu0 %3522 }
 0x967   :  { %v3525_v17 = vadd.f32 %v3523_v53, %v3511_v38 }
 0x969   :  { %v3529_v19 = vadd.f32 %v3527_v50, %v3525_v17 }
 0x96a   :  { %v3535_v41 = vpop.permute.xlu1 %3534  ;;  %v3531_v63 = vpop.permute.xlu0 %3530 }
 0x96b   :  { %v3533_v34 = vadd.f32 %v3531_v63, %v3529_v19 }
 0x96d   :  { %v3537_v31 = vadd.f32 %v3535_v41, %v3533_v34 }
 0x96e   :  { %v3539_v1 = vpop.permute.xlu0 %3538  ;;  %v3543_v3 = vpop.permute.xlu1 %3542 }
 0x96f   :  { %v3541_v36 = vadd.f32 %v3539_v1, %v3537_v31 }
 0x971   :  { %v3545_v59 = vadd.f32 %v3543_v3, %v3541_v36 }
 0x972   :  { %v3547_v29 = vpop.permute.xlu0 %3546  ;;  %v3553_v44 = vpop.permute.xlu1 %3552 }
 0x973   :  { %v3549_v61 = vadd.f32 %v3547_v29, %v3545_v59 }
 0x975   :  { %v3550_v0 = vadd.f32 %v3549_v61, %v3520_v57 }
 0x977   :  { %v3555_v58 = vadd.f32 %v3553_v44, %v3550_v0 }
 0x979   :  { %v3556_v30 = vmul.f32 0.005, %v3555_v58 }
 0x97b   :  { %3561 = vrot.lane.b32.xlu1 %v3556_v30, %s5783_s12  ;;  %3558 = vrot.lane.b32.xlu0 %v3556_v30, %s5829_s23 }
 0x97f   :  { %3567 = vrot.lane.b32.xlu1 %v3556_v30, %s7634_s22  ;;  %3564 = vrot.lane.b32.xlu0 %v3556_v30, %s7620_s9 }
 0x983   :  { %3573 = vrot.lane.b32.xlu1 %v3556_v30, %s5782_s11  ;;  %3570 = vrot.lane.b32.xlu0 %v3556_v30, %s5791_s26 }
 0x987   :  { %3576 = vrot.lane.b32.xlu0 %v3556_v30, %s7611_s27 }
 0x9ed   :  { %v3562_v11 = vpop.permute.xlu1 %3561  ;;  %v3559_v14 = vpop.permute.xlu0 %3558 }
 0x9ee   :  { %v3580_v22 = vsel %vm3579_vm14, %v3556_v30, %v3559_v14 }
 0x9ef   :  { %v3581_v43 = vsel %vm7635_vm15, %v3580_v22, %v3562_v11  ;;  %v3595_v60 = vrot.slane %v3580_v22, %v6022_v32  ;;  %vm7642_vm15 = vmmov %vm7637_vm9 }
 0x9f1   :  { %v3568_v39 = vpop.permute.xlu1 %3567  ;;  %v3565_v55 = vpop.permute.xlu0 %3564 }
 0x9f2   :  { %v3582_v42 = vsel %vm7636_vm1, %v3581_v43, %v3565_v55  ;;  %vm3940_vm1 = vcmask 1042434  }
 0x9f3   :  { %v3583_v15 = vsel %vm7637_vm9, %v3582_v42, %v3568_v39  ;;  %vm3942_vm9 = vcmask 1044484  }
 0x9f5   :  { %v3571_v5 = vpop.permute.xlu0 %3570  ;;  %v3574_v18 = vpop.permute.xlu1 %3573 }
 0x9f6   :  { %v3584_v9 = vsel %vm2715_vm10, %v3583_v15, %v3571_v5 }
 0x9f7   :  { %v3585_v26 = vsel %vm159_vm6, %v3584_v9, %v3574_v18 }
 0x9f9   :  { %v3577_v12 = vpop.permute.xlu0 %3576 }
 0x9fa   :  { %v3587_v48 = vsel %vm3586_vm8, %v3585_v26, %v3577_v12 }
 0x9fb   :  { %v3591_v20 = vrot.slane %v3587_v48, %v6022_v32 }
 0x9fd   :  { %v3598_v16 = vcombine.low %v3591_v20, %v3595_v60  ;;  %v3599_v10 = vcombine.high %v3591_v20, %v3595_v60 }
 0x9ff   :  { %v3606_v28 = vrot.slane %v3598_v16, %v5984_v23  ;;  %v3613_v24 = vrot.slane %v3599_v10, %v5984_v23 }
 0xa01   :  { %v3614_v21 = vcombine.high %v3606_v28, %v3606_v28  ;;  %v3615_v25 = vcombine.high %v3613_v24, %v3613_v24  ;;  %v7096_v4 = vsub.f32 %v7021_v35, %v3606_v28  ;;  %v7099_v7 = vsub.f32 %v7023_v6, %v3613_v24 }
 0xa02   :  { %v7102_v52 = vsub.f32 %v7035_v45, %v3606_v28  ;;  %v7105_v2 = vsub.f32 %v7040_v37, %v3606_v28  ;;  %v7108_v38 = vsub.f32 %v7044_v49, %v3613_v24  ;;  %v7111_v51 = vsub.f32 %v7052_v62, %v3606_v28 }
 0xa03   :  { %v7114_v27 = vsub.f32 %v7025_v13, %v3614_v21  ;;  %v7117_v35 = vsub.f32 %v7027_v8, %v3615_v25  ;;  %v7120_v6 = vsub.f32 %v7042_v47, %v3614_v21  ;;  %v7123_v45 = vsub.f32 %v7048_v54, %v3615_v25 }
 0xa04   :  { %v3630_v37 = vmul.f32 %v7096_v4, %v7096_v4  ;;  %v3632_v49 = vmul.f32 %v7099_v7, %v7099_v7  ;;  %v3634_v62 = vmul.f32 %v7102_v52, %v7102_v52  ;;  %v3635_v47 = vmul.f32 %v7105_v2, %v7105_v2 }
 0xa05   :  { %v3631_v13 = vmul.f32 %v7114_v27, %v7114_v27  ;;  %v3633_v8 = vmul.f32 %v7117_v35, %v7117_v35  ;;  %v3636_v54 = vmul.f32 %v7120_v6, %v7120_v6  ;;  %v3637_v40 = vmul.f32 %v7108_v38, %v7108_v38 }
 0xa06   :  { %v3638_v57 = vmul.f32 %v7123_v45, %v7123_v45  ;;  %v3639_v50 = vmul.f32 %v7111_v51, %v7111_v51  ;;  %v3674_v53 = vrot.slane %v3634_v62, %v5984_v23 }
 0xa07   :  { %v3650_v17 = vcombine.low %v3630_v37, %v3631_v13  ;;  %v3651_v19 = vcombine.low %v3632_v49, %v3633_v8  ;;  %v3676_v41 = vcombine.low %v3635_v47, %v3636_v54 }
 0xa08   :  { %v3677_v63 = vcombine.low %v3637_v40, %v3638_v57  ;;  %v3700_v34 = vrot.slane %v3639_v50, %v5984_v23  ;;  %v3714_v31 = vsel %vm3212_vm4, %v3674_v53, 0.0  ;;  %v3675_v1 = vcombine.high %v3674_v53, %v3674_v53 }
 0xa09   :  { %v3658_v36 = vrot.slane %v3650_v17, %v5984_v23  ;;  %v3665_v3 = vrot.slane %v3651_v19, %v5984_v23  ;;  %v3684_v59 = vrot.slane %v3676_v41, %v5984_v23 }
 0xa0a   :  { %v3691_v29 = vrot.slane %v3677_v63, %v5984_v23  ;;  %v3715_v61 = vsel %vm3212_vm4, %v3700_v34, 0.0  ;;  %v3701_v0 = vcombine.high %v3700_v34, %v3700_v34  ;;  %v3717_v44 = vsel %vm3500_vm3, %v3675_v1, 0.0 }
 0xa0b   :  { %v3666_v58 = vcombine.low %v3658_v36, %v3665_v3  ;;  %v3667_v30 = vcombine.high %v3658_v36, %v3665_v3  ;;  %v3716_v11 = vadd.f32 %v3715_v61, %v3714_v31 }
 0xa0c   :  { %v3692_v14 = vcombine.low %v3684_v59, %v3691_v29  ;;  %v3693_v22 = vcombine.high %v3684_v59, %v3691_v29  ;;  %v3718_v39 = vsel %vm3500_vm3, %v3701_v0, 0.0 }
 0xa0d   :  { %v3711_v43 = vsel %vm7638_vm11, %v3667_v30, 0.0  ;;  %v3719_v55 = vadd.f32 %v3718_v39, %v3717_v44  ;;  %v3720_v5 = vsel %vm3212_vm4, %v3716_v11, 0.0  ;;  %v5333_v39 = vld [vmem:[%s7576_s2 + $0x4] ss:$8 sm:$0x3]  ;;  %vm3944_vm11 = vcmask 1046534  }
 0xa0e   :  { %v3710_v42 = vadd.f32 %v3692_v14, %v3666_v58  ;;  %v3712_v15 = vsel %vm7631_vm5, %v3693_v22, 0.0 }
 0xa0f   :  { %v3713_v18 = vadd.f32 %v3712_v15, %v3711_v43  ;;  %v3729_v12 = vsel %vm3500_vm3, %v3719_v55, 0.0  ;;  %vm7640_vm3 = vmmov %vm7631_vm5  ;;  %v5334_v55 = vld [vmem:[%s7576_s2 + $0x5] ss:$8 sm:$0x3] }
 0xa10   :  { %v3721_v9 = vadd.f32 %v3720_v5, %v3710_v42  ;;  %v3812_v42 = vrot.slane %v5333_v39, %v6025_v33 }
 0xa11   :  { %v3728_v26 = vsel %vm7639_vm7, %v3713_v18, 0.0 }
 0xa12   :  { %v3722_v48 = vrot.slane %v3721_v9, 4  ;;  %v3730_v60 = vadd.f32 %v3729_v12, %v3728_v26  ;;  %v3863_v26 = vrot.slane %v5334_v55, %v6022_v32  ;;  %v3867_v12 = vrot.slane %v5334_v55, %v6025_v33 }
 0xa14   :  { %v3723_v20 = vadd.f32 %v3722_v48, %v3721_v9  ;;  %v3731_v16 = vrot.slane %v3730_v60, 4  ;;  %v3808_v48 = vrot.slane %v5333_v39, %v6022_v32 }
 0xa16   :  { %v3724_v10 = vrot.slane %v3723_v20, 2  ;;  %v3732_v24 = vadd.f32 %v3731_v16, %v3730_v60 }
 0xa18   :  { %v3725_v28 = vadd.f32 %v3724_v10, %v3723_v20  ;;  %v3733_v37 = vrot.slane %v3732_v24, 2 }
 0xa1a   :  { %v3726_v21 = vrot.slane %v3725_v28, 1  ;;  %v3734_v49 = vadd.f32 %v3733_v37, %v3732_v24  ;;  %v3869_v24 = vcombine.high %v3863_v26, %v3867_v12 }
 0xa1c   :  { %v3727_v25 = vadd.f32 %v3726_v21, %v3725_v28  ;;  %v3735_v62 = vrot.slane %v3734_v49, 1  ;;  %v3868_v28 = vcombine.low %v3863_v26, %v3867_v12 }
 0xa1e   :  { %3742 = vrot.lane.b32.xlu0 %v3727_v25, %s5782_s11  ;;  %3738 = vrot.lane.b32.xlu1 %v3727_v25, %s7611_s27  ;;  %v3736_v13 = vadd.f32 %v3735_v62, %v3734_v49  ;;  %v3876_v49 = vrot.slane %v3868_v28, %v5984_v23  ;;  %v3883_v62 = vrot.slane %v3869_v24, %v5984_v23 }
 0xa22   :  { %3750 = vrot.lane.b32.xlu0 %v3727_v25, %s7634_s22  ;;  %3746 = vrot.lane.b32.xlu1 %v3727_v25, %s5791_s26 }
 0xa26   :  { %3758 = vrot.lane.b32.xlu0 %v3727_v25, %s5783_s12  ;;  %3754 = vrot.lane.b32.xlu1 %v3727_v25, %s7620_s9 }
 0xa2a   :  { %3768 = vrot.lane.b32.xlu0 %v3736_v13, %s7611_s27  ;;  %3762 = vrot.lane.b32.xlu1 %v3727_v25, %s5829_s23 }
 0xa90   :  { %v3743_v8 = vpop.permute.xlu0 %3742  ;;  %v3739_v47 = vpop.permute.xlu1 %3738 }
 0xa91   :  { %v3741_v54 = vadd.f32 %v3739_v47, %v3727_v25 }
 0xa93   :  { %v3745_v40 = vadd.f32 %v3743_v8, %v3741_v54  ;;  %v3884_v54 = vcombine.high %v3876_v49, %v3876_v49 }
 0xa94   :  { %v3751_v57 = vpop.permute.xlu0 %3750  ;;  %v3747_v50 = vpop.permute.xlu1 %3746 }
 0xa95   :  { %v3749_v53 = vadd.f32 %v3747_v50, %v3745_v40  ;;  %v3885_v40 = vcombine.high %v3883_v62, %v3883_v62 }
 0xa97   :  { %v3753_v17 = vadd.f32 %v3751_v57, %v3749_v53 }
 0xa98   :  { %v3755_v19 = vpop.permute.xlu1 %3754  ;;  %v3759_v63 = vpop.permute.xlu0 %3758 }
 0xa99   :  { %v3757_v41 = vadd.f32 %v3755_v19, %v3753_v17 }
 0xa9b   :  { %v3761_v34 = vadd.f32 %v3759_v63, %v3757_v41 }
 0xa9c   :  { %v3763_v31 = vpop.permute.xlu1 %3762  ;;  %v3769_v3 = vpop.permute.xlu0 %3768 }
 0xa9d   :  { %v3765_v1 = vadd.f32 %v3763_v31, %v3761_v34 }
 0xa9f   :  { %v3766_v36 = vadd.f32 %v3765_v1, %v3736_v13 }
 0xaa1   :  { %v3771_v59 = vadd.f32 %v3769_v3, %v3766_v36 }
 0xaa3   :  { %v3772_v29 = vmul.f32 0.005, %v3771_v59 }
 0xaa5   :  { %v3773_v61 = vadd.f32 1e-05, %v3772_v29 }
 0xaa7   :  { %5751 = vrsqrt.f32 %v3773_v61 }
 0xab4   :  { %v5752_v0 = vpop.eup %5751 }
 0xab5   :  { %3779 = vrot.lane.b32.xlu0 %v5752_v0, %s5783_s12  ;;  %3776 = vrot.lane.b32.xlu1 %v5752_v0, %s5829_s23 }
 0xab9   :  { %3785 = vrot.lane.b32.xlu0 %v5752_v0, %s7634_s22  ;;  %3782 = vrot.lane.b32.xlu1 %v5752_v0, %s7620_s9 }
 0xabd   :  { %3791 = vrot.lane.b32.xlu0 %v5752_v0, %s5782_s11  ;;  %3788 = vrot.lane.b32.xlu1 %v5752_v0, %s5791_s26 }
 0xac1   :  { %3794 = vrot.lane.b32.xlu1 %v5752_v0, %s7611_s27 }
 0xb27   :  { %v3780_v44 = vpop.permute.xlu0 %3779  ;;  %v3777_v58 = vpop.permute.xlu1 %3776 }
 0xb28   :  { %v3797_v30 = vsel %vm3579_vm14, %v5752_v0, %v3777_v58 }
 0xb29   :  { %v3798_v14 = vsel %vm7640_vm3, %v3797_v30, %v3780_v44  ;;  %v3816_v60 = vmul.f32 %v3812_v42, %v3797_v30 }
 0xb2b   :  { %v3786_v11 = vpop.permute.xlu0 %3785  ;;  %v3783_v22 = vpop.permute.xlu1 %3782  ;;  %v3824_v25 = vrot.slane %v3816_v60, %v6022_v32 }
 0xb2c   :  { %v3799_v43 = vsel %vm7641_vm12, %v3798_v14, %v3783_v22  ;;  %vm7646_vm12 = vmmov %vm7642_vm15 }
 0xb2d   :  { %v3800_v15 = vsel %vm7642_vm15, %v3799_v43, %v3786_v11  ;;  %vm7647_vm15 = vmmov %vm7646_vm12 }
 0xb2f   :  { %v3789_v5 = vpop.permute.xlu1 %3788  ;;  %v3792_v18 = vpop.permute.xlu0 %3791 }
 0xb30   :  { %v3801_v9 = vsel %vm2715_vm10, %v3800_v15, %v3789_v5 }
 0xb31   :  { %v3802_v20 = vsel %vm159_vm6, %v3801_v9, %v3792_v18  ;;  %vm3941_vm6 = vmor %vm2413_vm0, %vm3940_vm1  ;;  %vm5252_vm1 = vcmask 74752  }
 0xb32   :  { %vm3943_vm5 = vmor %vm3941_vm6, %vm3942_vm9 }
 0xb33   :  { %v3795_v16 = vpop.permute.xlu1 %3794  ;;  %vm7213_vm7 = vmor %vm3943_vm5, %vm3944_vm11 }
 0xb34   :  { %v3803_v10 = vsel %vm3586_vm8, %v3802_v20, %v3795_v16 }
 0xb35   :  { %v3815_v21 = vmul.f32 %v3808_v48, %v3803_v10 }
 0xb37   :  { %v3820_v37 = vrot.slane %v3815_v21, %v6022_v32 }
 0xb39   :  { %v3827_v33 = vcombine.low %v3820_v37, %v3824_v25  ;;  %v3828_v13 = vcombine.high %v3820_v37, %v3824_v25 }
 0xb3b   :  { %v3835_v8 = vrot.slane %v3827_v33, %v5984_v23  ;;  %v3842_v47 = vrot.slane %v3828_v13, %v5984_v23 }
 0xb3d   :  { %v3844_v57 = vcombine.high %v3842_v47, %v3842_v47  ;;  %v3843_v50 = vcombine.high %v3835_v8, %v3835_v8  ;;  %v3849_v53 = vmul.f32 %v3835_v8, %v7096_v4  ;;  %v3858_v17 = vmul.f32 %v3835_v8, %v7111_v51 }
 0xb3e   :  { %v3851_v32 = vmul.f32 %v3842_v47, %v7099_v7  ;;  %v3854_v19 = vmul.f32 %v3835_v8, %v7105_v2  ;;  %v3853_v1 = vmul.f32 %v3835_v8, %v7102_v52 }
 0xb3f   :  { %v3852_v41 = vmul.f32 %v3844_v57, %v7117_v35  ;;  %v3850_v23 = vmul.f32 %v3843_v50, %v7114_v27  ;;  %v3890_v63 = vadd.f32 %v3876_v49, %v3849_v53  ;;  %v3857_v34 = vmul.f32 %v3844_v57, %v7123_v45 }
 0xb40   :  { %v7206_v31 = vadd.f32 %v3876_v49, %v3858_v17  ;;  %v3892_v4 = vadd.f32 %v3883_v62, %v3851_v32  ;;  %v3855_v51 = vmul.f32 %v3843_v50, %v7120_v6  ;;  %v3895_v29 = vadd.f32 %v3876_v49, %v3854_v19 }
 0xb41   :  { %v3891_v36 = vadd.f32 %v3884_v54, %v3850_v23  ;;  %v3900_v3 = vmax.f32 %v3890_v63, 0.0  ;;  %v3893_v7 = vadd.f32 %v3885_v40, %v3852_v41  ;;  %v3898_v59 = vadd.f32 %v3885_v40, %v3857_v34  ;;  %v5701_v23 = vld [vmem:[%s7575_s1 + $0x5f0] ss:$8 sps:$4 sm:$0xff]   ;;  %v5702_v63 = vld [vmem:[%s7575_s1 + $0x5e0] ss:$8 sps:$4 sm:$0xff]  }
 0xb42   :  { %v3902_v2 = vmax.f32 %v3892_v4, 0.0  ;;  %v3896_v35 = vadd.f32 %v3884_v54, %v3855_v51  ;;  %v3856_v27 = vmul.f32 %v3842_v47, %v7108_v38  ;;  %v3909_v44 = vmax.f32 %v7206_v31, 0.0  ;;  %4434 = vmatpush1.bf16.msra.mxu1 %v5701_v23  ;;  %v5703_v34 = vld [vmem:[%s7575_s1 + $0x5d0] ss:$8 sps:$4 sm:$0xff]   ;;  %v5704_v31 = vld [vmem:[%s7575_s1 + $0x5c0] ss:$8 sps:$4 sm:$0xff]  }
 0xb43   :  { %v3901_v61 = vmax.f32 %v3891_v36, 0.0  ;;  %v3903_v0 = vmax.f32 %v3893_v7, 0.0  ;;  %v3908_v45 = vmax.f32 %v3898_v59, 0.0  ;;  %v5393_v52 = vrot.slane %v3900_v3, 9  ;;  %4435 = vmatprep.subr.bf16.mxu1 %v5826_v46  ;;  %v5705_v4 = vld [vmem:[%s7575_s1 + $0x5b0] ss:$8 sps:$4 sm:$0xff]  }
 0xb44   :  { %v3951_v58 = vrot.slane %v3902_v2, 7  ;;  %v3906_v30 = vmax.f32 %v3896_v35, 0.0  ;;  %v3894_v39 = vadd.f32 %v3876_v49, %v3853_v1  ;;  %v3905_v55 = vmax.f32 %v3895_v29, 0.0  ;;  %v5706_v51 = vld [vmem:[%s7575_s1 + $0x5a0] ss:$8 sps:$4 sm:$0xff]  }
 0xb45   :  { %v3948_v11 = vrot.slane %v3901_v61, 7  ;;  %v3968_v14 = vrot.slane %v3908_v45, 7  ;;  %v3954_v22 = vrot.slane %v3903_v0, 7  ;;  %v3897_v38 = vadd.f32 %v3883_v62, %v3856_v27  ;;  %v5707_v1 = vld [vmem:[%s7575_s1 + $0x590] ss:$8 sps:$4 sm:$0xff]  }
 0xb46   :  { %v3953_v43 = vrot.slane %v3951_v58, 2  ;;  %v3971_v5 = vrot.slane %v3909_v44, 7  ;;  %v3962_v48 = vrot.slane %v3906_v30, 7  ;;  %v3904_v60 = vmax.f32 %v3894_v39, 0.0  ;;  %4436 = vmatpush1.bf16.msra.mxu1 %v5702_v63 }
 0xb47   :  { %v3949_v42 = vsel %vm7213_vm7, %v5393_v52, %v3948_v11  ;;  %v3970_v15 = vrot.slane %v3968_v14, 2  ;;  %v3950_v18 = vrot.slane %v3948_v11, 2  ;;  %v3907_v16 = vmax.f32 %v3897_v38, 0.0  ;;  %4437 = vmatprep.subr.bf16.mxu1 %v5826_v46 }
 0xb48   :  { %v7219_v9 = vmax.f32 %v3900_v3, %v3949_v42  ;;  %v3955_v12 = vsel %vm7213_vm7, %v3953_v43, %v3954_v22  ;;  %v5394_v28 = vrot.slane %v3905_v55, 9  ;;  %v3956_v24 = vrot.slane %v3954_v22, 2 }
 0xb49   :  { %v3972_v26 = vsel %vm7213_vm7, %v3970_v15, %v3971_v5  ;;  %v3952_v10 = vsel %vm7213_vm7, %v3950_v18, %v3951_v58  ;;  %v7233_v21 = vmax.f32 %v3902_v2, %v3955_v12  ;;  %v3965_v25 = vrot.slane %v3907_v16, 7 }
 0xb4a   :  { %4004 = vrot.lane.b32.xlu1 %v7219_v9, %s7611_s27  ;;  %v7227_v20 = vmax.f32 %v3908_v45, %v3972_v26  ;;  %v3963_v37 = vsel %vm7213_vm7, %v5394_v28, %v3962_v48  ;;  %v3957_v49 = vrot.slane %v3904_v60, 7  ;;  %v7239_v62 = vmax.f32 %v3901_v61, %v3952_v10  ;;  %4438 = vmatpush1.bf16.msra.mxu1 %v5703_v34 }
 0xb4b   :  { %v3967_v33 = vrot.slane %v3965_v25, 2  ;;  %v3964_v8 = vrot.slane %v3962_v48, 2  ;;  %v7245_v47 = vmax.f32 %v3905_v55, %v3963_v37  ;;  %v3973_v32 = vrot.slane %v3971_v5, 2  ;;  %4439 = vmatprep.subr.bf16.mxu1 %v5826_v46 }
 0xb4c   :  { %4020 = vrot.lane.b32.xlu0 %v7227_v20, %s7611_s27  ;;  %v3958_v13 = vsel %vm7213_vm7, %v3956_v24, %v3957_v49  ;;  %v3959_v53 = vrot.slane %v3957_v49, 2 }
 0xb4d   :  { %v3969_v54 = vsel %vm7213_vm7, %v3967_v33, %v3968_v14  ;;  %v7251_v40 = vmax.f32 %v3903_v0, %v3958_v13  ;;  %v3966_v57 = vsel %vm7213_vm7, %v3964_v8, %v3965_v25  ;;  %v7269_v41 = vmax.f32 %v3909_v44, %v3973_v32 }
 0xb4e   :  { %4008 = vrot.lane.b32.xlu1 %v7233_v21, %s7611_s27  ;;  %v7257_v50 = vmax.f32 %v3907_v16, %v3969_v54  ;;  %v7261_v17 = vmax.f32 %v3906_v30, %v3966_v57  ;;  %v7265_v19 = vmax.f32 %v3904_v60, %v3959_v53  ;;  %4440 = vmatpush1.bf16.msra.mxu1 %v5704_v31 }
 0xb4f   :  { %4441 = vmatprep.subr.bf16.mxu1 %v5826_v46 }
 0xb50   :  { %4006 = vrot.lane.b32.xlu0 %v7239_v62, %s7611_s27 }
 0xb52   :  { %4014 = vrot.lane.b32.xlu1 %v7245_v47, %s7611_s27  ;;  %4442 = vmatpush1.bf16.msra.mxu1 %v5705_v4 }
 0xb53   :  { %4443 = vmatprep.subr.bf16.mxu1 %v5826_v46 }
 0xb54   :  { %4010 = vrot.lane.b32.xlu0 %v7251_v40, %s7611_s27 }
 0xb56   :  { %4018 = vrot.lane.b32.xlu1 %v7257_v50, %s7611_s27  ;;  %4444 = vmatpush1.bf16.msra.mxu1 %v5706_v51 }
 0xb57   :  { %4445 = vmatprep.subr.bf16.mxu1 %v5826_v46 }
 0xb58   :  { %4016 = vrot.lane.b32.xlu0 %v7261_v17, %s7611_s27 }
 0xb5a   :  { %4012 = vrot.lane.b32.xlu1 %v7265_v19, %s7611_s27  ;;  %4446 = vmatpush1.bf16.msra.mxu1 %v5707_v1 }
 0xb5b   :  { %4447 = vmatprep.subr.bf16.mxu1 %v5826_v46 }
 0xb5c   :  { %4022 = vrot.lane.b32.xlu0 %v7269_v41, %s7611_s27 }
 0xbbc   :  { %v4005_v36 = vpop.permute.xlu1 %4004 }
 0xbbd   :  { %v4024_v7 = vrot.slane %v4005_v36, 2 }
 0xbbe   :  { %v4021_v3 = vpop.permute.xlu0 %4020 }
 0xbbf   :  { %v4034_v35 = vsel %vm3586_vm8, %v4005_v36, %v4024_v7  ;;  %v4032_v0 = vrot.slane %v4021_v3, 2 }
 0xbc0   :  { %v4009_v59 = vpop.permute.xlu1 %4008  ;;  %v4054_v58 = vmax.f32 %v7219_v9, %v4034_v35 }
 0xbc1   :  { %v4026_v2 = vrot.slane %v4009_v59, 2  ;;  %v4042_v39 = vsel %vm3586_vm8, %v4021_v3, %v4032_v0 }
 0xbc2   :  { %v4007_v29 = vpop.permute.xlu0 %4006  ;;  %v4080_v18 = vrot.slane %v4054_v58, %v6480_v56  ;;  %v4062_v12 = vmax.f32 %v7227_v20, %v4042_v39 }
 0xbc3   :  { %v4036_v27 = vsel %vm3586_vm8, %v4009_v59, %v4026_v2  ;;  %v4025_v61 = vrot.slane %v4007_v29, 2 }
 0xbc4   :  { %v4056_v45 = vmax.f32 %v7233_v21, %v4036_v27  ;;  %v4015_v44 = vpop.permute.xlu1 %4014  ;;  %v4143_v8 = vrot.slane %v4062_v12, %v6480_v56 }
 0xbc5   :  { %v4035_v6 = vsel %vm3586_vm8, %v4007_v29, %v4025_v61  ;;  %v4029_v52 = vrot.slane %v4015_v44, 2 }
 0xbc6   :  { %v4055_v30 = vmax.f32 %v7239_v62, %v4035_v6  ;;  %v4011_v11 = vpop.permute.xlu0 %4010  ;;  %v4096_v43 = vrot.slane %v4056_v45, %v6480_v56  ;;  %v4081_v62 = vcombine.high %v4080_v18, %v4080_v18  ;;  %v4144_v29 = vcombine.high %v4143_v8, %v4143_v8 }
 0xbc7   :  { %v4039_v14 = vsel %vm3586_vm8, %v4015_v44, %v4029_v52  ;;  %v4027_v22 = vrot.slane %v4011_v11, 2 }
 0xbc8   :  { %v4059_v55 = vmax.f32 %v7245_v47, %v4039_v14  ;;  %v4019_v38 = vpop.permute.xlu1 %4018  ;;  %v4088_v42 = vrot.slane %v4055_v30, %v6480_v56  ;;  %v4097_v16 = vcombine.high %v4096_v43, %v4096_v43  ;;  %v4152_v1 = vcombine.low %v4080_v18, %v4081_v62 }
 0xbc9   :  { %v4037_v15 = vsel %vm3586_vm8, %v4011_v11, %v4027_v22  ;;  %v4031_v5 = vrot.slane %v4019_v38, 2 }
 0xbca   :  { %v4057_v9 = vmax.f32 %v7251_v40, %v4037_v15  ;;  %v4017_v26 = vpop.permute.xlu0 %4016  ;;  %v4119_v10 = vrot.slane %v4059_v55, %v6480_v56  ;;  %v4089_v21 = vcombine.high %v4088_v42, %v4088_v42  ;;  %v4154_v23 = vcombine.low %v4096_v43, %v4097_v16 }
 0xbcb   :  { %v4041_v48 = vsel %vm3586_vm8, %v4019_v38, %v4031_v5  ;;  %v4030_v60 = vrot.slane %v4017_v26, 2  ;;  %v4162_v6 = vrot.slane %v4152_v1, %v6480_v56  ;;  %v5717_v1 = vld [vmem:[%s7575_s1 + $0x298] ss:$8 sps:$4 sm:$0xff]  }
 0xbcc   :  { %v4104_v28 = vrot.slane %v4057_v9, %v6480_v56  ;;  %v4013_v24 = vpop.permute.xlu1 %4012  ;;  %v4061_v25 = vmax.f32 %v7257_v50, %v4041_v48  ;;  %v4120_v57 = vcombine.high %v4119_v10, %v4119_v10  ;;  %v4153_v63 = vcombine.low %v4088_v42, %v4089_v21 }
 0xbcd   :  { %v4040_v37 = vsel %vm3586_vm8, %v4017_v26, %v4030_v60  ;;  %v4028_v49 = vrot.slane %v4013_v24, 2 }
 0xbce   :  { %v4105_v33 = vcombine.high %v4104_v28, %v4104_v28  ;;  %v4060_v13 = vmax.f32 %v7261_v17, %v4040_v37  ;;  %v4023_v20 = vpop.permute.xlu0 %4022  ;;  %v4135_v47 = vrot.slane %v4061_v25, %v6480_v56  ;;  %v4169_v35 = vrot.slane %v4153_v63, %v6480_v56  ;;  %v5712_v63 = vld [vmem:[%s7575_s1 + $0x3b8] ss:$8 sps:$4 sm:$0xff]  }
 0xbcf   :  { %v4038_v54 = vsel %vm3586_vm8, %v4013_v24, %v4028_v49  ;;  %v4033_v40 = vrot.slane %v4023_v20, 2 }
 0xbd0   :  { %v4155_v53 = vcombine.low %v4104_v28, %v4105_v33  ;;  %v4127_v32 = vrot.slane %v4060_v13, %v6480_v56  ;;  %v4058_v50 = vmax.f32 %v7265_v19, %v4038_v54  ;;  %v4136_v34 = vcombine.high %v4135_v47, %v4135_v47  ;;  %v5700_v13 = vld [vmem:[%s7575_s1 + $0x570] ss:$8 sps:$4 sm:$0x1f]  }
 0xbd1   :  { %v4043_v31 = vsel %vm3586_vm8, %v4023_v20, %v4033_v40  ;;  %v4176_v19 = vrot.slane %v4154_v23, %v6480_v56  ;;  %v4185_v39 = vcombine.high %v4162_v6, %v4169_v35  ;;  %v4184_v18 = vcombine.low %v4162_v6, %v4169_v35  ;;  %v5708_v20 = vld [vmem:[%s7575_s1 + $0x580] ss:$8 sps:$4 sm:$0xff]  }
 0xbd2   :  { %v4128_v17 = vcombine.high %v4127_v32, %v4127_v32  ;;  %v4219_v4 = vcombine.low %v4120_v57, %v4127_v32  ;;  %v4112_v51 = vrot.slane %v4058_v50, %v6480_v56  ;;  %v4183_v36 = vrot.slane %v4155_v53, %v6480_v56  ;;  %4448 = vmatpush1.bf16.msra.mxu1 %v5708_v20  ;;  %v5710_v50 = vld [vmem:[%s7575_s1 + $0x338] ss:$8 sps:$4 sm:$0xff]   ;;  %v5725_v20 = vld [vmem:[%s7575_s1 + $0x2e8] ss:$8 sps:$4 sm:$0xff]  }
 0xbd3   :  { %v4221_v3 = vcombine.low %v4136_v34, %v4143_v8  ;;  %v4063_v7 = vmax.f32 %v7269_v41, %v4043_v31  ;;  %v4201_v60 = vrot.slane %v4185_v39, %v6480_v56  ;;  %v4194_v21 = vrot.slane %v4184_v18, %v6480_v56  ;;  %4463 = vmatprep.subr.bf16.mxu1 %v5826_v46  ;;  %v5709_v8 = vld [vmem:[%s7575_s1 + $0x600] ss:$8 sps:$4 sm:$0xff]  }
 0xbd4   :  { %v4220_v59 = vcombine.low %v4128_v17, %v4135_v47  ;;  %v4218_v2 = vcombine.low %v4112_v51, %v4119_v10  ;;  %v4235_v0 = vrot.slane %v4219_v4, %v6480_v56  ;;  %v4187_v52 = vcombine.high %v4176_v19, %v4183_v36  ;;  %v5711_v23 = vld [vmem:[%s7575_s1 + $0x2b8] ss:$8 sps:$4 sm:$0xff]   ;;  %v5713_v34 = vld [vmem:[%s7575_s1 + $0x328] ss:$8 sps:$4 sm:$0xff]  }
 0xbd5   :  { %v4151_v27 = vrot.slane %v4063_v7, %v6480_v56  ;;  %v4249_v61 = vrot.slane %v4221_v3, %v6480_v56  ;;  %v4186_v43 = vcombine.low %v4176_v19, %v4183_v36  ;;  %v5715_v31 = vld [vmem:[%s7575_s1 + $0x3a8] ss:$8 sps:$4 sm:$0xff]   ;;  %v5716_v4 = vld [vmem:[%s7575_s1 + $0x318] ss:$8 sps:$4 sm:$0xff]  }
 0xbd6   :  { %v4242_v45 = vrot.slane %v4220_v59, %v6480_v56  ;;  %v4228_v44 = vrot.slane %v4218_v2, %v6480_v56  ;;  %v4215_v5 = vrot.slane %v4187_v52, %v6480_v56  ;;  %4464 = vmatpush2.bf16.msra.mxu1 %v5709_v8  ;;  %v5714_v17 = vld [vmem:[%s7575_s1 + $0x2a8] ss:$8 sps:$4 sm:$0xff]   ;;  %v5718_v51 = vld [vmem:[%s7575_s1 + $0x398] ss:$8 sps:$4 sm:$0xff]  }
 0xbd7   :  { %v4284_v41 = vcombine.low %v4144_v29, %v4151_v27  ;;  %v4208_v10 = vrot.slane %v4186_v43, %v6480_v56  ;;  %4951 = vmatprep.subr.bf16.mxu1 %v5826_v46  ;;  %v5727_v8 = vld [vmem:[%s7575_s1 + $0x368] ss:$8 sps:$4 sm:$0xff]  }
 0xbd8   :  { %v4252_v58 = vcombine.low %v4242_v45, %v4249_v61  ;;  %v4250_v30 = vcombine.low %v4228_v44, %v4235_v0  ;;  %v4251_v11 = vcombine.high %v4228_v44, %v4235_v0  ;;  %v4253_v14 = vcombine.high %v4242_v45, %v4249_v61 }
 0xbd9   :  { %v4291_v22 = vrot.slane %v4284_v41, %v6480_v56  ;;  %v4217_v24 = vcombine.low %v4201_v60, %v4215_v5  ;;  %v4216_v62 = vcombine.low %v4194_v21, %v4208_v10 }
 0xbda   :  { %v4267_v55 = vrot.slane %v4251_v11, %v6480_v56  ;;  %v4281_v38 = vrot.slane %v4253_v14, %v6480_v56  ;;  %v4260_v9 = vrot.slane %v4250_v30, %v6480_v56  ;;  %v4274_v26 = vrot.slane %v4252_v58, %v6480_v56 }
 0xbdb   :  { %v4292_v42 = vcombine.high %v4291_v22, %v4291_v22  ;;  %v4299_v15 = vrot.slane %v4291_v22, %v6480_v56 }
 0xbdc   :  { %v4283_v16 = vcombine.low %v4267_v55, %v4281_v38  ;;  %v4282_v25 = vcombine.low %v4260_v9, %v4274_v26  ;;  %v5719_v38 = vld [vmem:[%s7575_s1 + $0x308] ss:$8 sps:$4 sm:$0xff]  }
 0xbdd   :  { %v4306_v12 = vrot.slane %v4292_v42, %v6480_v56  ;;  %v4315_v48 = vpack.c.bf16 %v4299_v15, %v4299_v15  ;;  %v5720_v42 = vld [vmem:[%s7575_s1 + $0x288] ss:$8 sps:$4 sm:$0xff]  }
 0xbde   :  { %v4314_v49 = vpack.c.bf16 %v4283_v16, %v4217_v24  ;;  %v4313_v33 = vpack.c.bf16 %v4282_v25, %v4216_v62  ;;  %v5721_v15 = vld [vmem:[%s7575_s1 + $0x388] ss:$8 sps:$4 sm:$0xff]   ;;  %v5724_v62 = vld [vmem:[%s7575_s1 + $0x378] ss:$8 sps:$4 sm:$0xff]  }
 0xbdf   :  { %v4316_v28 = vpack.c.bf16 %v4306_v12, %v4306_v12  ;;  %v4326_v37 = vsel %vm2413_vm0, %v4315_v48, 0 }
 0xbe1   :  { %5396 = vmatprep.subr.msk.bf16.mxu0 %vm2413_vm0, %v4316_v28  ;;  %vm4743_vm0 = vcmask 1041409  }
 0xbe2   :  { %4344 = vmatpush1.bf16.msra.mxu0 %v4326_v37  ;;  %v5722_v37 = vld [vmem:[%s7575_s1 + $0x2f8] ss:$8 sps:$4 sm:$0xff]  }
 0xbe3   :  { %4345 = vmatprep.subr.bf16.mxu0 %v4314_v49  ;;  %v5723_v49 = vld [vmem:[%s7575_s1 + $0x278] ss:$8 sps:$4 sm:$0xff]  }
 0xbe6   :  { %4346 = vmatpush1.bf16.msra.mxu0 %v4313_v33 }
 0xbe7   :  { %5451 = vmatprep.subr.bf16.mxu0 %v5710_v50  ;;  %v5729_v50 = vld [vmem:[%s7575_s1 + $0x258] ss:$8 sps:$4 sm:$0xff]  }
 0xbe9   :  { %5397 = vmatmul.mubr.msk.bf16.vlgmr.msra.gmra.mxu0 %vm812_vm13, %v5700_v13  ;;  %vm7645_vm13 = vmmov %vm7640_vm3 }
 0xbea   :  { %5452 = vmatpush3.bf16.msra.mxu0 %v5711_v23 }
 0xbeb   :  { %5453 = vmatprep.subr.bf16.mxu0 %v5713_v34  ;;  %v5731_v34 = vld [vmem:[%s7575_s1 + $0x2c8] ss:$8 sps:$4 sm:$0xff]  }
 0xbee   :  { %5454 = vmatpush3.bf16.msra.mxu0 %v5714_v17  ;;  %v5733_v17 = vld [vmem:[%s7575_s1 + $0x348] ss:$8 sps:$4 sm:$0xff]  }
 0xbef   :  { %5455 = vmatprep.subr.bf16.mxu0 %v5716_v4 }
 0xbf2   :  { %5456 = vmatpush3.bf16.msra.mxu0 %v5717_v1  ;;  %v5734_v1 = vld [vmem:[%s7575_s1 + $0x3c8] ss:$8 sps:$4 sm:$0xff]  }
 0xbf3   :  { %5457 = vmatprep.subr.bf16.mxu0 %v5719_v38 }
 0xbf6   :  { %5458 = vmatpush3.bf16.msra.mxu0 %v5720_v42 }
 0xbf7   :  { %5459 = vmatprep.subr.bf16.mxu0 %v5722_v37  ;;  %v5737_v37 = vld [vmem:[%s7575_s1 + $0x428] ss:$8 sps:$4 sm:$0xff]  }
 0xbfa   :  { %5460 = vmatpush3.bf16.msra.mxu0 %v5723_v49  ;;  %v5738_v49 = vld [vmem:[%s7575_s1 + $0x418] ss:$8 sps:$4 sm:$0xff]  }
 0xbfb   :  { %5461 = vmatprep.subr.bf16.mxu0 %v5725_v20 }
 0xca9   :  { %v4365_v47 = vpop.f32.mrf.mxu0 }
 0xcab   :  { %v4367_v54 = vpop.f32.mrf.mxu0 }
 0xcad   :  { %v4369_v40 = vpop.f32.mrf.mxu0 }
 0xcae   :  { %v4374_v32 = vpack.c.bf16 %v4369_v40, %v4365_v47 }
 0xcaf   :  { %v4371_v57 = vpop.f32.mrf.mxu0 }
 0xcb0   :  { %v4375_v53 = vpack.c.bf16 %v4371_v57, %v4367_v54  ;;  %v5726_v54 = vld [vmem:[%s7575_s1 + $0x268] ss:$8 sps:$4 sm:$0xff]  }
 0xcb1   :  { %5462 = vmatpush3.bf16.msra.mxu0 %v5726_v54  ;;  %v5745_v54 = vld [vmem:[%s7575_s1 + $0x480] ss:$8 sps:$4 sm:$0xff]  }
 0xcb2   :  { %5407 = vmatprep.mubr.msk.bf16.mxu1 %vm3579_vm14, %v4375_v53  ;;  %v5728_v53 = vld [vmem:[%s7575_s1 + $0x2d8] ss:$8 sps:$4 sm:$0xff]  }
 0xcb3   :  { %4466 = vmatmul.mubr.bf16.vlgmr.msra.gmra.mxu1 %v4374_v32  ;;  %v5730_v32 = vld [vmem:[%s7575_s1 + $0x358] ss:$8 sps:$4 sm:$0xff]   ;;  %5463 = vmatprep.subr.bf16.mxu0 %v5728_v53 }
 0xcb4   :  { %4952 = vmatpush1.bf16.msra.mxu1 %v5712_v63 }
 0xcb5   :  { %4953 = vmatprep.subr.bf16.mxu1 %v5826_v46  ;;  %5464 = vmatpush3.bf16.msra.mxu0 %v5729_v50 }
 0xcb6   :  { %5465 = vmatprep.subr.bf16.mxu0 %v5731_v34 }
 0xcb8   :  { %4954 = vmatpush1.bf16.msra.mxu1 %v5715_v31  ;;  %v5732_v31 = vld [vmem:[%s7575_s1 + $0x248] ss:$8 sps:$4 sm:$0xff]  }
 0xcb9   :  { %4955 = vmatprep.subr.bf16.mxu1 %v5826_v46  ;;  %5466 = vmatpush3.bf16.msra.mxu0 %v5732_v31 }
 0xcbc   :  { %4956 = vmatpush1.bf16.msra.mxu1 %v5718_v51 }
 0xcbd   :  { %4957 = vmatprep.subr.bf16.mxu1 %v5826_v46 }
 0xcc0   :  { %4958 = vmatpush1.bf16.msra.mxu1 %v5721_v15 }
 0xcc1   :  { %4959 = vmatprep.subr.bf16.mxu1 %v5826_v46 }
 0xcc4   :  { %4960 = vmatpush1.bf16.msra.mxu1 %v5724_v62  ;;  %v5739_v62 = vld [vmem:[%s7575_s1 + $0x408] ss:$8 sps:$4 sm:$0xff]  }
 0xcc5   :  { %4961 = vmatprep.subr.bf16.mxu1 %v5826_v46 }
 0xcc8   :  { %4962 = vmatpush1.bf16.msra.mxu1 %v5727_v8  ;;  %v5744_v8 = vld [vmem:[%s7575_s1 + $0x490] ss:$8 sps:$4 sm:$0xff]  }
 0xcc9   :  { %4963 = vmatprep.subr.bf16.mxu1 %v5826_v46 }
 0xccc   :  { %4964 = vmatpush1.bf16.msra.mxu1 %v5730_v32 }
 0xccd   :  { %4965 = vmatprep.subr.bf16.mxu1 %v5826_v46 }
 0xcd0   :  { %4966 = vmatpush1.bf16.msra.mxu1 %v5733_v17 }
 0xcd1   :  { %4981 = vmatprep.subr.bf16.mxu1 %v5826_v46 }
 0xcd4   :  { %4982 = vmatpush2.bf16.msra.mxu1 %v5734_v1 }
 0xd73   :  { %v4467_v36 = vpop.f32.mrf.mxu1 }
 0xd74   :  { %v4476_v3 = vcombine.high %v4467_v36, %v4467_v36  ;;  %v4483_v7 = vrot.slane %v4467_v36, %v6480_v56 }
 0xd75   :  { %v4469_v59 = vpop.f32.mrf.mxu1 }
 0xd76   :  { %v4490_v2 = vrot.slane %v4476_v3, %v6480_v56  ;;  %v4491_v29 = vcombine.high %v4483_v7, %v4483_v7  ;;  %v4499_v19 = vrot.slane %v4483_v7, %v6480_v56 }
 0xd77   :  { %v4470_v35 = vpop.f32.mrf.mxu1 }
 0xd78   :  { %v4492_v27 = vcombine.high %v4490_v2, %v4490_v2  ;;  %v4506_v61 = vrot.slane %v4490_v2, %v6480_v56  ;;  %v4513_v0 = vrot.slane %v4491_v29, %v6480_v56  ;;  %v4531_v45 = vrot.slane %v4470_v35, %v6480_v56 }
 0xd79   :  { %v4472_v44 = vpop.f32.mrf.mxu1 }
 0xd7a   :  { %v4520_v6 = vrot.slane %v4492_v27, %v6480_v56  ;;  %v4522_v41 = vcombine.high %v4506_v61, %v4506_v61  ;;  %v4600_v52 = vcombine.low %v4499_v19, %v4513_v0  ;;  %v5408_v58 = vcombine.high %v4499_v19, %v4513_v0 }
 0xd7b   :  { %v4622_v30 = vrot.slane %v4506_v61, %v6480_v56  ;;  %v4532_v11 = vcombine.high %v4531_v45, %v4531_v45  ;;  %v4539_v14 = vrot.slane %v4531_v45, %v6480_v56 }
 0xd7c   :  { %v4608_v22 = vrot.slane %v4600_v52, %v6480_v56  ;;  %v4615_v39 = vrot.slane %v5408_v58, %v6480_v56  ;;  %v4639_v43 = vcombine.low %v4520_v6, %v4522_v41  ;;  %v4524_v55 = vcombine.high %v4520_v6, %v4520_v6 }
 0xd7d   :  { %v4546_v5 = vrot.slane %v4532_v11, %v6480_v56  ;;  %v4637_v26 = vrot.slane %v4622_v30, %v6480_v56 }
 0xd7e   :  { %v4623_v18 = vcombine.low %v4608_v22, %v4615_v39  ;;  %v4640_v9 = vcombine.low %v4524_v55, %v4539_v14  ;;  %v4647_v48 = vrot.slane %v4639_v43, %v6480_v56 }
 0xd7f   :  { %v4661_v16 = vrot.slane %v4546_v5, %v6480_v56 }
 0xd80   :  { %v4630_v12 = vrot.slane %v4623_v18, %v6480_v56  ;;  %v4654_v60 = vrot.slane %v4640_v9, %v6480_v56 }
 0xd81   :  { %v4676_v25 = vrot.slane %v4661_v16, %v6480_v56 }
 0xd82   :  { %v4638_v10 = vcombine.low %v4630_v12, %v4637_v26  ;;  %v4662_v28 = vcombine.low %v4647_v48, %v4654_v60 }
 0xd84   :  { %v4680_v24 = vpack.c.bf16 %v4638_v10, %v4638_v10  ;;  %v4669_v21 = vrot.slane %v4662_v28, %v6480_v56  ;;  %v5735_v28 = vld [vmem:[%s7575_s1 + $0x448] ss:$0 sps:$4 sm:$0xff]  }
 0xd86   :  { %v4677_v33 = vcombine.low %v4669_v21, %v4676_v25  ;;  %v4683_v13 = vshrl.u32 %v4680_v24, 16  ;;  %v4706_v4 = vrot.slane %v4680_v24, 2  ;;  %v4694_v51 = vrot.slane %v4680_v24, 1  ;;  %v5736_v25 = vld [vmem:[%s7575_s1 + $0x438] ss:$8 sps:$4 sm:$0xff]  }
 0xd88   :  { %v4681_v47 = vpack.c.bf16 %v4677_v33, %v4677_v33  ;;  %4688 = vrot.lane.b32.xlu1 %v4683_v13, %s5791_s26  ;;  %v4700_v23 = vrot.slane %v4683_v13, 1  ;;  %v5740_v33 = vld [vmem:[%s7575_s1 + $0x3f8] ss:$8 sps:$4 sm:$0xff]  }
 0xd89   :  { %v5743_v13 = vld [vmem:[%s7575_s1 + $0x4a0] ss:$0 sps:$4 sm:$0x33]  }
 0xd8a   :  { %v4695_v40 = vrot.slane %v4681_v47, 1  ;;  %v4686_v57 = vshrl.u32 %v4681_v47, 16  ;;  %v4707_v36 = vrot.slane %v4681_v47, 2  ;;  %v5210_v20 = vsel %vm3212_vm4, %v5743_v13, 0 }
 0xd8b   :  { %vm5018_vm4 = vcmask 974848  }
 0xd8c   :  { %4698 = vrot.lane.b32.xlu1 %v4695_v40, %s5783_s12  ;;  %4690 = vrot.lane.b32.xlu0 %v4686_v57, %s5791_s26  ;;  %v4701_v63 = vrot.slane %v4686_v57, 1  ;;  %v5742_v40 = vld [vmem:[%s7575_s1 + $0x3d8] ss:$8 sps:$4 sm:$0xff]  }
 0xd8d   :  { %v5746_v57 = vld [vmem:[%s7575_s1 + $0x470] ss:$8 sps:$4 sm:$0xff]  }
 0xd90   :  { %4702 = vrot.lane.b32.xlu1 %v4700_v23, %s7611_s27  ;;  %4704 = vrot.lane.b32.xlu0 %v4701_v63, %s7611_s27 }
 0xd94   :  { %4708 = vrot.lane.b32.xlu1 %v4706_v4, %s7634_s22  ;;  %4696 = vrot.lane.b32.xlu0 %v4694_v51, %s5783_s12  ;;  %v4597_v51 = vld [vmem:[%s7576_s2 + $0x6] ss:$0 sm:$0xff] }
 0xd98   :  { %4710 = vrot.lane.b32.xlu0 %v4707_v36, %s7634_s22 }
 0xdfa   :  { %v4689_v3 = vpop.permute.xlu1 %4688 }
 0xdfb   :  { %v4713_v0 = vsel %vm2715_vm10, %v4680_v24, %v4689_v3  ;;  %v5830_v24 = vmov 0.0  }
 0xdfc   :  { %v4734_v41 = vunpack.c.l.b16 %v4713_v0  ;;  %5489 = vmatprep.subr.bf16.mxu0 %v5830_v24  ;;  %5509 = vmatprep.subr.bf16.mxu1 %v5830_v24 }
 0xdfe   :  { %v4699_v7 = vpop.permute.xlu1 %4698  ;;  %v4691_v59 = vpop.permute.xlu0 %4690 }
 0xdff   :  { %v4715_v2 = vsel %vm2715_vm10, %v4681_v47, %v4691_v59  ;;  %v4719_v29 = vsel %vm7645_vm13, %v4691_v59, %v4699_v7  ;;  %vm7648_vm10 = vcmask 1043456   ;;  %v5741_v47 = vld [vmem:[%s7575_s1 + $0x3e8] ss:$8 sps:$4 sm:$0xff]  }
 0xe00   :  { %v4738_v19 = vunpack.c.l.b16 %v4715_v2  ;;  %v5117_v21 = vsel %vm7648_vm10, %v5735_v28, 0  ;;  %v5059_v28 = vld [vmem:[%s7576_s2 + $0x11] ss:$0 sm:$0xff] }
 0xe02   :  { %v4703_v35 = vpop.permute.xlu1 %4702  ;;  %v4705_v27 = vpop.permute.xlu0 %4704  ;;  %v4742_v46 = vrot.slane %v4738_v19, 7 }
 0xe03   :  { %v4723_v61 = vsel %vm3586_vm8, %v4719_v29, %v4705_v27 }
 0xe04   :  { %v4739_v45 = vunpack.c.l.b16 %v4723_v61  ;;  %v4744_v14 = vsel %vm4743_vm0, %v4742_v46, %v4734_v41 }
 0xe05   :  { %v4751_v5 = vpack.c.b16 %v4744_v14, %v4744_v14 }
 0xe06   :  { %v4697_v44 = vpop.permute.xlu0 %4696  ;;  %v4709_v52 = vpop.permute.xlu1 %4708  ;;  %v4745_v30 = vrot.slane %v4739_v45, 7 }
 0xe07   :  { %v4717_v6 = vsel %vm7640_vm3, %v4689_v3, %v4697_v44  ;;  %v4725_v39 = vsel %vm7646_vm12, %v4703_v35, %v4709_v52  ;;  %v4737_v18 = vunpack.c.l.b16 %v4709_v52 }
 0xe08   :  { %v4721_v58 = vsel %vm3586_vm8, %v4717_v6, %v4703_v35  ;;  %v4736_v26 = vunpack.c.l.b16 %v4725_v39  ;;  %vm5112_vm8 = vcmask 982016  }
 0xe09   :  { %v4735_v11 = vunpack.c.l.b16 %v4721_v58 }
 0xe0a   :  { %v4711_v22 = vpop.permute.xlu0 %4710 }
 0xe0b   :  { %v4727_v43 = vsel %vm7647_vm15, %v4705_v27, %v4711_v22  ;;  %v4741_v55 = vunpack.c.l.b16 %v4711_v22  ;;  %v4746_v38 = vsel %vm4743_vm0, %v4745_v30, %v4735_v11  ;;  %v4599_v22 = vld [vmem:[%s7576_s2 + $0x10] ss:$0 sm:$0xff] }
 0xe0c   :  { %v4740_v42 = vunpack.c.l.b16 %v4727_v43  ;;  %v4752_v15 = vpack.c.b16 %v4746_v38, %v4746_v38 }
 0xe0d   :  { %v4749_v9 = vrot.slane %v4741_v55, 7 }
 0xe0e   :  { %v4747_v12 = vrot.slane %v4740_v42, 7  ;;  %4943 = vmatprep.mubr.bf16.mxu0 %v4752_v15 }
 0xe0f   :  { %v4750_v48 = vsel %vm4743_vm0, %v4749_v9, %v4737_v18  ;;  %4944 = vmatmul.mubr.bf16.vlgmr.msra.gmra.mxu0 %v4751_v5 }
 0xe10   :  { %v4748_v60 = vsel %vm4743_vm0, %v4747_v12, %v4736_v26  ;;  %v4754_v16 = vpack.c.b16 %v4750_v48, %v4750_v48  ;;  %5490 = vmatpush3.bf16.msra.mxu0 %v5117_v21 }
 0xe11   :  { %v4753_v10 = vpack.c.b16 %v4748_v60, %v4748_v60  ;;  %5491 = vmatprep.subr.bf16.mxu0 %v5830_v24 }
 0xe12   :  { %5434 = vmatprep.mubr.msk.bf16.mxu1 %vm3579_vm14, %v4754_v16  ;;  %vm5831_vm14 = vmmov 0   ;;  %v5747_v16 = vld [vmem:[%s7575_s1 + $0x460] ss:$8 sps:$4 sm:$0xff]  }
 0xe13   :  { %4984 = vmatmul.mubr.bf16.vlgmr.msra.gmra.mxu1 %v4753_v10  ;;  %5505 = vmatprep.mubr.msk.bf16.mxu0 %vm5831_vm14, %v5830_v24  ;;  %v5748_v10 = vld [vmem:[%s7575_s1 + $0x450] ss:$8 sps:$4 sm:$0xff]   ;;  %s5832_s1 = smov [#allocation2]  }
 0xe14   :  { %5492 = vmatpush3.bf16.msra.mxu0 %v5736_v25  ;;  %5521 = vmatprep.mubr.msk.bf16.mxu1 %vm5831_vm14, %v5830_v24 }
 0xe15   :  { %5493 = vmatprep.subr.bf16.mxu0 %v5830_v24  ;;  %5510 = vmatpush3.bf16.msra.mxu1 %v5210_v20  ;;  %v5172_v20 = vld [vmem:[%s7576_s2 + $0x12] ss:$0 sm:$0xff] }
 0xe16   :  { %5511 = vmatprep.subr.bf16.mxu1 %v5830_v24 }
 0xe18   :  { %5494 = vmatpush3.bf16.msra.mxu0 %v5737_v37 }
 0xe19   :  { %5495 = vmatprep.subr.bf16.mxu0 %v5830_v24  ;;  %5512 = vmatpush3.bf16.msra.mxu1 %v5744_v8 }
 0xe1a   :  { %5513 = vmatprep.subr.bf16.mxu1 %v5830_v24 }
 0xe1c   :  { %5496 = vmatpush3.bf16.msra.mxu0 %v5738_v49 }
 0xe1d   :  { %5497 = vmatprep.subr.bf16.mxu0 %v5830_v24  ;;  %5514 = vmatpush3.bf16.msra.mxu1 %v5745_v54 }
 0xe1e   :  { %5515 = vmatprep.subr.bf16.mxu1 %v5830_v24 }
 0xe20   :  { %5498 = vmatpush3.bf16.msra.mxu0 %v5739_v62 }
 0xe21   :  { %5499 = vmatprep.subr.bf16.mxu0 %v5830_v24  ;;  %5516 = vmatpush3.bf16.msra.mxu1 %v5746_v57 }
 0xe22   :  { %5517 = vmatprep.subr.bf16.mxu1 %v5830_v24 }
 0xe24   :  { %5500 = vmatpush3.bf16.msra.mxu0 %v5740_v33 }
 0xe25   :  { %5501 = vmatprep.subr.bf16.mxu0 %v5830_v24  ;;  %5518 = vmatpush3.bf16.msra.mxu1 %v5747_v16 }
 0xe26   :  { %5519 = vmatprep.subr.bf16.mxu1 %v5830_v24 }
 0xe28   :  { %5502 = vmatpush3.bf16.msra.mxu0 %v5741_v47 }
 0xe29   :  { %5503 = vmatprep.subr.bf16.mxu0 %v5830_v24  ;;  %5520 = vmatpush3.bf16.msra.mxu1 %v5748_v10 }
 0xe2c   :  { %5504 = vmatpush3.bf16.msra.mxu0 %v5742_v40 }
 0xecf   :  { %v5467_v53 = vpop.f32.mrf.mxu0 }
 0xed1   :  { %v5468_v32 = vpop.f32.mrf.mxu0 }
 0xed2   :  { %v5469_v50 = vadd.f32 %v5468_v32, %v5467_v53 }
 0xed3   :  { %v5470_v23 = vpop.f32.mrf.mxu0  ;;  %v4985_v63 = vpop.f32.mrf.mxu1 }
 0xed4   :  { %v4986_v34 = vadd.f32 %v5469_v50, %v4985_v63 }
 0xed5   :  { %v5471_v31 = vpop.f32.mrf.mxu0  ;;  %v4987_v17 = vpop.f32.mrf.mxu1 }
 0xed6   :  { %v4998_v4 = vrot.slane %v4986_v34, %v6480_v56 }
 0xed7   :  { %v4988_v1 = vpop.f32.mrf.mxu1 }
 0xed8   :  { %v4999_v36 = vcombine.high %v4998_v4, %v4998_v4  ;;  %v5006_v3 = vrot.slane %v4998_v4, %v6480_v56 }
 0xed9   :  { %v4989_v7 = vpop.f32.mrf.mxu1 }
 0xeda   :  { %v5013_v59 = vrot.slane %v4999_v36, %v6480_v56  ;;  %v5016_v2 = vadd.f32 %v5006_v3, %v4597_v51  ;;  %v4598_v56 = vld [vmem:[%s7576_s2 + $0x7] ss:$0 sm:$0xff]  ;;  %s5272_s2 = sshll.u32 %s5832_s1, 4  ;;  %s5273_s2 = int_to_ptr.vmem [resolvable:$true] %s5272_s2 }
 0xedb   :  { %s5759_s4 = scalar_lea.vmem %s5273_s2, 32  ;;  %p5764_p1 = scmp.lt.s32.totalorder %s5273_s2, %s5273_s2 }
 0xedc   :  { %v5017_v29 = vadd.f32 %v5013_v59, %v4597_v51  ;;  %v5019_v19 = vsel %vm5018_vm4, %v5016_v2, 0.0  ;;  %p5760_p0 = scmp.ne.s32.totalorder %s5273_s2, %s5759_s4  ;;  %p5765_p2 = scmp.lt.s32.totalorder %s5759_s4, %s5759_s4 }
 0xede   :  { %v5020_v35 = vsel %vm5018_vm4, %v5017_v29, 0.0  ;;  %p5766_p3 = por %p5765_p2, %p5764_p1 }
 0xedf   :  { %v5021_v27 = vadd.f32 %v5020_v35, %v5019_v19 }
 0xee0   :  { %p5767_p4 = pnand %p5766_p3, %p5760_p0 }
 0xee1   :  { %v5023_v61 = vmul.f32 0.5, %v5021_v27 }
 0xee3   :  { %v5024_v0 = vsub.f32 %v5016_v2, %v5023_v61  ;;  %v5025_v45 = vsub.f32 %v5017_v29, %v5023_v61 }
 0xee5   :  { %v5026_v46 = vmul.f32 %v5024_v0, %v5024_v0  ;;  %v5027_v44 = vmul.f32 %v5025_v45, %v5025_v45 }
 0xee7   :  { %v5028_v6 = vsel %vm5018_vm4, %v5026_v46, 0.0  ;;  %v5029_v41 = vsel %vm5018_vm4, %v5027_v44, 0.0 }
 0xee8   :  { %v5030_v52 = vadd.f32 %v5029_v41, %v5028_v6 }
 0xeea   :  { %v5032_v58 = vmul.f32 0.5, %v5030_v52 }
 0xeec   :  { %v5033_v30 = vadd.f32 1e-05, %v5032_v58 }
 0xeee   :  { %5753 = vrsqrt.f32 %v5033_v30 }
 0xefb   :  { %v5754_v11 = vpop.eup %5753 }
 0xefc   :  { %v5035_v14 = vmul.f32 %v5754_v11, %v4598_v56 }
 0xefe   :  { %v5036_v39 = vmul.f32 %v5035_v14, %v5024_v0  ;;  %v5037_v43 = vmul.f32 %v5035_v14, %v5025_v45 }
 0xf00   :  { %v5038_v55 = vadd.f32 %v5036_v39, %v4599_v22  ;;  %v5039_v38 = vadd.f32 %v5037_v43, %v4599_v22 }
 0xf02   :  { %v5040_v42 = vmax.f32 %v5038_v55, 0.0  ;;  %v5041_v15 = vmax.f32 %v5039_v38, 0.0 }
 0xf04   :  { %v5042_v5 = vpack.c.bf16 %v5040_v42, %v5040_v42  ;;  %v5043_v18 = vpack.c.bf16 %v5041_v15, %v5041_v15 }
 0xf06   :  { %v5063_v9 = vunpack.c.l.b16 %v5043_v18  ;;  %v5062_v26 = vunpack.c.l.b16 %v5042_v5 }
 0xf08   :  { %v5064_v12 = vrot.slane %v5063_v9, 7 }
 0xf0a   :  { %v5065_v48 = vsel %vm4743_vm0, %v5064_v12, %v5062_v26 }
 0xf0b   :  { %v5066_v60 = vpack.c.b16 %v5065_v48, %v5065_v48 }
 0xf0d   :  { %5506 = vmatmul.mubr.msk.bf16.vlgmr.msra.gmra.mxu0 %vm5112_vm8, %v5066_v60 }
 0xfcd   :  { %v5153_v21 = vpop.f32.mrf.mxu0 }
 0xfce   :  { %v5154_v25 = vadd.f32 %v5153_v21, %v5059_v28 }
 0xfcf   :  { %v5507_v37 = vpop.f32.mrf.mxu0 }
 0xfd0   :  { %v5159_v49 = vmax.f32 %v5154_v25, 0.0 }
 0xfd1   :  { %v5156_v62 = vpop.f32.mrf.mxu0 }
 0xfd2   :  { %v5160_v33 = vpack.c.bf16 %v5159_v49, %v5159_v49 }
 0xfd3   :  { %v5508_v13 = vpop.f32.mrf.mxu0 }
 0xfd4   :  { %5522 = vmatmul.mubr.msk.bf16.vlgmr.msra.gmra.mxu1 %vm834_vm2, %v5160_v33 }
0x1094   :  { %v5246_v8 = vpop.f32.mrf.mxu1 }
0x1095   :  { %v5247_v24 = vadd.f32 %v5246_v8, %v5172_v20 }
0x1096   :  { %v5523_v47 = vpop.f32.mrf.mxu1 }
0x1097   :  { %v5253_v54 = vsel %vm5252_vm1, %v5247_v24, -inf }
0x1098   :  { %5254 = vmax.xlane.f32.xlu0 %v5253_v54  ;;  %v5249_v40 = vpop.f32.mrf.mxu1 }
0x109a   :  { %v5524_v57 = vpop.f32.mrf.mxu1 }
0x1121   :  { %v5255_v53 = vpop.xlane.xlu0 %5254 }
0x1122   :  { %v5256_v32 = vsub.f32 %v5247_v24, %v5255_v53 }
0x1124   :  { %v5257_v50 = vmul.f32 1.442695, %v5256_v32 }
0x1126   :  { %5755 = vpow2.f32 %v5257_v50 }
0x1133   :  { %v5756_v23 = vpop.eup %5755 }
0x1134   :  { %v5259_v63 = vsel %vm5252_vm1, %v5756_v23, 0.0 }
0x1135   :  { %5260 = vadd.xlane.f32.xlu1 %v5259_v63 }
0x11be   :  { %v5261_v34 = vpop.xlane.xlu1 %5260 }
0x11bf   :  { %5757 = vlog2.f32 %v5261_v34 }
0x11cc   :  { %v5758_v31 = vpop.eup %5757 }
0x11cd   :  { %v5263_v17 = vmul.f32 0.6931472, %v5758_v31 }
0x11cf   :  { %v5264_v4 = vsub.f32 %v5256_v32, %v5263_v17 }
0x11d1   :  { %5265 = vst.msk [vmem:[#allocation2] sm:$0x3] %vm5252_vm1, %v5264_v4 }
0x11d2   :  { %5770 = shalt.err (!%p5767_p4)
}
0x11d3   :  { %5275 = dma.vmem_to_hbm [thread:$0]  %s5273_s2, 32, %s7577_s3, [#allocation3]  }
0x11d4   :  { %5779 = dma.done.wait [#allocation3], 32  }
0x11d5   :  { %5780 = vsyncadd [#allocation3], 4294967264 }
0x11d6   :  { %5279 = vsyncpa [#allocation3], 1 }

</bundles_post_ra>
